<compile_context>
chip_gen: v5e
topology: v5e:2x2
jax: 0.10.0
libtpu: 0.0.40
codegen_flags: <defaults>
</compile_context>

<pallas_src>
import math

import jax
import jax.numpy as jnp
import numpy as np
from jax.experimental import pallas as pl
from jax.experimental.pallas import tpu as pltpu


# ----------------------------- in-kernel helpers -----------------------------

def _erf(z):
    # Abramowitz & Stegun 7.1.26 (max abs err ~1.5e-7); avoids relying on an erf
    # primitive lowering inside Mosaic.  Only uses exp/abs/mul/add.
    a1, a2, a3, a4, a5 = 0.254829592, -0.284496736, 1.421413741, -1.453152027, 1.061405429
    p = 0.3275911
    s = jnp.where(z >= 0.0, 1.0, -1.0)
    az = jnp.abs(z)
    t = 1.0 / (1.0 + p * az)
    poly = ((((a5 * t + a4) * t + a3) * t + a2) * t + a1) * t
    return s * (1.0 - poly * jnp.exp(-az * az))


def _gelu(z):
    # torch nn.GELU() default = exact erf GELU (approximated by the A&S polynomial)
    return 0.5 * z * (1.0 + _erf(z * 0.7071067811865476))


def _layer_norm_fm(z, g, b, eps=1e-5):
    # feature-major LayerNorm: features on sublanes (axis 0), channels D on lanes
    mu = jnp.mean(z, axis=0, keepdims=True)
    var = jnp.mean((z - mu) ** 2, axis=0, keepdims=True)
    return (z - mu) * jax.lax.rsqrt(var + eps) * g + b


# --------------------------------- kernel ------------------------------------

def _ts_interp_kernel(x_ref, tt_ref, m_ref, im_ref,
                      te_w_ref, te_b_ref, wqk_ref, bqk_ref,
                      wo_ref, bo_ref, c1_ref, c2_ref,
                      w1_ref, b1_ref, g1_ref, be1_ref,
                      w2_ref, b2_ref, g2_ref, be2_ref,
                      w3_ref, b3_ref,
                      out_ref):
    x = x_ref[0]                  # (L, D)  observed values, D on lanes
    m = m_ref[0]                  # (L, D)  observation mask
    tt = tt_ref[0]                # (1, L)  timestamps of this batch element

    te_w = te_w_ref[...]          # (E, 1)
    te_b = te_b_ref[...]          # (E, 1)

    # mTAN learned time embedding of the key timestamps, feature-major (E, L):
    # row 0 = linear component, rows 1.. = sin(periodic).
    raw = te_w * tt + te_b                                            # (E, L)
    row = jax.lax.broadcasted_iota(jnp.int32, raw.shape, 0)
    key_emb = jnp.where(row == 0, raw, jnp.sin(raw))                  # (E, L)

    # attention scores vs projected cls queries; Wk is folded into wqk (wrapper),
    # 1/sqrt(E) is folded into wqk/bqk.
    scores_ql = jnp.dot(wqk_ref[...], key_emb,
                        preferred_element_type=jnp.float32) + bqk_ref[...]   # (Q, L)

    # masked softmax over time, per channel d   (layout (Q, L, D), D on lanes)
    scores = jnp.where(m[None, :, :] == 0.0, -1e9, scores_ql[:, :, None])
    smax = jnp.max(scores, axis=1, keepdims=True)
    pexp = jnp.exp(scores - smax)
    p = pexp * pl.reciprocal(jnp.sum(pexp, axis=1, keepdims=True), approx=True)
    xq = jnp.sum(p * x[None, :, :], axis=1)                           # (Q, D)

    # learned query-attention pooling over the Q reference points; the (Q, H) mtan
    # tensor is eliminated algebraically (c1 = <Wo,qa>, c2 = <bo,qa>, sum(ap) == 1).
    aw = xq * c1_ref[...] + c2_ref[...]                               # (Q, D)
    aexp = jnp.exp(aw - jnp.max(aw, axis=0, keepdims=True))
    ap = aexp * pl.reciprocal(jnp.sum(aexp, axis=0, keepdims=True), approx=True)
    s = jnp.sum(ap * xq, axis=0, keepdims=True)                       # (1, D)
    latent = wo_ref[...] * s + bo_ref[...]                            # (H, D)

    # interpolation head (Linear -> LN -> GELU -> [Dropout=id] -> Linear -> LN ->
    # GELU -> Linear(1)), feature-major so D stays on lanes end-to-end.
    h = jnp.dot(w1_ref[...], latent, preferred_element_type=jnp.float32) + b1_ref[...]
    h = _gelu(_layer_norm_fm(h, g1_ref[...], be1_ref[...]))
    h = jnp.dot(w2_ref[...], h, preferred_element_type=jnp.float32) + b2_ref[...]
    h = _gelu(_layer_norm_fm(h, g2_ref[...], be2_ref[...]))
    pred = jnp.sum(w3_ref[...] * h, axis=0, keepdims=True) + b3_ref[...]     # (1, D)

    # fused masked scatter: predictions[l, d] = pred[d] where interp_mask else 0
    out_ref[0] = jnp.where(im_ref[0] != 0, pred, 0.0).astype(out_ref.dtype)


# --------------------------------- wrapper ------------------------------------

def ts_interpolation_forward(value, time_steps, mask, interp_mask, P):
    """value (B,L,D), time_steps (B,L), mask (B,L,D), interp_mask (B,L,D) -> (B,L,D)."""
    B, L, D = value.shape
    E = P['te_w'].shape[1]
    H = P['W1'].shape[0]
    Q = P['cls_query'].shape[0]
    inv_sqrt_e = 1.0 / math.sqrt(E)

    # ---- batch-independent parameter glue (tiny, done once per call) ----
    # projected cls-query time embeddings (Q, E)
    raw_q = P['cls_query'] * P['te_w'] + P['te_b']
    q_emb = jnp.concatenate([raw_q[:, :1], jnp.sin(raw_q[:, 1:])], axis=1)
    qproj = q_emb @ P['Wq'].T + P['bq']
    # fold the key projection Linear(E,E) (and 1/sqrt(E)) into the query side
    wqk = (qproj @ P['Wk']) * inv_sqrt_e                              # (Q, E)
    bqk = (qproj @ P['bk']).reshape(Q, 1) * inv_sqrt_e                # (Q, 1)
    # collapse mTAN output Linear(1,H) + query-attention dot into two scalars
    qa_vec = P['qa'].reshape(H)
    c1 = jnp.sum(P['Wo'].reshape(H) * qa_vec).reshape(1, 1)
    c2 = jnp.sum(P['bo'].reshape(H) * qa_vec).reshape(1, 1)

    consts = [
        P['te_w'].reshape(E, 1), P['te_b'].reshape(E, 1),
        wqk, bqk,
        P['Wo'].reshape(H, 1), P['bo'].reshape(H, 1), c1, c2,
        P['W1'], P['b1'].reshape(H, 1), P['g1'].reshape(H, 1), P['be1'].reshape(H, 1),
        P['W2'], P['b2'].reshape(H, 1), P['g2'].reshape(H, 1), P['be2'].reshape(H, 1),
        P['W3'].reshape(H, 1), P['b3'].reshape(1, 1),
    ]

    # timestamps read once per batch (free metadata reshape; no D-fold duplication)
    tt3 = time_steps.reshape(B, 1, L)

    bld_spec = pl.BlockSpec((1, L, D), lambda b: (b, 0, 0))
    const_specs = [pl.BlockSpec(c.shape, lambda b: (0, 0)) for c in consts]  # all 2-D

    predictions = pl.pallas_call(
        _ts_interp_kernel,
        out_shape=jax.ShapeDtypeStruct((B, L, D), value.dtype),
        grid_spec=pltpu.PrefetchScalarGridSpec(
            num_scalar_prefetch=0,
            grid=(B,),
            in_specs=[bld_spec,
                      pl.BlockSpec((1, 1, L), lambda b: (b, 0, 0)),
                      bld_spec, bld_spec] + const_specs,
            out_specs=bld_spec,
        ),
        compiler_params=pltpu.CompilerParams(dimension_semantics=("parallel",)),
    )(value, tt3, mask, interp_mask, *consts)
    return predictions


# ------------------------------ pure-JAX reference -----------------------------

def reference_forward(value, time_steps, mask, interp_mask, P):
    B, L, D = value.shape
    N = B * D
    E = P['te_w'].shape[1]
    H = P['W1'].shape[0]
    x = jnp.transpose(value, (0, 2, 1)).reshape(N, L)
    m = jnp.transpose(mask, (0, 2, 1)).reshape(N, L)
    tt = jnp.broadcast_to(time_steps[:, None, :], (B, D, L)).reshape(N, L)

    def time_embed(t):  # (..., 1)
        raw = t * P['te_w'].reshape(E) + P['te_b'].reshape(E)
        return jnp.concatenate([raw[..., :1], jnp.sin(raw[..., 1:])], axis=-1)

    key_emb = time_embed(tt[..., None])                    # (N, L, E)
    q_emb = time_embed(P['cls_query'])                     # (Q, E)
    qproj = q_emb @ P['Wq'].T + P['bq']
    k = key_emb @ P['Wk'].T + P['bk']
    scores = jnp.einsum('qe,nle->nql', qproj, k) / math.sqrt(E)
    scores = jnp.where(m[:, None, :] == 0.0, -1e9, scores)
    p = jax.nn.softmax(scores, axis=-1)
    xq = jnp.einsum('nql,nl->nq', p, x)
    mtan = xq[..., None] * P['Wo'].reshape(H) + P['bo']
    aw = jax.nn.softmax(jnp.einsum('h,nqh->nq', P['qa'].reshape(H), mtan), axis=-1)
    latent = jnp.einsum('nq,nqh->nh', aw, mtan)

    def ln(z, g, b):
        mu = jnp.mean(z, -1, keepdims=True)
        var = jnp.mean((z - mu) ** 2, -1, keepdims=True)
        return (z - mu) / jnp.sqrt(var + 1e-5) * g + b

    h = jax.nn.gelu(ln(latent @ P['W1'].T + P['b1'], P['g1'], P['be1']), approximate=False)
    h = jax.nn.gelu(ln(h @ P['W2'].T + P['b2'], P['g2'], P['be2']), approximate=False)
    pred = h @ P['W3'].T + P['b3']                         # (N, 1)
    pred_bd = pred.reshape(B, D)
    return jnp.where(interp_mask != 0.0, pred_bd[:, None, :], 0.0)


# ----------------------------------- main --------------------------------------

if __name__ == "__main__":
    jax.config.update("jax_default_matmul_precision", "highest")

    B, L, D = 2, 8, 4          # batch, seq length, variables
    H = 32                     # config.hid_dim
    E = 32                     # embed_time of the learned time embedding
    Q = 8                      # number of cls_query reference time points

    root = jax.random.PRNGKey(0)
    ks = jax.random.split(root, 32)

    def rnd(i, shape, scale=0.2):
        return (scale * jax.random.normal(ks[i], shape)).astype(jnp.float32)

    # deterministic synthetic parameters (shapes follow the torch module layout)
    P = {
        'te_w': rnd(0, (1, E), 1.0),        # packed [linear(1,1).w ; periodic(1,E-1).w]
        'te_b': rnd(1, (1, E), 0.5),        # packed biases
        'cls_query': jnp.linspace(0.0, 1.0, Q, dtype=jnp.float32).reshape(Q, 1),
        'Wq': rnd(2, (E, E)), 'bq': rnd(3, (E,)),        # time_att.linears[0]
        'Wk': rnd(4, (E, E)), 'bk': rnd(5, (E,)),        # time_att.linears[1]
        'Wo': rnd(6, (H, 1)), 'bo': rnd(7, (H,)),        # time_att.linears[2]
        'qa': rnd(8, (1, 1, H)),                         # query_attention parameter
        'W1': rnd(9, (H, H)), 'b1': rnd(10, (H,)),
        'g1': jnp.ones((H,), jnp.float32), 'be1': jnp.zeros((H,), jnp.float32),
        'W2': rnd(11, (H, H)), 'b2': rnd(12, (H,)),
        'g2': jnp.ones((H,), jnp.float32), 'be2': jnp.zeros((H,), jnp.float32),
        'W3': rnd(13, (1, H)), 'b3': rnd(14, (1,)),
    }

    value = jax.random.normal(ks[20], (B, L, D), jnp.float32)
    time_steps = jnp.sort(jax.random.uniform(ks[21], (B, L), jnp.float32), axis=1)
    mask = (jax.random.uniform(ks[22], (B, L, D)) > 0.3).astype(jnp.float32)
    interp_mask = (jax.random.uniform(ks[23], (B, L, D)) > 0.5).astype(jnp.float32)

    out = jax.block_until_ready(
        ts_interpolation_forward(value, time_steps, mask, interp_mask, P))
    ref = jax.block_until_ready(
        reference_forward(value, time_steps, mask, interp_mask, P))

    # tolerance accounts for the A&S erf polynomial and the EUP approx reciprocal
    np.testing.assert_allclose(np.asarray(out), np.asarray(ref), rtol=2e-3, atol=1e-3)
    print("KERNEL_OK")
</pallas_src>

<mosaic_0001>
module attributes {stable_mosaic.version = 11 : i64} {
  func.func @_ts_interp_kernel(%arg0: i32, %arg1: memref<1x8x4xf32, #tpu.memory_space<vmem>>, %arg2: memref<1x1x8xf32, #tpu.memory_space<vmem>>, %arg3: memref<1x8x4xf32, #tpu.memory_space<vmem>>, %arg4: memref<1x8x4xf32, #tpu.memory_space<vmem>>, %arg5: memref<32x1xf32, #tpu.memory_space<vmem>>, %arg6: memref<32x1xf32, #tpu.memory_space<vmem>>, %arg7: memref<8x32xf32, #tpu.memory_space<vmem>>, %arg8: memref<8x1xf32, #tpu.memory_space<vmem>>, %arg9: memref<32x1xf32, #tpu.memory_space<vmem>>, %arg10: memref<32x1xf32, #tpu.memory_space<vmem>>, %arg11: memref<1x1xf32, #tpu.memory_space<vmem>>, %arg12: memref<1x1xf32, #tpu.memory_space<vmem>>, %arg13: memref<32x32xf32, #tpu.memory_space<vmem>>, %arg14: memref<32x1xf32, #tpu.memory_space<vmem>>, %arg15: memref<32x1xf32, #tpu.memory_space<vmem>>, %arg16: memref<32x1xf32, #tpu.memory_space<vmem>>, %arg17: memref<32x32xf32, #tpu.memory_space<vmem>>, %arg18: memref<32x1xf32, #tpu.memory_space<vmem>>, %arg19: memref<32x1xf32, #tpu.memory_space<vmem>>, %arg20: memref<32x1xf32, #tpu.memory_space<vmem>>, %arg21: memref<32x1xf32, #tpu.memory_space<vmem>>, %arg22: memref<1x1xf32, #tpu.memory_space<vmem>>, %arg23: memref<1x8x4xf32, #tpu.memory_space<vmem>>) attributes {dimension_semantics = [#tpu.dimension_semantics<parallel>], iteration_bounds = array<i64: 2>, scalar_prefetch = 0 : i64, scratch_operands = 0 : i64, tpu.core_type = #tpu.core_type<tc>, window_params = [{transform_indices = @transform_0, window_bounds = array<i64: 1, 8, 4>}, {transform_indices = @transform_1, window_bounds = array<i64: 1, 1, 8>}, {transform_indices = @transform_2, window_bounds = array<i64: 1, 8, 4>}, {transform_indices = @transform_3, window_bounds = array<i64: 1, 8, 4>}, {pipeline_mode = #tpu.pipeline_mode<synchronous>, transform_indices = @transform_4, window_bounds = array<i64: 32, 1>}, {pipeline_mode = #tpu.pipeline_mode<synchronous>, transform_indices = @transform_5, window_bounds = array<i64: 32, 1>}, {pipeline_mode = #tpu.pipeline_mode<synchronous>, transform_indices = @transform_6, window_bounds = array<i64: 8, 32>}, {pipeline_mode = #tpu.pipeline_mode<synchronous>, transform_indices = @transform_7, window_bounds = array<i64: 8, 1>}, {pipeline_mode = #tpu.pipeline_mode<synchronous>, transform_indices = @transform_8, window_bounds = array<i64: 32, 1>}, {pipeline_mode = #tpu.pipeline_mode<synchronous>, transform_indices = @transform_9, window_bounds = array<i64: 32, 1>}, {pipeline_mode = #tpu.pipeline_mode<synchronous>, transform_indices = @transform_10, window_bounds = array<i64: 1, 1>}, {pipeline_mode = #tpu.pipeline_mode<synchronous>, transform_indices = @transform_11, window_bounds = array<i64: 1, 1>}, {pipeline_mode = #tpu.pipeline_mode<synchronous>, transform_indices = @transform_12, window_bounds = array<i64: 32, 32>}, {pipeline_mode = #tpu.pipeline_mode<synchronous>, transform_indices = @transform_13, window_bounds = array<i64: 32, 1>}, {pipeline_mode = #tpu.pipeline_mode<synchronous>, transform_indices = @transform_14, window_bounds = array<i64: 32, 1>}, {pipeline_mode = #tpu.pipeline_mode<synchronous>, transform_indices = @transform_15, window_bounds = array<i64: 32, 1>}, {pipeline_mode = #tpu.pipeline_mode<synchronous>, transform_indices = @transform_16, window_bounds = array<i64: 32, 32>}, {pipeline_mode = #tpu.pipeline_mode<synchronous>, transform_indices = @transform_17, window_bounds = array<i64: 32, 1>}, {pipeline_mode = #tpu.pipeline_mode<synchronous>, transform_indices = @transform_18, window_bounds = array<i64: 32, 1>}, {pipeline_mode = #tpu.pipeline_mode<synchronous>, transform_indices = @transform_19, window_bounds = array<i64: 32, 1>}, {pipeline_mode = #tpu.pipeline_mode<synchronous>, transform_indices = @transform_20, window_bounds = array<i64: 32, 1>}, {pipeline_mode = #tpu.pipeline_mode<synchronous>, transform_indices = @transform_21, window_bounds = array<i64: 1, 1>}, {transform_indices = @transform_22, window_bounds = array<i64: 1, 8, 4>}]} {
    %c0 = arith.constant 0 : index
    %c0_0 = arith.constant 0 : index
    %c0_1 = arith.constant 0 : index
    %0 = vector.load %arg1[%c0, %c0_0, %c0_1] : memref<1x8x4xf32, #tpu.memory_space<vmem>>, vector<1x8x4xf32>
    %1 = vector.shape_cast %0 : vector<1x8x4xf32> to vector<8x4xf32>
    %c0_2 = arith.constant 0 : index
    %c0_3 = arith.constant 0 : index
    %c0_4 = arith.constant 0 : index
    %2 = vector.load %arg3[%c0_2, %c0_3, %c0_4] : memref<1x8x4xf32, #tpu.memory_space<vmem>>, vector<1x8x4xf32>
    %3 = vector.shape_cast %2 : vector<1x8x4xf32> to vector<8x4xf32>
    %c0_5 = arith.constant 0 : index
    %c0_6 = arith.constant 0 : index
    %c0_7 = arith.constant 0 : index
    %4 = vector.load %arg2[%c0_5, %c0_6, %c0_7] : memref<1x1x8xf32, #tpu.memory_space<vmem>>, vector<1x1x8xf32>
    %5 = vector.shape_cast %4 : vector<1x1x8xf32> to vector<1x8xf32>
    %c0_8 = arith.constant 0 : index
    %c0_9 = arith.constant 0 : index
    %6 = vector.load %arg5[%c0_8, %c0_9] : memref<32x1xf32, #tpu.memory_space<vmem>>, vector<32x1xf32>
    %c0_10 = arith.constant 0 : index
    %c0_11 = arith.constant 0 : index
    %7 = vector.load %arg6[%c0_10, %c0_11] : memref<32x1xf32, #tpu.memory_space<vmem>>, vector<32x1xf32>
    %8 = vector.broadcast %6 : vector<32x1xf32> to vector<32x8xf32>
    %9 = vector.broadcast %5 : vector<1x8xf32> to vector<32x8xf32>
    %10 = arith.mulf %8, %9 : vector<32x8xf32>
    %11 = vector.broadcast %7 : vector<32x1xf32> to vector<32x8xf32>
    %12 = arith.addf %10, %11 : vector<32x8xf32>
    %13 = tpu.iota {dimensions = array<i32: 0>} : vector<32x8xi32>
    %c0_i32 = arith.constant 0 : i32
    %14 = vector.broadcast %c0_i32 : i32 to vector<32x8xi32>
    %15 = arith.cmpi eq, %13, %14 : vector<32x8xi32>
    %16 = math.sin %12 : vector<32x8xf32>
    %17 = arith.select %15, %12, %16 : vector<32x8xi1>, vector<32x8xf32>
    %c0_12 = arith.constant 0 : index
    %c0_13 = arith.constant 0 : index
    %18 = vector.load %arg7[%c0_12, %c0_13] : memref<8x32xf32, #tpu.memory_space<vmem>>, vector<8x32xf32>
    %cst = arith.constant dense<0.000000e+00> : vector<8x8xf32>
    %19 = tpu.matmul %18, %17, %cst {dimension_numbers = #tpu.dot_dimension_numbers<[1], [0], [0], [1], [0, 0, 1, 1], [], []>, precision = #tpu.contract_precision<fp32>} : vector<8x32xf32>, vector<32x8xf32>, vector<8x8xf32> -> vector<8x8xf32>
    %c0_14 = arith.constant 0 : index
    %c0_15 = arith.constant 0 : index
    %20 = vector.load %arg8[%c0_14, %c0_15] : memref<8x1xf32, #tpu.memory_space<vmem>>, vector<8x1xf32>
    %21 = vector.broadcast %20 : vector<8x1xf32> to vector<8x8xf32>
    %22 = arith.addf %19, %21 : vector<8x8xf32>
    %23 = vector.shape_cast %3 : vector<8x4xf32> to vector<1x8x4xf32>
    %cst_16 = arith.constant 0.000000e+00 : f32
    %24 = vector.broadcast %cst_16 : f32 to vector<1x8x4xf32>
    %25 = arith.cmpf oeq, %23, %24 : vector<1x8x4xf32>
    %26 = vector.shape_cast %22 : vector<8x8xf32> to vector<8x8x1xf32>
    %cst_17 = arith.constant -1.000000e+09 : f32
    %27 = vector.shape_cast %25 : vector<1x8x4xi1> to vector<1x8x4xi1>
    %28 = vector.broadcast %27 : vector<1x8x4xi1> to vector<8x8x4xi1>
    %29 = vector.broadcast %cst_17 : f32 to vector<8x8x4xf32>
    %30 = vector.shape_cast %26 : vector<8x8x1xf32> to vector<8x8x1xf32>
    %31 = vector.broadcast %30 : vector<8x8x1xf32> to vector<8x8x4xf32>
    %32 = arith.select %28, %29, %31 : vector<8x8x4xi1>, vector<8x8x4xf32>
    %cst_18 = arith.constant dense<0xFF800000> : vector<8x4xf32>
    %33 = vector.multi_reduction <maximumf>, %32, %cst_18 [1] : vector<8x8x4xf32> to vector<8x4xf32>
    %34 = vector.shape_cast %33 : vector<8x4xf32> to vector<8x1x4xf32>
    %35 = vector.broadcast %34 : vector<8x1x4xf32> to vector<8x8x4xf32>
    %36 = arith.subf %32, %35 : vector<8x8x4xf32>
    %37 = math.exp %36 : vector<8x8x4xf32>
    %cst_19 = arith.constant dense<0.000000e+00> : vector<8x4xf32>
    %38 = vector.multi_reduction <add>, %37, %cst_19 [1] : vector<8x8x4xf32> to vector<8x4xf32>
    %39 = vector.shape_cast %38 : vector<8x4xf32> to vector<8x1x4xf32>
    %40 = tpu.reciprocal %39 {approx = true} : vector<8x1x4xf32> -> vector<8x1x4xf32>
    %41 = vector.broadcast %40 : vector<8x1x4xf32> to vector<8x8x4xf32>
    %42 = arith.mulf %37, %41 : vector<8x8x4xf32>
    %43 = vector.shape_cast %1 : vector<8x4xf32> to vector<1x8x4xf32>
    %44 = vector.broadcast %43 : vector<1x8x4xf32> to vector<8x8x4xf32>
    %45 = arith.mulf %42, %44 : vector<8x8x4xf32>
    %cst_20 = arith.constant dense<0.000000e+00> : vector<8x4xf32>
    %46 = vector.multi_reduction <add>, %45, %cst_20 [1] : vector<8x8x4xf32> to vector<8x4xf32>
    %c0_21 = arith.constant 0 : index
    %c0_22 = arith.constant 0 : index
    %47 = vector.load %arg11[%c0_21, %c0_22] : memref<1x1xf32, #tpu.memory_space<vmem>>, vector<1x1xf32>
    %48 = vector.broadcast %47 : vector<1x1xf32> to vector<8x4xf32>
    %49 = arith.mulf %46, %48 : vector<8x4xf32>
    %c0_23 = arith.constant 0 : index
    %c0_24 = arith.constant 0 : index
    %50 = vector.load %arg12[%c0_23, %c0_24] : memref<1x1xf32, #tpu.memory_space<vmem>>, vector<1x1xf32>
    %51 = vector.broadcast %50 : vector<1x1xf32> to vector<8x4xf32>
    %52 = arith.addf %49, %51 : vector<8x4xf32>
    %cst_25 = arith.constant dense<0xFF800000> : vector<4xf32>
    %53 = vector.multi_reduction <maximumf>, %52, %cst_25 [0] : vector<8x4xf32> to vector<4xf32>
    %54 = vector.shape_cast %53 : vector<4xf32> to vector<1x4xf32>
    %55 = vector.broadcast %54 : vector<1x4xf32> to vector<8x4xf32>
    %56 = arith.subf %52, %55 : vector<8x4xf32>
    %57 = math.exp %56 : vector<8x4xf32>
    %cst_26 = arith.constant dense<0.000000e+00> : vector<4xf32>
    %58 = vector.multi_reduction <add>, %57, %cst_26 [0] : vector<8x4xf32> to vector<4xf32>
    %59 = vector.shape_cast %58 : vector<4xf32> to vector<1x4xf32>
    %60 = tpu.reciprocal %59 {approx = true} : vector<1x4xf32> -> vector<1x4xf32>
    %61 = vector.broadcast %60 : vector<1x4xf32> to vector<8x4xf32>
    %62 = arith.mulf %57, %61 : vector<8x4xf32>
    %63 = arith.mulf %62, %46 : vector<8x4xf32>
    %cst_27 = arith.constant dense<0.000000e+00> : vector<4xf32>
    %64 = vector.multi_reduction <add>, %63, %cst_27 [0] : vector<8x4xf32> to vector<4xf32>
    %65 = vector.shape_cast %64 : vector<4xf32> to vector<1x4xf32>
    %c0_28 = arith.constant 0 : index
    %c0_29 = arith.constant 0 : index
    %66 = vector.load %arg9[%c0_28, %c0_29] : memref<32x1xf32, #tpu.memory_space<vmem>>, vector<32x1xf32>
    %67 = vector.broadcast %66 : vector<32x1xf32> to vector<32x4xf32>
    %68 = vector.broadcast %65 : vector<1x4xf32> to vector<32x4xf32>
    %69 = arith.mulf %67, %68 : vector<32x4xf32>
    %c0_30 = arith.constant 0 : index
    %c0_31 = arith.constant 0 : index
    %70 = vector.load %arg10[%c0_30, %c0_31] : memref<32x1xf32, #tpu.memory_space<vmem>>, vector<32x1xf32>
    %71 = vector.broadcast %70 : vector<32x1xf32> to vector<32x4xf32>
    %72 = arith.addf %69, %71 : vector<32x4xf32>
    %c0_32 = arith.constant 0 : index
    %c0_33 = arith.constant 0 : index
    %73 = vector.load %arg13[%c0_32, %c0_33] : memref<32x32xf32, #tpu.memory_space<vmem>>, vector<32x32xf32>
    %cst_34 = arith.constant dense<0.000000e+00> : vector<32x4xf32>
    %74 = tpu.matmul %73, %72, %cst_34 {dimension_numbers = #tpu.dot_dimension_numbers<[1], [0], [0], [1], [0, 0, 1, 1], [], []>, precision = #tpu.contract_precision<fp32>} : vector<32x32xf32>, vector<32x4xf32>, vector<32x4xf32> -> vector<32x4xf32>
    %c0_35 = arith.constant 0 : index
    %c0_36 = arith.constant 0 : index
    %75 = vector.load %arg14[%c0_35, %c0_36] : memref<32x1xf32, #tpu.memory_space<vmem>>, vector<32x1xf32>
    %76 = vector.broadcast %75 : vector<32x1xf32> to vector<32x4xf32>
    %77 = arith.addf %74, %76 : vector<32x4xf32>
    %c0_37 = arith.constant 0 : index
    %c0_38 = arith.constant 0 : index
    %78 = vector.load %arg15[%c0_37, %c0_38] : memref<32x1xf32, #tpu.memory_space<vmem>>, vector<32x1xf32>
    %c0_39 = arith.constant 0 : index
    %c0_40 = arith.constant 0 : index
    %79 = vector.load %arg16[%c0_39, %c0_40] : memref<32x1xf32, #tpu.memory_space<vmem>>, vector<32x1xf32>
    %cst_41 = arith.constant dense<0.000000e+00> : vector<4xf32>
    %80 = vector.multi_reduction <add>, %77, %cst_41 [0] : vector<32x4xf32> to vector<4xf32>
    %81 = vector.shape_cast %80 : vector<4xf32> to vector<1x4xf32>
    %cst_42 = arith.constant 3.200000e+01 : f32
    %82 = vector.broadcast %cst_42 : f32 to vector<1x4xf32>
    %83 = arith.divf %81, %82 : vector<1x4xf32>
    %84 = vector.broadcast %83 : vector<1x4xf32> to vector<32x4xf32>
    %85 = arith.subf %77, %84 : vector<32x4xf32>
    %86 = arith.mulf %85, %85 : vector<32x4xf32>
    %cst_43 = arith.constant dense<0.000000e+00> : vector<4xf32>
    %87 = vector.multi_reduction <add>, %86, %cst_43 [0] : vector<32x4xf32> to vector<4xf32>
    %88 = vector.shape_cast %87 : vector<4xf32> to vector<1x4xf32>
    %cst_44 = arith.constant 3.200000e+01 : f32
    %89 = vector.broadcast %cst_44 : f32 to vector<1x4xf32>
    %90 = arith.divf %88, %89 : vector<1x4xf32>
    %91 = vector.broadcast %83 : vector<1x4xf32> to vector<32x4xf32>
    %92 = arith.subf %77, %91 : vector<32x4xf32>
    %cst_45 = arith.constant 9.99999974E-6 : f32
    %93 = vector.broadcast %cst_45 : f32 to vector<1x4xf32>
    %94 = arith.addf %90, %93 : vector<1x4xf32>
    %95 = math.rsqrt %94 : vector<1x4xf32>
    %96 = vector.broadcast %95 : vector<1x4xf32> to vector<32x4xf32>
    %97 = arith.mulf %92, %96 : vector<32x4xf32>
    %98 = vector.broadcast %78 : vector<32x1xf32> to vector<32x4xf32>
    %99 = arith.mulf %97, %98 : vector<32x4xf32>
    %100 = vector.broadcast %79 : vector<32x1xf32> to vector<32x4xf32>
    %101 = arith.addf %99, %100 : vector<32x4xf32>
    %cst_46 = arith.constant 5.000000e-01 : f32
    %102 = vector.broadcast %cst_46 : f32 to vector<32x4xf32>
    %103 = arith.mulf %102, %101 : vector<32x4xf32>
    %cst_47 = arith.constant 0.707106769 : f32
    %104 = vector.broadcast %cst_47 : f32 to vector<32x4xf32>
    %105 = arith.mulf %101, %104 : vector<32x4xf32>
    %cst_48 = arith.constant 0.000000e+00 : f32
    %106 = vector.broadcast %cst_48 : f32 to vector<32x4xf32>
    %107 = arith.cmpf oge, %105, %106 : vector<32x4xf32>
    %cst_49 = arith.constant 1.000000e+00 : f32
    %cst_50 = arith.constant -1.000000e+00 : f32
    %108 = vector.broadcast %cst_49 : f32 to vector<32x4xf32>
    %109 = vector.broadcast %cst_50 : f32 to vector<32x4xf32>
    %110 = arith.select %107, %108, %109 : vector<32x4xi1>, vector<32x4xf32>
    %111 = math.absf %105 : vector<32x4xf32>
    %cst_51 = arith.constant 0.327591091 : f32
    %112 = vector.broadcast %cst_51 : f32 to vector<32x4xf32>
    %113 = arith.mulf %112, %111 : vector<32x4xf32>
    %cst_52 = arith.constant 1.000000e+00 : f32
    %114 = vector.broadcast %cst_52 : f32 to vector<32x4xf32>
    %115 = arith.addf %114, %113 : vector<32x4xf32>
    %cst_53 = arith.constant 1.000000e+00 : f32
    %116 = vector.broadcast %cst_53 : f32 to vector<32x4xf32>
    %117 = arith.divf %116, %115 : vector<32x4xf32>
    %cst_54 = arith.constant 1.06140542 : f32
    %118 = vector.broadcast %cst_54 : f32 to vector<32x4xf32>
    %119 = arith.mulf %118, %117 : vector<32x4xf32>
    %cst_55 = arith.constant -1.45315206 : f32
    %120 = vector.broadcast %cst_55 : f32 to vector<32x4xf32>
    %121 = arith.addf %119, %120 : vector<32x4xf32>
    %122 = arith.mulf %121, %117 : vector<32x4xf32>
    %cst_56 = arith.constant 1.42141378 : f32
    %123 = vector.broadcast %cst_56 : f32 to vector<32x4xf32>
    %124 = arith.addf %122, %123 : vector<32x4xf32>
    %125 = arith.mulf %124, %117 : vector<32x4xf32>
    %cst_57 = arith.constant -0.284496725 : f32
    %126 = vector.broadcast %cst_57 : f32 to vector<32x4xf32>
    %127 = arith.addf %125, %126 : vector<32x4xf32>
    %128 = arith.mulf %127, %117 : vector<32x4xf32>
    %cst_58 = arith.constant 0.254829586 : f32
    %129 = vector.broadcast %cst_58 : f32 to vector<32x4xf32>
    %130 = arith.addf %128, %129 : vector<32x4xf32>
    %131 = arith.mulf %130, %117 : vector<32x4xf32>
    %cst_59 = arith.constant 0.000000e+00 : f32
    %132 = vector.broadcast %cst_59 : f32 to vector<32x4xf32>
    %133 = arith.subf %132, %111 : vector<32x4xf32>
    %134 = arith.mulf %133, %111 : vector<32x4xf32>
    %135 = math.exp %134 : vector<32x4xf32>
    %136 = arith.mulf %131, %135 : vector<32x4xf32>
    %cst_60 = arith.constant 1.000000e+00 : f32
    %137 = vector.broadcast %cst_60 : f32 to vector<32x4xf32>
    %138 = arith.subf %137, %136 : vector<32x4xf32>
    %139 = arith.mulf %110, %138 : vector<32x4xf32>
    %cst_61 = arith.constant 1.000000e+00 : f32
    %140 = vector.broadcast %cst_61 : f32 to vector<32x4xf32>
    %141 = arith.addf %140, %139 : vector<32x4xf32>
    %142 = arith.mulf %103, %141 : vector<32x4xf32>
    %c0_62 = arith.constant 0 : index
    %c0_63 = arith.constant 0 : index
    %143 = vector.load %arg17[%c0_62, %c0_63] : memref<32x32xf32, #tpu.memory_space<vmem>>, vector<32x32xf32>
    %cst_64 = arith.constant dense<0.000000e+00> : vector<32x4xf32>
    %144 = tpu.matmul %143, %142, %cst_64 {dimension_numbers = #tpu.dot_dimension_numbers<[1], [0], [0], [1], [0, 0, 1, 1], [], []>, precision = #tpu.contract_precision<fp32>} : vector<32x32xf32>, vector<32x4xf32>, vector<32x4xf32> -> vector<32x4xf32>
    %c0_65 = arith.constant 0 : index
    %c0_66 = arith.constant 0 : index
    %145 = vector.load %arg18[%c0_65, %c0_66] : memref<32x1xf32, #tpu.memory_space<vmem>>, vector<32x1xf32>
    %146 = vector.broadcast %145 : vector<32x1xf32> to vector<32x4xf32>
    %147 = arith.addf %144, %146 : vector<32x4xf32>
    %c0_67 = arith.constant 0 : index
    %c0_68 = arith.constant 0 : index
    %148 = vector.load %arg19[%c0_67, %c0_68] : memref<32x1xf32, #tpu.memory_space<vmem>>, vector<32x1xf32>
    %c0_69 = arith.constant 0 : index
    %c0_70 = arith.constant 0 : index
    %149 = vector.load %arg20[%c0_69, %c0_70] : memref<32x1xf32, #tpu.memory_space<vmem>>, vector<32x1xf32>
    %cst_71 = arith.constant dense<0.000000e+00> : vector<4xf32>
    %150 = vector.multi_reduction <add>, %147, %cst_71 [0] : vector<32x4xf32> to vector<4xf32>
    %151 = vector.shape_cast %150 : vector<4xf32> to vector<1x4xf32>
    %cst_72 = arith.constant 3.200000e+01 : f32
    %152 = vector.broadcast %cst_72 : f32 to vector<1x4xf32>
    %153 = arith.divf %151, %152 : vector<1x4xf32>
    %154 = vector.broadcast %153 : vector<1x4xf32> to vector<32x4xf32>
    %155 = arith.subf %147, %154 : vector<32x4xf32>
    %156 = arith.mulf %155, %155 : vector<32x4xf32>
    %cst_73 = arith.constant dense<0.000000e+00> : vector<4xf32>
    %157 = vector.multi_reduction <add>, %156, %cst_73 [0] : vector<32x4xf32> to vector<4xf32>
    %158 = vector.shape_cast %157 : vector<4xf32> to vector<1x4xf32>
    %cst_74 = arith.constant 3.200000e+01 : f32
    %159 = vector.broadcast %cst_74 : f32 to vector<1x4xf32>
    %160 = arith.divf %158, %159 : vector<1x4xf32>
    %161 = vector.broadcast %153 : vector<1x4xf32> to vector<32x4xf32>
    %162 = arith.subf %147, %161 : vector<32x4xf32>
    %cst_75 = arith.constant 9.99999974E-6 : f32
    %163 = vector.broadcast %cst_75 : f32 to vector<1x4xf32>
    %164 = arith.addf %160, %163 : vector<1x4xf32>
    %165 = math.rsqrt %164 : vector<1x4xf32>
    %166 = vector.broadcast %165 : vector<1x4xf32> to vector<32x4xf32>
    %167 = arith.mulf %162, %166 : vector<32x4xf32>
    %168 = vector.broadcast %148 : vector<32x1xf32> to vector<32x4xf32>
    %169 = arith.mulf %167, %168 : vector<32x4xf32>
    %170 = vector.broadcast %149 : vector<32x1xf32> to vector<32x4xf32>
    %171 = arith.addf %169, %170 : vector<32x4xf32>
    %cst_76 = arith.constant 5.000000e-01 : f32
    %172 = vector.broadcast %cst_76 : f32 to vector<32x4xf32>
    %173 = arith.mulf %172, %171 : vector<32x4xf32>
    %cst_77 = arith.constant 0.707106769 : f32
    %174 = vector.broadcast %cst_77 : f32 to vector<32x4xf32>
    %175 = arith.mulf %171, %174 : vector<32x4xf32>
    %cst_78 = arith.constant 0.000000e+00 : f32
    %176 = vector.broadcast %cst_78 : f32 to vector<32x4xf32>
    %177 = arith.cmpf oge, %175, %176 : vector<32x4xf32>
    %cst_79 = arith.constant 1.000000e+00 : f32
    %cst_80 = arith.constant -1.000000e+00 : f32
    %178 = vector.broadcast %cst_79 : f32 to vector<32x4xf32>
    %179 = vector.broadcast %cst_80 : f32 to vector<32x4xf32>
    %180 = arith.select %177, %178, %179 : vector<32x4xi1>, vector<32x4xf32>
    %181 = math.absf %175 : vector<32x4xf32>
    %cst_81 = arith.constant 0.327591091 : f32
    %182 = vector.broadcast %cst_81 : f32 to vector<32x4xf32>
    %183 = arith.mulf %182, %181 : vector<32x4xf32>
    %cst_82 = arith.constant 1.000000e+00 : f32
    %184 = vector.broadcast %cst_82 : f32 to vector<32x4xf32>
    %185 = arith.addf %184, %183 : vector<32x4xf32>
    %cst_83 = arith.constant 1.000000e+00 : f32
    %186 = vector.broadcast %cst_83 : f32 to vector<32x4xf32>
    %187 = arith.divf %186, %185 : vector<32x4xf32>
    %cst_84 = arith.constant 1.06140542 : f32
    %188 = vector.broadcast %cst_84 : f32 to vector<32x4xf32>
    %189 = arith.mulf %188, %187 : vector<32x4xf32>
    %cst_85 = arith.constant -1.45315206 : f32
    %190 = vector.broadcast %cst_85 : f32 to vector<32x4xf32>
    %191 = arith.addf %189, %190 : vector<32x4xf32>
    %192 = arith.mulf %191, %187 : vector<32x4xf32>
    %cst_86 = arith.constant 1.42141378 : f32
    %193 = vector.broadcast %cst_86 : f32 to vector<32x4xf32>
    %194 = arith.addf %192, %193 : vector<32x4xf32>
    %195 = arith.mulf %194, %187 : vector<32x4xf32>
    %cst_87 = arith.constant -0.284496725 : f32
    %196 = vector.broadcast %cst_87 : f32 to vector<32x4xf32>
    %197 = arith.addf %195, %196 : vector<32x4xf32>
    %198 = arith.mulf %197, %187 : vector<32x4xf32>
    %cst_88 = arith.constant 0.254829586 : f32
    %199 = vector.broadcast %cst_88 : f32 to vector<32x4xf32>
    %200 = arith.addf %198, %199 : vector<32x4xf32>
    %201 = arith.mulf %200, %187 : vector<32x4xf32>
    %cst_89 = arith.constant 0.000000e+00 : f32
    %202 = vector.broadcast %cst_89 : f32 to vector<32x4xf32>
    %203 = arith.subf %202, %181 : vector<32x4xf32>
    %204 = arith.mulf %203, %181 : vector<32x4xf32>
    %205 = math.exp %204 : vector<32x4xf32>
    %206 = arith.mulf %201, %205 : vector<32x4xf32>
    %cst_90 = arith.constant 1.000000e+00 : f32
    %207 = vector.broadcast %cst_90 : f32 to vector<32x4xf32>
    %208 = arith.subf %207, %206 : vector<32x4xf32>
    %209 = arith.mulf %180, %208 : vector<32x4xf32>
    %cst_91 = arith.constant 1.000000e+00 : f32
    %210 = vector.broadcast %cst_91 : f32 to vector<32x4xf32>
    %211 = arith.addf %210, %209 : vector<32x4xf32>
    %212 = arith.mulf %173, %211 : vector<32x4xf32>
    %c0_92 = arith.constant 0 : index
    %c0_93 = arith.constant 0 : index
    %213 = vector.load %arg21[%c0_92, %c0_93] : memref<32x1xf32, #tpu.memory_space<vmem>>, vector<32x1xf32>
    %214 = vector.broadcast %213 : vector<32x1xf32> to vector<32x4xf32>
    %215 = arith.mulf %214, %212 : vector<32x4xf32>
    %cst_94 = arith.constant dense<0.000000e+00> : vector<4xf32>
    %216 = vector.multi_reduction <add>, %215, %cst_94 [0] : vector<32x4xf32> to vector<4xf32>
    %217 = vector.shape_cast %216 : vector<4xf32> to vector<1x4xf32>
    %c0_95 = arith.constant 0 : index
    %c0_96 = arith.constant 0 : index
    %218 = vector.load %arg22[%c0_95, %c0_96] : memref<1x1xf32, #tpu.memory_space<vmem>>, vector<1x1xf32>
    %219 = vector.broadcast %218 : vector<1x1xf32> to vector<1x4xf32>
    %220 = arith.addf %217, %219 : vector<1x4xf32>
    %c0_97 = arith.constant 0 : index
    %c0_98 = arith.constant 0 : index
    %c0_99 = arith.constant 0 : index
    %221 = vector.load %arg4[%c0_97, %c0_98, %c0_99] : memref<1x8x4xf32, #tpu.memory_space<vmem>>, vector<1x8x4xf32>
    %222 = vector.shape_cast %221 : vector<1x8x4xf32> to vector<8x4xf32>
    %cst_100 = arith.constant 0.000000e+00 : f32
    %223 = vector.broadcast %cst_100 : f32 to vector<8x4xf32>
    %224 = arith.cmpf one, %222, %223 : vector<8x4xf32>
    %cst_101 = arith.constant 0.000000e+00 : f32
    %225 = vector.shape_cast %220 : vector<1x4xf32> to vector<1x4xf32>
    %226 = vector.broadcast %225 : vector<1x4xf32> to vector<8x4xf32>
    %227 = vector.broadcast %cst_101 : f32 to vector<8x4xf32>
    %228 = arith.select %224, %226, %227 : vector<8x4xi1>, vector<8x4xf32>
    %c0_102 = arith.constant 0 : index
    %c0_103 = arith.constant 0 : index
    %c0_104 = arith.constant 0 : index
    %229 = vector.load %arg23[%c0_102, %c0_103, %c0_104] : memref<1x8x4xf32, #tpu.memory_space<vmem>>, vector<1x8x4xf32>
    %230 = vector.shape_cast %229 : vector<1x8x4xf32> to vector<8x4xf32>
    %231 = vector.shape_cast %228 : vector<8x4xf32> to vector<1x8x4xf32>
    tpu.vector_store %arg23[%c0_102, %c0_103, %c0_104], %231 {strides = array<i32>} : memref<1x8x4xf32, #tpu.memory_space<vmem>>, vector<1x8x4xf32>,
    return
  }
  func.func @transform_0(%arg0: i32) -> (i32, i32, i32) {
    %c0_i32 = arith.constant 0 : i32
    %c0_i32_0 = arith.constant 0 : i32
    %c0_i32_1 = arith.constant 0 : i32
    return %arg0, %c0_i32, %c0_i32_0 : i32, i32, i32
  }
  func.func @transform_1(%arg0: i32) -> (i32, i32, i32) {
    %c0_i32 = arith.constant 0 : i32
    %c0_i32_0 = arith.constant 0 : i32
    %c0_i32_1 = arith.constant 0 : i32
    return %arg0, %c0_i32, %c0_i32_0 : i32, i32, i32
  }
  func.func @transform_2(%arg0: i32) -> (i32, i32, i32) {
    %c0_i32 = arith.constant 0 : i32
    %c0_i32_0 = arith.constant 0 : i32
    %c0_i32_1 = arith.constant 0 : i32
    return %arg0, %c0_i32, %c0_i32_0 : i32, i32, i32
  }
  func.func @transform_3(%arg0: i32) -> (i32, i32, i32) {
    %c0_i32 = arith.constant 0 : i32
    %c0_i32_0 = arith.constant 0 : i32
    %c0_i32_1 = arith.constant 0 : i32
    return %arg0, %c0_i32, %c0_i32_0 : i32, i32, i32
  }
  func.func @transform_4(%arg0: i32) -> (i32, i32) {
    %c0_i32 = arith.constant 0 : i32
    %c0_i32_0 = arith.constant 0 : i32
    %c0_i32_1 = arith.constant 0 : i32
    return %c0_i32, %c0_i32_0 : i32, i32
  }
  func.func @transform_5(%arg0: i32) -> (i32, i32) {
    %c0_i32 = arith.constant 0 : i32
    %c0_i32_0 = arith.constant 0 : i32
    %c0_i32_1 = arith.constant 0 : i32
    return %c0_i32, %c0_i32_0 : i32, i32
  }
  func.func @transform_6(%arg0: i32) -> (i32, i32) {
    %c0_i32 = arith.constant 0 : i32
    %c0_i32_0 = arith.constant 0 : i32
    %c0_i32_1 = arith.constant 0 : i32
    return %c0_i32, %c0_i32_0 : i32, i32
  }
  func.func @transform_7(%arg0: i32) -> (i32, i32) {
    %c0_i32 = arith.constant 0 : i32
    %c0_i32_0 = arith.constant 0 : i32
    %c0_i32_1 = arith.constant 0 : i32
    return %c0_i32, %c0_i32_0 : i32, i32
  }
  func.func @transform_8(%arg0: i32) -> (i32, i32) {
    %c0_i32 = arith.constant 0 : i32
    %c0_i32_0 = arith.constant 0 : i32
    %c0_i32_1 = arith.constant 0 : i32
    return %c0_i32, %c0_i32_0 : i32, i32
  }
  func.func @transform_9(%arg0: i32) -> (i32, i32) {
    %c0_i32 = arith.constant 0 : i32
    %c0_i32_0 = arith.constant 0 : i32
    %c0_i32_1 = arith.constant 0 : i32
    return %c0_i32, %c0_i32_0 : i32, i32
  }
  func.func @transform_10(%arg0: i32) -> (i32, i32) {
    %c0_i32 = arith.constant 0 : i32
    %c0_i32_0 = arith.constant 0 : i32
    %c0_i32_1 = arith.constant 0 : i32
    return %c0_i32, %c0_i32_0 : i32, i32
  }
  func.func @transform_11(%arg0: i32) -> (i32, i32) {
    %c0_i32 = arith.constant 0 : i32
    %c0_i32_0 = arith.constant 0 : i32
    %c0_i32_1 = arith.constant 0 : i32
    return %c0_i32, %c0_i32_0 : i32, i32
  }
  func.func @transform_12(%arg0: i32) -> (i32, i32) {
    %c0_i32 = arith.constant 0 : i32
    %c0_i32_0 = arith.constant 0 : i32
    %c0_i32_1 = arith.constant 0 : i32
    return %c0_i32, %c0_i32_0 : i32, i32
  }
  func.func @transform_13(%arg0: i32) -> (i32, i32) {
    %c0_i32 = arith.constant 0 : i32
    %c0_i32_0 = arith.constant 0 : i32
    %c0_i32_1 = arith.constant 0 : i32
    return %c0_i32, %c0_i32_0 : i32, i32
  }
  func.func @transform_14(%arg0: i32) -> (i32, i32) {
    %c0_i32 = arith.constant 0 : i32
    %c0_i32_0 = arith.constant 0 : i32
    %c0_i32_1 = arith.constant 0 : i32
    return %c0_i32, %c0_i32_0 : i32, i32
  }
  func.func @transform_15(%arg0: i32) -> (i32, i32) {
    %c0_i32 = arith.constant 0 : i32
    %c0_i32_0 = arith.constant 0 : i32
    %c0_i32_1 = arith.constant 0 : i32
    return %c0_i32, %c0_i32_0 : i32, i32
  }
  func.func @transform_16(%arg0: i32) -> (i32, i32) {
    %c0_i32 = arith.constant 0 : i32
    %c0_i32_0 = arith.constant 0 : i32
    %c0_i32_1 = arith.constant 0 : i32
    return %c0_i32, %c0_i32_0 : i32, i32
  }
  func.func @transform_17(%arg0: i32) -> (i32, i32) {
    %c0_i32 = arith.constant 0 : i32
    %c0_i32_0 = arith.constant 0 : i32
    %c0_i32_1 = arith.constant 0 : i32
    return %c0_i32, %c0_i32_0 : i32, i32
  }
  func.func @transform_18(%arg0: i32) -> (i32, i32) {
    %c0_i32 = arith.constant 0 : i32
    %c0_i32_0 = arith.constant 0 : i32
    %c0_i32_1 = arith.constant 0 : i32
    return %c0_i32, %c0_i32_0 : i32, i32
  }
  func.func @transform_19(%arg0: i32) -> (i32, i32) {
    %c0_i32 = arith.constant 0 : i32
    %c0_i32_0 = arith.constant 0 : i32
    %c0_i32_1 = arith.constant 0 : i32
    return %c0_i32, %c0_i32_0 : i32, i32
  }
  func.func @transform_20(%arg0: i32) -> (i32, i32) {
    %c0_i32 = arith.constant 0 : i32
    %c0_i32_0 = arith.constant 0 : i32
    %c0_i32_1 = arith.constant 0 : i32
    return %c0_i32, %c0_i32_0 : i32, i32
  }
  func.func @transform_21(%arg0: i32) -> (i32, i32) {
    %c0_i32 = arith.constant 0 : i32
    %c0_i32_0 = arith.constant 0 : i32
    %c0_i32_1 = arith.constant 0 : i32
    return %c0_i32, %c0_i32_0 : i32, i32
  }
  func.func @transform_22(%arg0: i32) -> (i32, i32, i32) {
    %c0_i32 = arith.constant 0 : i32
    %c0_i32_0 = arith.constant 0 : i32
    %c0_i32_1 = arith.constant 0 : i32
    return %arg0, %c0_i32, %c0_i32_0 : i32, i32, i32
  }
}

</mosaic_0001>

<bundles_post_ra>
// kernel: tpu_custom_call.1
= control target key start
LH: loop header
LB: loop body
LE: loop exit
PB: predicated region body
PF: predicated region fallthrough
CT: control target
= control target key end

     0   :  { %s3716_s23 = smov 0   ;;  %s4729_s0 = inlined_call_operand.vmem [shape: f32[2,8,4], index: 0, kind: input, shape index: {}]   ;;  %s4730_s1 = inlined_call_operand.vmem [shape: f32[2,1,8], index: 1, kind: input, shape index: {}]   ;;  %s4731_s2 = inlined_call_operand.vmem [shape: f32[2,8,4], index: 2, kind: input, shape index: {}]   ;;  %s4732_s3 = inlined_call_operand.vmem [shape: f32[2,8,4], index: 3, kind: input, shape index: {}]   ;;  %s4733_s4 = inlined_call_operand.vmem [shape: f32[32,1], index: 4, kind: input, shape index: {}]   ;;  %s4734_s5 = inlined_call_operand.vmem [shape: f32[32,1], index: 5, kind: input, shape index: {}]   ;;  %s4735_s6 = inlined_call_operand.vmem [shape: f32[8,32], index: 6, kind: input, shape index: {}]   ;;  %s4736_s7 = inlined_call_operand.vmem [shape: f32[8,1], index: 7, kind: input, shape index: {}]   ;;  %s4737_s8 = inlined_call_operand.vmem [shape: f32[32,1], index: 8, kind: input, shape index: {}]   ;;  %s4738_s9 = inlined_call_operand.vmem [shape: f32[32,1], index: 9, kind: input, shape index: {}]   ;;  %s4739_s10 = inlined_call_operand.<no memory space> [shape: f32[1,1], index: 10, kind: input, shape index: {}]   ;;  %s4740_s12 = inlined_call_operand.vmem [shape: f32[32,32], index: 12, kind: input, shape index: {}]   ;;  %s4741_s13 = inlined_call_operand.vmem [shape: f32[32,1], index: 13, kind: input, shape index: {}]   ;;  %s4742_s14 = inlined_call_operand.vmem [shape: f32[32,1], index: 14, kind: input, shape index: {}]   ;;  %s4743_s15 = inlined_call_operand.vmem [shape: f32[32,1], index: 15, kind: input, shape index: {}]   ;;  %s4744_s16 = inlined_call_operand.vmem [shape: f32[32,32], index: 16, kind: input, shape index: {}]   ;;  %s4745_s17 = inlined_call_operand.vmem [shape: f32[32,1], index: 17, kind: input, shape index: {}]   ;;  %s4746_s18 = inlined_call_operand.vmem [shape: f32[32,1], index: 18, kind: input, shape index: {}]   ;;  %s4747_s19 = inlined_call_operand.vmem [shape: f32[32,1], index: 19, kind: input, shape index: {}]   ;;  %s4748_s20 = inlined_call_operand.vmem [shape: f32[32,1], index: 20, kind: input, shape index: {}]   ;;  %s4749_s22 = inlined_call_operand.vmem [shape: f32[2,8,4], index: 22, kind: output, shape index: {}]   ;;  %s4750_s11 = inlined_call_operand.<no memory space> [shape: f32[1,1], index: 11, kind: input, shape index: {}]   ;;  %s4751_s21 = inlined_call_operand.<no memory space> [shape: f32[1,1], index: 21, kind: input, shape index: {}]  }
   0x1   :  { %4754 = sst [smem:[#allocation5_spill]] %s4729_s0  ;;  %v27_v0 = vstv %s4739_s10  ;;  %v29_v1 = vstv %s4750_s11  ;;  %v31_v2 = vstv %s4751_s21 }
   0x2   :  { %4755 = sst [smem:[#allocation6_spill]] %s4730_s1  ;;  %28 = vst [vmem:[#allocation2] sm:$0x1] %v27_v0 }
   0x3   :  { %4756 = sst [smem:[#allocation7_spill]] %s4731_s2  ;;  %30 = vst [vmem:[#allocation3] sm:$0x1] %v29_v1 }
   0x4   :  { %4757 = sst [smem:[#allocation8_spill]] %s4732_s3  ;;  %32 = vst [vmem:[#allocation4] sm:$0x1] %v31_v2 }
   0x5   :  { %4758 = sst [smem:[#allocation9_spill]] %s4733_s4 }
   0x6   :  { %4759 = sst [smem:[#allocation10_spill]] %s4734_s5 }
   0x7   :  { %4760 = sst [smem:[#allocation11_spill]] %s4735_s6 }
   0x8 LB: > { %s3435_s10 = sadd.s32 4294967295, %s3581_s23   ;;  %p3439_p0 = scmp.ge.s32.totalorder %s3581_s23, 1  ;;  %s3581_s23 = sphi %s3716_s23, %s38_s23  }
   0x9   : > { %p643_p1 = scmp.lt.s32.totalorder %s3581_s23, 3 }
   0xb   : > { %p644_p2 = pnand %p3439_p0, %p643_p1 }
   0xc   : > { %s4761_s1 = sld [smem:[#allocation10_spill]] (!%p644_p2)  ;;  %p714_p3 = scmp.lt.s32.totalorder (!%p644_p2), %s3435_s10, 1 }
   0xd   : > { %647 = sbr.rel (%p644_p2) target bundleno = 1427 (0x593), region = 108  ;;  %s4762_s6 = sld [smem:[#allocation9_spill]] (!%p644_p2) }
   0xe   : > { %s4763_s3 = sld [smem:[#allocation6_spill]] (!%p644_p2) }
   0xf   : > { %s4772_s29 = sld [smem:[#allocation11_spill]] (!%p644_p2) }
  0x10   : > { %s4773_s4 = sld [smem:[#allocation7_spill]] (!%p644_p2) }
  0x11   : > { %s4774_s26 = sld [smem:[#allocation5_spill]] (!%p644_p2) }
  0x12   : > { %v743_v3 = vld [vmem:[%s4761_s1 + $0x18] sm:$0xff]  ;;  %v3583_v5 = vmov 0   ;;  %v742_v6 = vld [vmem:[%s4761_s1 + $0x10] sm:$0xff]  ;;  %s4781_s10 = smov (!%p714_p3, %s3435_s10), 1  ;;  %v741_v10 = vld [vmem:[%s4761_s1 + $0x8] sm:$0xff] }
  0x13   : > { %v739_v4 = vld [vmem:[%s4762_s6 + $0x18] sm:$0xff]  ;;  %3476 = vset.pattern.permute.xlu1 %v3583_v5  ;;  %3475 = vset.pattern.permute.xlu0 %v3583_v5  ;;  %v738_v7 = vld [vmem:[%s4762_s6 + $0x10] sm:$0xff]  ;;  %v737_v8 = vld [vmem:[%s4762_s6 + $0x8] sm:$0xff]  ;;  %v3584_v39 = vmov 683565275   ;;  %s4241_s27 = sshll.u32 %s4781_s10, 3 }
  0x14   : > { %788 = vperm.xlu1 %3476, %v743_v3   ;;  %761 = vperm.xlu0 %3475, %v739_v4   ;;  %s720_s28 = scalar_lea.vmem %s4763_s3, %s4781_s10  ;;  %v736_v9 = vld [vmem:[%s4762_s6] sm:$0xff]  ;;  %v3585_v41 = vmov 2475754826   ;;  %v3586_v43 = vmov 2131351028   ;;  %s732_s10 = scalar_lea.vmem %s4749_s22, %s4241_s27 }
  0x15   : > { %3477 = vset.pattern.permute.xlu2 %v3583_v5  ;;  %v740_v11 = vld [vmem:[%s4761_s1] sm:$0xff]  ;;  %v3587_v45 = vmov 2102212464   ;;  %v3588_v50 = vmov 920167782  }
  0x16   : > { %783 = vperm.xlu2 %3477, %v742_v6   ;;  %v1429_v12 = vld [vmem:[%s4736_s7] sm:$0xff]  ;;  %v3589_v53 = vmov 1326507024   ;;  %s724_s0 = scalar_lea.vmem %s4773_s4, %s4241_s27  ;;  %s4779_s4 = sld [smem:[#allocation8_spill]] }
  0x17   : > { %v3760_v13 = vld [vmem:[%s720_s28] ss:$0 sm:$0xff]  ;;  %s717_s2 = scalar_lea.vmem %s4774_s26, %s4241_s27 }
  0x1c   : > { %756 = vperm.xlu0 %3475, %v738_v7   ;;  %751 = vperm.xlu1 %3476, %v737_v8  }
  0x1e   : > { %746 = vperm.xlu2 %3477, %v736_v9  }
  0x24   : > { %778 = vperm.xlu0 %3475, %v741_v10   ;;  %773 = vperm.xlu1 %3476, %v740_v11  }
  0x26   : > { %1432 = vperm.xlu2 %3477, %v1429_v12  }
  0x70   : > { %v784_v26 = vpop.permute.xlu2 %783 }
  0x86   : > { %v762_v14 = vpop.permute.xlu0 %761  ;;  %v789_v16 = vpop.permute.xlu1 %788 }
  0x87   : > { %v770_v15 = vmul.f32 %v3760_v13, %v762_v14 }
  0x89   : > { %v3763_v17 = vadd.f32 %v789_v16, %v770_v15 }
  0x8b   : > { %v1269_v18 = vand.u32 2147483647, %v3763_v17  ;;  %v1272_v19 = vand.u32 2139095040, %v3763_v17 }
  0x8d   : > { %v1273_v20 = vshrl.u32 %v1272_v19, 23  ;;  %v1276_v21 = vand.u32 8388607, %v1269_v18 }
  0x8e   : > { %v757_v22 = vpop.permute.xlu0 %756 }
  0x8f   : > { %v3453_v23 = vadd.s32 4294967169, %v1273_v20  ;;  %v1277_v24 = vor.u32 8388608, %v1276_v21  ;;  %v769_v25 = vmul.f32 %v3760_v13, %v757_v22 }
  0x91   : > { %v1279_v27 = vadd.s32 1, %v3453_v23  ;;  %v3770_v28 = vadd.f32 %v784_v26, %v769_v25  ;;  %v3772_v29 = vshll.u32 %v1277_v24, 8 }
  0x93   : > { %vm1280_vm0 = vcmp.gt.s32.totalorder %v1279_v27, 0  ;;  %v1114_v30 = vand.u32 2147483647, %v3770_v28  ;;  %v1117_v32 = vand.u32 2139095040, %v3770_v28  ;;  %v1318_v36 = vand.u32 65535, %v3772_v29 }
  0x94   : > { %v1281_v31 = vsel %vm1280_vm0, %v1279_v27, 0  ;;  %v1319_v12 = vshrl.u32 %v3772_v29, 16 }
  0x95   : > { %v1283_v33 = vand.u32 31, %v1281_v31  ;;  %v1282_v34 = vshrl.u32 %v1281_v31, 5  ;;  %v1118_v37 = vshrl.u32 %v1117_v32, 23  ;;  %v1121_v38 = vand.u32 8388607, %v1114_v30 }
  0x97   : > { %v1284_v35 = vsub.s32 32, %v1283_v33  ;;  %v1286_v40 = vshll.u32 %v3584_v39, %v1283_v33  ;;  %v1289_v42 = vshll.u32 %v3585_v41, %v1283_v33  ;;  %v1292_v44 = vshll.u32 %v3586_v43, %v1283_v33 }
  0x98   : > { %v1295_v46 = vshll.u32 %v3587_v45, %v1283_v33  ;;  %v1298_v51 = vshll.u32 %v3588_v50, %v1283_v33  ;;  %vm1301_vm1 = vcmp.lt.s32.totalorder %v1282_v34, 1  ;;  %vm1302_vm2 = vcmp.lt.s32.totalorder %v1282_v34, 2 }
  0x99   : > { %v1287_v47 = vshrl.u32 %v3585_v41, %v1284_v35  ;;  %v1290_v48 = vshrl.u32 %v3586_v43, %v1284_v35  ;;  %v1293_v49 = vshrl.u32 %v3587_v45, %v1284_v35  ;;  %v1296_v52 = vshrl.u32 %v3588_v50, %v1284_v35 }
  0x9a   : > { %v1299_v54 = vshrl.u32 %v3589_v53, %v1284_v35  ;;  %v3450_v58 = vadd.s32 4294967169, %v1118_v37  ;;  %v1285_v59 = vshrl.u32 %v3584_v39, %v1284_v35  ;;  %vm1304_vm3 = vcmp.lt.s32.totalorder %v1282_v34, 4 }
  0x9b   : > { %v1288_v55 = vor.u32 %v1287_v47, %v1286_v40  ;;  %v1291_v56 = vor.u32 %v1290_v48, %v1289_v42  ;;  %v1294_v57 = vor.u32 %v1293_v49, %v1292_v44  ;;  %v1297_v60 = vor.u32 %v1296_v52, %v1295_v46 }
  0x9c   : > { %v1300_v61 = vor.u32 %v1299_v54, %v1298_v51  ;;  %vm1303_vm4 = vcmp.lt.s32.totalorder %v1282_v34, 3  ;;  %v1122_v3 = vor.u32 8388608, %v1121_v38  ;;  %v1124_v4 = vadd.s32 1, %v3450_v58 }
  0x9d   : > { %v1306_v62 = vsel %vm1304_vm3, %v1294_v57, 2102212464  ;;  %v1309_v63 = vsel %vm1301_vm1, %v1288_v55, %v1291_v56  ;;  %v1313_v0 = vsel %vm1301_vm1, %v1291_v56, %v1294_v57  ;;  %v1310_v1 = vsel %vm1304_vm3, %v1297_v60, 920167782 }
  0x9e   : > { %v1314_v2 = vsel %vm1304_vm3, %v1300_v61, 1326507024  ;;  %v1305_v6 = vsel %vm1301_vm1, %v1285_v59, %v1288_v55  ;;  %v1307_v7 = vsel %vm1303_vm4, %v1291_v56, %v1306_v62  ;;  %v1311_v8 = vsel %vm1303_vm4, %v1294_v57, %v1310_v1 }
  0x9f   : > { %v1315_v9 = vsel %vm1303_vm4, %v1297_v60, %v1314_v2  ;;  %v1312_v10 = vsel %vm1302_vm2, %v1309_v63, %v1311_v8  ;;  %vm1125_vm5 = vcmp.gt.s32.totalorder %v1124_v4, 0  ;;  %v3797_v20 = vsel %vm1302_vm2, %v1305_v6, %v1307_v7  ;;  %v752_v7 = vpop.permute.xlu1 %751 }
  0xa0   : > { %v1316_v11 = vsel %vm1302_vm2, %v1313_v0, %v1315_v9  ;;  %v1342_v16 = vand.u32 65535, %v1312_v10  ;;  %v1343_v19 = vshrl.u32 %v1312_v10, 16  ;;  %v1126_v23 = vsel %vm1125_vm5, %v1124_v4, 0 }
  0xa1   : > { %v1320_v14 = vand.u32 65535, %v1316_v11  ;;  %v1321_v15 = vshrl.u32 %v1316_v11, 16  ;;  %v3799_v24 = vshll.u32 %v1122_v3, 8  ;;  %v1128_v47 = vand.u32 31, %v1126_v23 }
  0xa2   : > { %v1345_v27 = vmul.u32 %v1343_v19, %v1318_v36  ;;  %v1346_v31 = vmul.u32 %v1342_v16, %v1319_v12  ;;  %v1344_v35 = vmul.u32 %v1342_v16, %v1318_v36  ;;  %v1347_v37 = vmul.u32 %v1343_v19, %v1319_v12 }
  0xa3   : > { %v1323_v21 = vmul.u32 %v1321_v15, %v1318_v36  ;;  %v1324_v22 = vmul.u32 %v1320_v14, %v1319_v12  ;;  %v1322_v25 = vmul.u32 %v1320_v14, %v1318_v36  ;;  %v1325_v26 = vmul.u32 %v1321_v15, %v1319_v12 }
  0xa4   : > { %v1348_v42 = vshll.u32 %v1345_v27, 16  ;;  %v1349_v44 = vshrl.u32 %v1345_v27, 16  ;;  %v1350_v46 = vshll.u32 %v1346_v31, 16  ;;  %v1351_v49 = vshrl.u32 %v1346_v31, 16 }
  0xa5   : > { %v1326_v32 = vshll.u32 %v1323_v21, 16  ;;  %v1327_v33 = vshrl.u32 %v1323_v21, 16  ;;  %v1328_v38 = vshll.u32 %v1324_v22, 16  ;;  %v1329_v40 = vshrl.u32 %v1324_v22, 16 }
  0xa6   : > { %vm1352_vm7 = vc.u32 %v1344_v35, %v1348_v42  ;;  %v1354_v51 = vadd.s32 %v1348_v42, %v1344_v35  ;;  %v1129_v55 = vsub.s32 32, %v1128_v47  ;;  %v3804_v57 = vshrl.u32 %v1126_v23, 5 }
  0xa7   : > { %vm1330_vm6 = vc.u32 %v1322_v25, %v1326_v32  ;;  %v1332_v34 = vadd.s32 %v1326_v32, %v1322_v25  ;;  %v1353_v54 = vsel %vm1352_vm7, 1, %v3583_v5  ;;  %v1131_v61 = vshll.u32 %v3584_v39, %v1128_v47 }
  0xa8   : > { %v1331_v48 = vsel %vm1330_vm6, 1, %v3583_v5  ;;  %v1355_v56 = vadd.s32 %v1353_v54, %v1347_v37  ;;  %vm1356_vm9 = vc.u32 %v1354_v51, %v1350_v46  ;;  %v3807_v60 = vadd.s32 %v1354_v51, %v1350_v46 }
  0xa9   : > { %v1333_v52 = vadd.s32 %v1331_v48, %v1325_v26  ;;  %vm1334_vm8 = vc.u32 %v1332_v34, %v1328_v38  ;;  %v1357_v59 = vsel %vm1356_vm9, 1, %v3583_v5  ;;  %v1132_v63 = vshrl.u32 %v3585_v41, %v1129_v55  ;;  %v779_v38 = vpop.permute.xlu0 %778 }
  0xaa   : > { %v1335_v36 = vsel %vm1334_vm8, 1, %v3583_v5  ;;  %v1359_v62 = vadd.s32 %v1357_v59, %v1355_v56  ;;  %v1134_v0 = vshll.u32 %v3585_v41, %v1128_v47  ;;  %v1135_v1 = vshrl.u32 %v3586_v43, %v1129_v55 }
  0xab   : > { %v1337_v58 = vadd.s32 %v1335_v36, %v1333_v52  ;;  %v1137_v3 = vshll.u32 %v3586_v43, %v1128_v47  ;;  %v1138_v4 = vshrl.u32 %v3587_v45, %v1129_v55  ;;  %v1140_v6 = vshll.u32 %v3587_v45, %v1128_v47 }
  0xac   : > { %v1360_v8 = vadd.s32 %v1359_v62, %v1349_v44  ;;  %v3816_v9 = vor.u32 %v1132_v63, %v1131_v61  ;;  %v3818_v10 = vor.u32 %v1135_v1, %v1134_v0  ;;  %v1141_v11 = vshrl.u32 %v3588_v50, %v1129_v55 }
  0xad   : > { %v1338_v2 = vadd.s32 %v1337_v58, %v1327_v33  ;;  %v1139_v14 = vor.u32 %v1138_v4, %v1137_v3  ;;  %v1143_v15 = vshll.u32 %v3588_v50, %v1128_v47  ;;  %v1144_v16 = vshrl.u32 %v3589_v53, %v1129_v55 }
  0xae   : > { %v1361_v19 = vadd.s32 %v1360_v8, %v1351_v49  ;;  %v1142_v21 = vor.u32 %v1141_v11, %v1140_v6  ;;  %v768_v22 = vmul.f32 %v3760_v13, %v752_v7  ;;  %v1362_v23 = vmul.u32 %v3772_v29, %v3797_v20 }
  0xaf   : > { %v3821_v12 = vadd.s32 %v1338_v2, %v1329_v40  ;;  %v1145_v25 = vor.u32 %v1144_v16, %v1143_v15  ;;  %vm1146_vm11 = vcmp.lt.s32.totalorder %v3804_v57, 1  ;;  %vm1149_vm12 = vcmp.lt.s32.totalorder %v3804_v57, 4 }
  0xb0   : > { %v1365_v26 = vadd.s32 1, %v1361_v19  ;;  %v1154_v27 = vsel %vm1146_vm11, %v3816_v9, %v3818_v10  ;;  %v1163_v31 = vand.u32 65535, %v3799_v24  ;;  %vm1148_vm13 = vcmp.lt.s32.totalorder %v3804_v57, 3 }
  0xb1   : > { %vm1364_vm10 = vc.u32 %v3821_v12, %v3807_v60  ;;  %v1155_v29 = vsel %vm1149_vm12, %v1142_v21, 920167782  ;;  %v1158_v20 = vsel %vm1146_vm11, %v3818_v10, %v1139_v14  ;;  %v1159_v32 = vsel %vm1149_vm12, %v1145_v25, 1326507024 }
  0xb2   : > { %v1366_v33 = vsel %vm1364_vm10, %v1365_v26, %v1361_v19  ;;  %vm1147_vm14 = vcmp.lt.s32.totalorder %v3804_v57, 2  ;;  %v1156_v35 = vsel %vm1148_vm13, %v1139_v14, %v1155_v29  ;;  %v1160_v37 = vsel %vm1148_vm13, %v1142_v21, %v1159_v32 }
  0xb3   : > { %v1367_v40 = vadd.s32 %v1366_v33, %v1362_v23  ;;  %v1157_v42 = vsel %vm1147_vm14, %v1154_v27, %v1156_v35  ;;  %v1161_v44 = vsel %vm1147_vm14, %v1158_v20, %v1160_v37  ;;  %v1164_v34 = vshrl.u32 %v3799_v24, 16 }
  0xb4   : > { %v1165_v46 = vand.u32 65535, %v1161_v44  ;;  %v1166_v47 = vshrl.u32 %v1161_v44, 16  ;;  %v1187_v48 = vand.u32 65535, %v1157_v42  ;;  %v1188_v49 = vshrl.u32 %v1157_v42, 16 }
  0xb5   : > { %v1368_v51 = vadd.s32 536870912, %v1367_v40  ;;  %v3855_v52 = vadd.f32 %v779_v38, %v768_v22  ;;  %v1130_v61 = vshrl.u32 %v3584_v39, %v1129_v55  ;;  %v1151_v62 = vsel %vm1149_vm12, %v1139_v14, 2102212464 }
  0xb6   : > { %v1168_v54 = vmul.u32 %v1166_v47, %v1163_v31  ;;  %v1169_v36 = vmul.u32 %v1165_v46, %v1164_v34  ;;  %v1190_v58 = vmul.u32 %v1188_v49, %v1163_v31  ;;  %v1191_v59 = vmul.u32 %v1187_v48, %v1164_v34 }
  0xb7   : > { %v3857_v56 = vshrl.u32 %v1368_v51, 30  ;;  %v1167_v63 = vmul.u32 %v1165_v46, %v1163_v31  ;;  %v1170_v2 = vmul.u32 %v1166_v47, %v1164_v34  ;;  %v962_v4 = vand.u32 2139095040, %v3855_v52 }
  0xb8   : > { %v1171_v0 = vshll.u32 %v1168_v54, 16  ;;  %v1193_v3 = vshll.u32 %v1190_v58, 16  ;;  %v1173_v6 = vshll.u32 %v1169_v36, 16  ;;  %v1189_v8 = vmul.u32 %v1187_v48, %v1163_v31 }
  0xb9   : > { %v1370_v1 = vshll.u32 %v3857_v56, 30  ;;  %v1192_v16 = vmul.u32 %v1188_v49, %v1164_v34  ;;  %v1195_v55 = vshll.u32 %v1191_v59, 16  ;;  %v1172_v25 = vshrl.u32 %v1168_v54, 16 }
  0xba   : > { %vm1175_vm15 = vc.u32 %v1167_v63, %v1171_v0  ;;  %v1177_v7 = vadd.s32 %v1171_v0, %v1167_v63  ;;  %vm1197_vm1 = vc.u32 %v1189_v8, %v1193_v3  ;;  %v1199_v14 = vadd.s32 %v1193_v3, %v1189_v8  ;;  %v747_v63 = vpop.permute.xlu2 %746 }
  0xbb   : > { %v1371_v11 = vsub.s32 %v1367_v40, %v1370_v1  ;;  %v1176_v15 = vsel %vm1175_vm15, 1, %v3583_v5  ;;  %v1198_v23 = vsel %vm1197_vm1, 1, %v3583_v5  ;;  %v1174_v29 = vshrl.u32 %v1169_v36, 16 }
  0xbc   : > { %v1178_v19 = vadd.s32 %v1176_v15, %v1170_v2  ;;  %vm1179_vm0 = vc.u32 %v1177_v7, %v1173_v6  ;;  %v1200_v27 = vadd.s32 %v1198_v23, %v1192_v16  ;;  %vm1201_vm3 = vc.u32 %v1199_v14, %v1195_v55  ;;  %v774_v2 = vpop.permute.xlu1 %773 }
  0xbd   : > { %vm1372_vm2 = vcmp.lt.s32.totalorder %v1371_v11, 0  ;;  %v1373_v21 = vsub.s32 0, %v1371_v11  ;;  %v1180_v22 = vsel %vm1179_vm0, 1, %v3583_v5  ;;  %v1202_v20 = vsel %vm1201_vm3, 1, %v3583_v5 }
  0xbe   : > { %v1182_v26 = vadd.s32 %v1180_v22, %v1178_v19  ;;  %v963_v32 = vshrl.u32 %v962_v4, 23  ;;  %v1194_v37 = vshrl.u32 %v1190_v58, 16  ;;  %v1204_v38 = vadd.s32 %v1202_v20, %v1200_v27 }
  0xbf   : > { %v1374_v31 = vsel %vm1372_vm2, %v1373_v21, %v1371_v11  ;;  %v1150_v40 = vsel %vm1146_vm11, %v1130_v61, %v3816_v9  ;;  %v1152_v42 = vsel %vm1148_vm13, %v3818_v10, %v1151_v62  ;;  %v1196_v47 = vshrl.u32 %v1191_v59, 16 }
  0xc0   : > { %v1375_v33 = vclz %v1374_v31  ;;  %v1183_v35 = vadd.s32 %v1182_v26, %v1172_v25  ;;  %v3447_v44 = vadd.s32 4294967169, %v963_v32  ;;  %v1205_v48 = vadd.s32 %v1204_v38, %v1194_v37 }
  0xc1   : > { %v3876_v49 = vadd.s32 %v1199_v14, %v1195_v55  ;;  %v959_v51 = vand.u32 2147483647, %v3855_v52  ;;  %v1153_v36 = vsel %vm1147_vm14, %v1150_v40, %v1152_v42  ;;  %v1363_v10 = vadd.s32 %v3807_v60, %v3821_v12 }
  0xc2   : > { %v3454_v34 = vadd.s32 4294967294, %v1375_v33  ;;  %v3874_v46 = vadd.s32 %v1183_v35, %v1174_v29  ;;  %v969_v54 = vadd.s32 1, %v3447_v44  ;;  %v1206_v9 = vadd.s32 %v1205_v48, %v1196_v47 }
  0xc3   : > { %v1207_v0 = vmul.u32 %v3799_v24, %v1153_v36  ;;  %v966_v1 = vand.u32 8388607, %v959_v51  ;;  %v767_v3 = vmul.f32 %v3760_v13, %v747_v63  ;;  %vm1271_vm7 = vcmp.lt.s32.totalorder %v3763_v17, 0 }
  0xc4   : > { %vm3455_vm4 = vcmp.lt.s32.totalorder %v3454_v34, 0  ;;  %vm1209_vm5 = vc.u32 %v3874_v46, %v3876_v49  ;;  %vm970_vm6 = vcmp.gt.s32.totalorder %v969_v54, 0  ;;  %v1210_v62 = vadd.s32 1, %v1206_v9 }
  0xc5   : > { %v1378_v58 = vsel %vm3455_vm4, 0, %v3454_v34  ;;  %v971_v57 = vsel %vm970_vm6, %v969_v54, 0  ;;  %v3889_v12 = vadd.f32 %v774_v2, %v767_v3  ;;  %v967_v14 = vor.u32 8388608, %v966_v1 }
  0xc6   : > { %v1379_v59 = vsub.s32 32, %v1378_v58  ;;  %v1383_v61 = vsub.s32 4294967266, %v1378_v58  ;;  %v1211_v7 = vsel %vm1209_vm5, %v1210_v62, %v1206_v9  ;;  %v1380_v8 = vshll.u32 %v1371_v11, %v1378_v58 }
  0xc7   : > { %v1212_v15 = vadd.s32 %v1211_v7, %v1207_v0  ;;  %v973_v16 = vand.u32 31, %v971_v57  ;;  %v3891_v22 = vshrl.u32 %v971_v57, 5  ;;  %v3907_v48 = vshll.u32 %v967_v14, 8 }
  0xc8   : > { %v1381_v4 = vshrl.u32 %v1363_v10, %v1379_v59  ;;  %v1384_v6 = vadd.s32 127, %v1383_v61  ;;  %v807_v9 = vand.u32 2139095040, %v3889_v12  ;;  %vm3916_vm11 = vcmp.le.f32.partialorder %v1269_v18, 0.7853982 }
  0xc9   : > { %v1213_v19 = vadd.s32 536870912, %v1212_v15  ;;  %v974_v24 = vsub.s32 32, %v973_v16  ;;  %v976_v23 = vshll.u32 %v3584_v39, %v973_v16  ;;  %v979_v13 = vshll.u32 %v3585_v41, %v973_v16 }
  0xca   : > { %v1385_v60 = vshll.u32 %v1384_v6, 23  ;;  %v1382_v55 = vor.u32 %v1381_v4, %v1380_v8  ;;  %v982_v27 = vshll.u32 %v3586_v43, %v973_v16  ;;  %v985_v20 = vshll.u32 %v3587_v45, %v973_v16 }
  0xcb   : > { %v3895_v25 = vshrl.u32 %v1213_v19, 30  ;;  %v977_v11 = vshrl.u32 %v3585_v41, %v974_v24  ;;  %v980_v26 = vshrl.u32 %v3586_v43, %v974_v24  ;;  %v983_v29 = vshrl.u32 %v3587_v45, %v974_v24 }
  0xcc   : > { %v1386_v21 = vor.u32 4788187, %v1385_v60  ;;  %v986_v32 = vshrl.u32 %v3588_v50, %v974_v24  ;;  %v1389_v33 = vcvt.s32.f32 %v1382_v55  ;;  %v988_v44 = vshll.u32 %v3588_v50, %v973_v16 }
  0xcd   : > { %v1215_v35 = vshll.u32 %v3895_v25, 30  ;;  %v978_v37 = vor.u32 %v977_v11, %v976_v23  ;;  %v981_v38 = vor.u32 %v980_v26, %v979_v13  ;;  %v984_v40 = vor.u32 %v983_v29, %v982_v27 }
  0xce   : > { %v1387_v31 = vand.u32 2147483647, %v1386_v21  ;;  %v987_v42 = vor.u32 %v986_v32, %v985_v20  ;;  %v989_v34 = vshrl.u32 %v3589_v53, %v974_v24  ;;  %vm991_vm8 = vcmp.lt.s32.totalorder %v3891_v22, 1 }
  0xcf   : > { %v1216_v47 = vsub.s32 %v1212_v15, %v1215_v35  ;;  %vm994_vm10 = vcmp.lt.s32.totalorder %v3891_v22, 4  ;;  %v999_v10 = vsel %vm991_vm8, %v978_v37, %v981_v38  ;;  %vm993_vm12 = vcmp.lt.s32.totalorder %v3891_v22, 3 }
  0xd0   : > { %v1390_v54 = vmul.f32 %v1389_v33, %v1387_v31  ;;  %v990_v36 = vor.u32 %v989_v34, %v988_v44  ;;  %v1000_v61 = vsel %vm994_vm10, %v987_v42, 920167782  ;;  %v1003_v62 = vsel %vm991_vm8, %v981_v38, %v984_v40 }
  0xd1   : > { %vm1217_vm9 = vcmp.lt.s32.totalorder %v1216_v47, 0  ;;  %v1218_v58 = vsub.s32 0, %v1216_v47  ;;  %v804_v63 = vand.u32 2147483647, %v3889_v12  ;;  %vm992_vm13 = vcmp.lt.s32.totalorder %v3891_v22, 2 }
  0xd2   : > { %v1001_v1 = vsel %vm993_vm12, %v984_v40, %v1000_v61  ;;  %v1004_v18 = vsel %vm994_vm10, %v990_v36, 1326507024  ;;  %v1391_v57 = vxor.u32 2147483648, %v1390_v54  ;;  %v1008_v7 = vand.u32 65535, %v3907_v48 }
  0xd3   : > { %v1219_v0 = vsel %vm1217_vm9, %v1218_v58, %v1216_v47  ;;  %v1002_v3 = vsel %vm992_vm13, %v999_v10, %v1001_v1  ;;  %v1005_v4 = vsel %vm993_vm12, %v987_v42, %v1004_v18  ;;  %v808_v15 = vshrl.u32 %v807_v9, 23 }
  0xd4   : > { %v1220_v2 = vclz %v1219_v0  ;;  %v1006_v6 = vsel %vm992_vm13, %v1003_v62, %v1005_v4  ;;  %v1033_v8 = vshrl.u32 %v1002_v3, 16  ;;  %v1032_v19 = vand.u32 65535, %v1002_v3 }
  0xd5   : > { %v1010_v60 = vand.u32 65535, %v1006_v6  ;;  %v1011_v55 = vshrl.u32 %v1006_v6, 16  ;;  %v975_v14 = vshrl.u32 %v3584_v39, %v974_v24  ;;  %v996_v21 = vsel %vm994_vm10, %v984_v40, 2102212464 }
  0xd6   : > { %v3451_v16 = vadd.s32 4294967294, %v1220_v2  ;;  %v1009_v23 = vshrl.u32 %v3907_v48, 16  ;;  %v1035_v13 = vmul.u32 %v1033_v8, %v1008_v7  ;;  %v1392_v11 = vsel %vm1271_vm7, %v1391_v57, %v1390_v54 }
  0xd7   : > { %v1208_v26 = vadd.s32 %v3876_v49, %v3874_v46  ;;  %v1013_v27 = vmul.u32 %v1011_v55, %v1008_v7  ;;  %v995_v29 = vsel %vm991_vm8, %v975_v14, %v978_v37  ;;  %v3444_v24 = vadd.s32 4294967169, %v808_v15 }
  0xd8   : > { %vm3452_vm14 = vcmp.lt.s32.totalorder %v3451_v16, 0  ;;  %v1014_v20 = vmul.u32 %v1010_v60, %v1009_v23  ;;  %v997_v35 = vsel %vm993_vm12, %v981_v38, %v996_v21  ;;  %v1036_v40 = vmul.u32 %v1032_v19, %v1009_v23 }
  0xd9   : > { %v1223_v31 = vsel %vm3452_vm14, 0, %v3451_v16  ;;  %v3953_v42 = vsel %vm3916_vm11, %v3763_v17, %v1392_v11  ;;  %v1012_v46 = vmul.u32 %v1010_v60, %v1008_v7  ;;  %v1016_v49 = vshll.u32 %v1013_v27, 16 }
  0xda   : > { %v1224_v32 = vsub.s32 32, %v1223_v31  ;;  %v1228_v33 = vsub.s32 4294967266, %v1223_v31  ;;  %v1038_v44 = vshll.u32 %v1035_v13, 16  ;;  %v1225_v34 = vshll.u32 %v1216_v47, %v1223_v31 }
  0xdb   : > { %v1034_v37 = vmul.u32 %v1032_v19, %v1008_v7  ;;  %v1015_v9 = vmul.u32 %v1011_v55, %v1009_v23  ;;  %v1018_v58 = vshll.u32 %v1014_v20, 16  ;;  %vm1020_vm15 = vc.u32 %v1012_v46, %v1016_v49 }
  0xdc   : > { %v1226_v54 = vshrl.u32 %v1208_v26, %v1224_v32  ;;  %v1229_v36 = vadd.s32 127, %v1228_v33  ;;  %v1022_v10 = vadd.s32 %v1016_v49, %v1012_v46  ;;  %v1021_v38 = vsel %vm1020_vm15, 1, %v3583_v5 }
  0xdd   : > { %v1040_v0 = vshll.u32 %v1036_v40, 16  ;;  %v1023_v1 = vadd.s32 %v1021_v38, %v1015_v9  ;;  %vm1042_vm1 = vc.u32 %v1034_v37, %v1038_v44  ;;  %v1044_v18 = vadd.s32 %v1038_v44, %v1034_v37 }
  0xde   : > { %v1227_v61 = vor.u32 %v1226_v54, %v1225_v34  ;;  %v1230_v62 = vshll.u32 %v1229_v36, 23  ;;  %vm1024_vm0 = vc.u32 %v1022_v10, %v1018_v58  ;;  %v3958_v57 = vmul.f32 %v3953_v42, %v3953_v42 }
  0xdf   : > { %v1025_v2 = vsel %vm1024_vm0, 1, %v3583_v5  ;;  %v1037_v3 = vmul.u32 %v1033_v8, %v1009_v23  ;;  %v1017_v4 = vshrl.u32 %v1013_v27, 16  ;;  %v1043_v7 = vsel %vm1042_vm1, 1, %v3583_v5 }
  0xe0   : > { %v1231_v47 = vor.u32 4788187, %v1230_v62  ;;  %v1027_v6 = vadd.s32 %v1025_v2, %v1023_v1  ;;  %vm1046_vm2 = vc.u32 %v1044_v18, %v1040_v0  ;;  %v1234_v16 = vcvt.s32.f32 %v1227_v61 }
  0xe1   : > { %v1045_v60 = vadd.s32 %v1043_v7, %v1037_v3  ;;  %v1047_v55 = vsel %vm1046_vm2, 1, %v3583_v5  ;;  %vm1116_vm3 = vcmp.lt.s32.totalorder %v3770_v28, 0  ;;  %v1019_v19 = vshrl.u32 %v1014_v20, 16 }
  0xe2   : > { %v1232_v15 = vand.u32 2147483647, %v1231_v47  ;;  %v1028_v14 = vadd.s32 %v1027_v6, %v1017_v4  ;;  %v814_v21 = vadd.s32 1, %v3444_v24  ;;  %v1039_v26 = vshrl.u32 %v1035_v13, 16 }
  0xe3   : > { %v1049_v31 = vadd.s32 %v1047_v55, %v1045_v60  ;;  %v811_v8 = vand.u32 8388607, %v804_v63  ;;  %v1405_v23 = vmul.f32 -0.00019511016, %v3958_v57  ;;  %v998_v27 = vsel %vm992_vm13, %v995_v29, %v997_v35 }
  0xe4   : > { %v1235_v11 = vmul.f32 %v1234_v16, %v1232_v15  ;;  %v3969_v32 = vadd.s32 %v1028_v14, %v1019_v19  ;;  %vm815_vm4 = vcmp.gt.s32.totalorder %v814_v21, 0  ;;  %v1041_v46 = vshrl.u32 %v1036_v40, 16 }
  0xe5   : > { %v1050_v49 = vadd.s32 %v1049_v31, %v1039_v26  ;;  %v816_v20 = vsel %vm815_vm4, %v814_v21, 0  ;;  %v1393_v24 = vsub.s32 4, %v3857_v56  ;;  %vm3974_vm5 = vcmp.le.f32.partialorder %v1114_v30, 0.7853982 }
  0xe6   : > { %v1236_v33 = vxor.u32 2147483648, %v1235_v11  ;;  %v1048_v44 = vadd.s32 %v1044_v18, %v1040_v0  ;;  %v818_v34 = vand.u32 31, %v816_v20  ;;  %v1052_v35 = vmul.u32 %v3907_v48, %v998_v27 }
  0xe7   : > { %v1051_v29 = vadd.s32 %v1050_v49, %v1041_v46  ;;  %v812_v54 = vor.u32 8388608, %v811_v8  ;;  %v1406_v40 = vadd.f32 0.008332121, %v1405_v23  ;;  %v3991_v58 = vshrl.u32 %v816_v20, 5 }
  0xe8   : > { %v1237_v22 = vsel %vm1116_vm3, %v1236_v33, %v1235_v11  ;;  %vm1054_vm6 = vc.u32 %v3969_v32, %v1048_v44  ;;  %v819_v30 = vsub.s32 32, %v818_v34  ;;  %v821_v10 = vshll.u32 %v3584_v39, %v818_v34 }
  0xe9   : > { %v3984_v36 = vsel %vm3974_vm5, %v3770_v28, %v1237_v22  ;;  %v1055_v9 = vadd.s32 1, %v1051_v29  ;;  %v824_v61 = vshll.u32 %v3585_v41, %v818_v34  ;;  %v827_v1 = vshll.u32 %v3586_v43, %v818_v34 }
  0xea   : > { %v3989_v37 = vmul.f32 %v3984_v36, %v3984_v36  ;;  %v822_v48 = vshrl.u32 %v3585_v41, %v819_v30  ;;  %v825_v62 = vshrl.u32 %v3586_v43, %v819_v30  ;;  %v828_v38 = vshrl.u32 %v3587_v45, %v819_v30 }
  0xeb   : > { %v1056_v0 = vsel %vm1054_vm6, %v1055_v9, %v1051_v29  ;;  %v830_v18 = vshll.u32 %v3587_v45, %v818_v34  ;;  %v831_v47 = vshrl.u32 %v3588_v50, %v819_v30  ;;  %v833_v41 = vshll.u32 %v3588_v50, %v818_v34 }
  0xec   : > { %v1250_v2 = vmul.f32 -0.00019511016, %v3989_v37  ;;  %v1057_v3 = vadd.s32 %v1056_v0, %v1052_v35  ;;  %v823_v4 = vor.u32 %v822_v48, %v821_v10  ;;  %v4002_v6 = vor.u32 %v825_v62, %v824_v61 }
  0xed   : > { %v829_v7 = vor.u32 %v828_v38, %v827_v1  ;;  %v832_v15 = vor.u32 %v831_v47, %v830_v18  ;;  %v834_v16 = vshrl.u32 %v3589_v53, %v819_v30  ;;  %v4009_v43 = vsel %vm1271_vm7, %v1393_v24, %v3857_v56 }
  0xee   : > { %v1407_v45 = vmul.f32 %v1406_v40, %v3958_v57  ;;  %v1058_v60 = vadd.s32 536870912, %v1057_v3  ;;  %vm836_vm8 = vcmp.lt.s32.totalorder %v3991_v58, 1  ;;  %vm839_vm9 = vcmp.lt.s32.totalorder %v3991_v58, 4 }
  0xef   : > { %v835_v55 = vor.u32 %v834_v16, %v833_v41  ;;  %v4014_v19 = vshll.u32 %v812_v54, 8  ;;  %vm838_vm10 = vcmp.lt.s32.totalorder %v3991_v58, 3  ;;  %v844_v50 = vsel %vm836_vm8, %v823_v4, %v4002_v6 }
  0xf0   : > { %v4016_v14 = vshrl.u32 %v1058_v60, 30  ;;  %v845_v53 = vsel %vm839_vm9, %v832_v15, 920167782  ;;  %v1251_v56 = vadd.f32 0.008332121, %v1250_v2  ;;  %vm837_vm7 = vcmp.lt.s32.totalorder %v3991_v58, 2 }
  0xf1   : > { %v846_v21 = vsel %vm838_vm10, %v829_v7, %v845_v53  ;;  %v848_v11 = vsel %vm836_vm8, %v4002_v6, %v829_v7  ;;  %v1408_v26 = vadd.f32 -0.16666654, %v1407_v45  ;;  %v849_v23 = vsel %vm839_vm9, %v835_v55, 1326507024 }
  0xf2   : > { %v1060_v31 = vshll.u32 %v4016_v14, 30  ;;  %v847_v8 = vsel %vm837_vm7, %v844_v50, %v846_v21  ;;  %v1238_v27 = vsub.s32 4, %v3895_v25  ;;  %v850_v33 = vsel %vm838_vm10, %v832_v15, %v849_v23 }
  0xf3   : > { %v853_v46 = vand.u32 65535, %v4014_v19  ;;  %v854_v49 = vshrl.u32 %v4014_v19, 16  ;;  %v851_v24 = vsel %vm837_vm7, %v848_v11, %v850_v33  ;;  %v877_v34 = vand.u32 65535, %v847_v8 }
  0xf4   : > { %v1061_v20 = vsub.s32 %v1057_v3, %v1060_v31  ;;  %v878_v22 = vshrl.u32 %v847_v8, 16  ;;  %v1252_v29 = vmul.f32 %v1251_v56, %v3989_v37  ;;  %v820_v35 = vshrl.u32 %v3584_v39, %v819_v30 }
  0xf5   : > { %v855_v54 = vand.u32 65535, %v851_v24  ;;  %v856_v40 = vshrl.u32 %v851_v24, 16  ;;  %v1409_v9 = vmul.f32 %v1408_v26, %v3958_v57  ;;  %v1053_v10 = vadd.s32 %v1048_v44, %v3969_v32 }
  0xf6   : > { %vm1062_vm12 = vcmp.lt.s32.totalorder %v1061_v20, 0  ;;  %v1063_v48 = vsub.s32 0, %v1061_v20  ;;  %v840_v61 = vsel %vm836_vm8, %v820_v35, %v823_v4  ;;  %v1396_v0 = vsel %vm3916_vm11, 0, %v4009_v43 }
  0xf7   : > { %v858_v62 = vmul.u32 %v856_v40, %v853_v46  ;;  %v859_v38 = vmul.u32 %v855_v54, %v854_v49  ;;  %v841_v39 = vsel %vm839_vm9, %v829_v7, 2102212464  ;;  %v880_v30 = vmul.u32 %v878_v22, %v853_v46 }
  0xf8   : > { %v1064_v1 = vsel %vm1062_vm12, %v1063_v48, %v1061_v20  ;;  %v881_v18 = vmul.u32 %v877_v34, %v854_v49  ;;  %v1253_v47 = vadd.f32 -0.16666654, %v1252_v29  ;;  %v857_v32 = vmul.u32 %v855_v54, %v853_v46 }
  0xf9   : > { %v1065_v2 = vclz %v1064_v1  ;;  %v861_v44 = vshll.u32 %v858_v62, 16  ;;  %v860_v3 = vmul.u32 %v856_v40, %v854_v49  ;;  %v863_v15 = vshll.u32 %v859_v38, 16 }
  0xfa   : > { %v879_v41 = vmul.u32 %v877_v34, %v853_v46  ;;  %v883_v4 = vshll.u32 %v880_v30, 16  ;;  %v882_v60 = vmul.u32 %v878_v22, %v854_v49  ;;  %v885_v43 = vshll.u32 %v881_v18, 16 }
  0xfb   : > { %v3448_v16 = vadd.s32 4294967294, %v1065_v2  ;;  %vm865_vm13 = vc.u32 %v857_v32, %v861_v44  ;;  %v867_v45 = vadd.s32 %v861_v44, %v857_v32  ;;  %v862_v31 = vshrl.u32 %v858_v62, 16 }
  0xfc   : > { %v866_v59 = vsel %vm865_vm13, 1, %v3583_v5  ;;  %vm887_vm11 = vc.u32 %v879_v41, %v883_v4  ;;  %v889_v55 = vadd.s32 %v883_v4, %v879_v41  ;;  %v864_v33 = vshrl.u32 %v859_v38, 16 }
  0xfd   : > { %vm3449_vm14 = vcmp.lt.s32.totalorder %v3448_v16, 0  ;;  %v868_v7 = vadd.s32 %v866_v59, %v860_v3  ;;  %vm869_vm15 = vc.u32 %v867_v45, %v863_v15  ;;  %v888_v50 = vsel %vm887_vm11, 1, %v3583_v5 }
  0xfe   : > { %v1068_v53 = vsel %vm3449_vm14, 0, %v3448_v16  ;;  %v870_v56 = vsel %vm869_vm15, 1, %v3583_v5  ;;  %v890_v21 = vadd.s32 %v888_v50, %v882_v60  ;;  %vm891_vm0 = vc.u32 %v889_v55, %v885_v43 }
  0xff   : > { %v1069_v11 = vsub.s32 32, %v1068_v53  ;;  %v1073_v26 = vsub.s32 4294967266, %v1068_v53  ;;  %v872_v8 = vadd.s32 %v870_v56, %v868_v7  ;;  %v1070_v23 = vshll.u32 %v1061_v20, %v1068_v53 }
 0x100   : > { %v884_v46 = vshrl.u32 %v880_v30, 16  ;;  %v892_v49 = vsel %vm891_vm0, 1, %v3583_v5  ;;  %v1254_v35 = vmul.f32 %v1253_v47, %v3989_v37  ;;  %v842_v54 = vsel %vm838_vm10, %v4002_v6, %v841_v39 }
 0x101   : > { %v1071_v24 = vshrl.u32 %v1053_v10, %v1069_v11  ;;  %v1074_v34 = vadd.s32 127, %v1073_v26  ;;  %v873_v22 = vadd.s32 %v872_v8, %v862_v31  ;;  %v894_v29 = vadd.s32 %v892_v49, %v890_v21 }
 0x102   : > { %v886_v40 = vshrl.u32 %v881_v18, 16  ;;  %v1398_v48 = vmul.f32 -0.001358992, %v3958_v57  ;;  %v1410_v30 = vadd.f32 1.0, %v1409_v9  ;;  %v1083_v10 = vsub.s32 4, %v4016_v14 }
 0x103   : > { %v1072_v62 = vor.u32 %v1071_v24, %v1070_v23  ;;  %v1075_v1 = vshll.u32 %v1074_v34, 23  ;;  %v4062_v20 = vadd.s32 %v873_v22, %v864_v33  ;;  %v895_v38 = vadd.s32 %v894_v29, %v884_v46 }
 0x104   : > { %v4065_v2 = vadd.s32 %v889_v55, %v885_v43  ;;  %v1399_v32 = vadd.f32 0.041655596, %v1398_v48  ;;  %v843_v47 = vsel %vm837_vm7, %v840_v61, %v842_v54  ;;  %v1413_v6 = vadd.s32 3, %v1396_v0 }
 0x105   : > { %v1076_v44 = vor.u32 4788187, %v1075_v1  ;;  %v896_v3 = vadd.s32 %v895_v38, %v886_v40  ;;  %v1239_v39 = vsel %vm1116_vm3, %v1238_v27, %v3895_v25  ;;  %vm961_vm1 = vcmp.lt.s32.totalorder %v3855_v52, 0 }
 0x106   : > { %vm899_vm2 = vc.u32 %v4062_v20, %v4065_v2  ;;  %v1400_v9 = vmul.f32 %v1399_v32, %v3958_v57  ;;  %v1255_v18 = vadd.f32 1.0, %v1254_v35  ;;  %v1079_v41 = vcvt.s32.f32 %v1072_v62 }
 0x107   : > { %v1077_v15 = vand.u32 2147483647, %v1076_v44  ;;  %v900_v58 = vadd.s32 1, %v896_v3  ;;  %v1411_v61 = vmul.f32 %v1410_v30, %v3953_v42  ;;  %v1084_v0 = vsel %vm961_vm1, %v1083_v10, %v4016_v14 }
 0x108   : > { %v897_v4 = vmul.u32 %v4014_v19, %v843_v47  ;;  %v1401_v25 = vadd.f32 -0.4999988, %v1400_v9  ;;  %v1414_v45 = vand.u32 3, %v1413_v6  ;;  %v1241_v60 = vsel %vm3974_vm5, 0, %v1239_v39 }
 0x109   : > { %v1080_v27 = vmul.f32 %v1079_v41, %v1077_v15  ;;  %v901_v16 = vsel %vm899_vm2, %v900_v58, %v896_v3  ;;  %vm4087_vm3 = vcmp.le.f32.partialorder %v959_v51, 0.7853982  ;;  %v1243_v14 = vmul.f32 -0.001358992, %v3989_v37 }
 0x10a   : > { %v902_v42 = vadd.s32 %v901_v16, %v897_v4  ;;  %v1402_v43 = vmul.f32 %v1401_v25, %v3958_v57  ;;  %v1256_v19 = vmul.f32 %v1255_v18, %v3984_v36  ;;  %v1086_v7 = vsel %vm4087_vm3, 0, %v1084_v0 }
 0x10b   : > { %v1081_v55 = vxor.u32 2147483648, %v1080_v27  ;;  %vm1412_vm4 = vweird.f32 %v3763_v17  ;;  %v1244_v53 = vadd.f32 0.041655596, %v1243_v14  ;;  %v1258_v51 = vadd.s32 3, %v1241_v60 }
 0x10c   : > { %v903_v13 = vadd.s32 536870912, %v902_v42  ;;  %v1403_v50 = vadd.f32 1.0, %v1402_v43  ;;  %vm1416_vm5 = vcmp.eq.s32.totalorder %v1414_v45, 0  ;;  %v1417_v21 = vxor.u32 2147483648, %v1411_v61 }
 0x10d   : > { %v1082_v56 = vsel %vm961_vm1, %v1081_v55, %v1080_v27  ;;  %v795_v57 = vlaneseq  ;;  %v1245_v31 = vmul.f32 %v1244_v53, %v3989_v37  ;;  %vm1419_vm6 = vcmp.eq.s32.totalorder %v1414_v45, 2 }
 0x10e   : > { %v1085_v36 = vsel %vm4087_vm3, %v3855_v52, %v1082_v56  ;;  %v4102_v11 = vshrl.u32 %v903_v13, 30  ;;  %v1420_v26 = vxor.u32 2147483648, %v1403_v50  ;;  %v1418_v23 = vsel %vm1416_vm5, %v1403_v50, %v1417_v21 }
 0x10f   : > { %v1087_v8 = vmul.f32 %v1085_v36, %v1085_v36  ;;  %v4105_v33 = vshrl.u32 %v795_v57, 7  ;;  %vm1415_vm8 = vcmp.lt.s32.totalorder %v1414_v45, 2  ;;  %v1246_v24 = vadd.f32 -0.4999988, %v1245_v31 }
 0x110   : > { %v905_v46 = vshll.u32 %v4102_v11, 30  ;;  %v1421_v49 = vsel %vm1419_vm6, %v1420_v26, %v1411_v61  ;;  %v1259_v29 = vand.u32 3, %v1258_v51  ;;  %v1262_v62 = vxor.u32 2147483648, %v1256_v19 }
 0x111   : > { %v1095_v34 = vmul.f32 -0.00019511016, %v1087_v8  ;;  %v1422_v22 = vsel %vm1415_vm8, %v1418_v23, %v1421_v49  ;;  %v1088_v35 = vmul.f32 -0.001358992, %v1087_v8  ;;  %3478 = vset.pattern.permute.xlu0 %v4105_v33  ;;  %3479 = vset.pattern.permute.xlu1 %v4105_v33  ;;  %v1247_v48 = vmul.f32 %v1246_v24, %v3989_v37 }
 0x112   : > { %v906_v54 = vsub.s32 %v902_v42, %v905_v46  ;;  %v1423_v40 = vsel %vm1412_vm4, nan, %v1422_v22  ;;  %3480 = vset.pattern.permute.xlu2 %v4105_v33  ;;  %v1103_v10 = vadd.s32 3, %v1086_v7  ;;  %vm1261_vm10 = vcmp.eq.s32.totalorder %v1259_v29, 0 }
 0x113   : > { %v1096_v1 = vadd.f32 0.008332121, %v1095_v34  ;;  %v4114_v38 = vand.u32 4294901760, %v1423_v40  ;;  %v1089_v30 = vadd.f32 0.041655596, %v1088_v35  ;;  %v1248_v44 = vadd.f32 1.0, %v1247_v48 }
 0x114   : > { %vm907_vm9 = vcmp.lt.s32.totalorder %v906_v54, 0  ;;  %v908_v32 = vsub.s32 0, %v906_v54  ;;  %vm1264_vm7 = vcmp.eq.s32.totalorder %v1259_v29, 2  ;;  %vm1257_vm12 = vweird.f32 %v3770_v28  ;;  %v3485_v48 = vld [vmem:[#allocation2] ss:$0 sm:$0xff] }
 0x115   : > { %v1097_v47 = vmul.f32 %v1096_v1, %v1087_v8  ;;  %1452 = vmatpush.msra.mxu0 %v4114_v38  ;;  %1552 = vmatpush.msra.mxu3 %v4114_v38  ;;  %v4119_v17 = vsub.f32 %v1423_v40, %v4114_v38  ;;  %v1090_v37 = vmul.f32 %v1089_v30, %v1087_v8  ;;  %v1265_v39 = vxor.u32 2147483648, %v1248_v44 }
 0x116   : > { %v909_v3 = vsel %vm907_vm9, %v908_v32, %v906_v54  ;;  %v1263_v6 = vsel %vm1261_vm10, %v1248_v44, %v1262_v62  ;;  %vm1260_vm13 = vcmp.lt.s32.totalorder %v1259_v29, 2  ;;  %v1104_v45 = vand.u32 3, %v1103_v10  ;;  %v1428_v10 = vld [vmem:[%s4772_s29] sm:$0xff] }
 0x117   : > { %v1098_v9 = vadd.f32 -0.16666654, %v1097_v47  ;;  %v910_v18 = vclz %v909_v3  ;;  %1523 = vmatpush.msra.mxu2 %v4119_v17  ;;  %v1482_v15 = vand.u32 4294901760, %v4119_v17  ;;  %v1091_v41 = vadd.f32 -0.4999988, %v1090_v37 }
 0x118   : > { %v1266_v58 = vsel %vm1264_vm7, %v1265_v39, %v1256_v19  ;;  %v898_v19 = vadd.s32 %v4065_v2, %v4062_v20  ;;  %vm1109_vm14 = vcmp.eq.s32.totalorder %v1104_v45, 2  ;;  %vm1105_vm15 = vcmp.lt.s32.totalorder %v1104_v45, 2 }
 0x119   : > { %v1099_v61 = vmul.f32 %v1098_v9, %v1087_v8  ;;  %v3445_v0 = vadd.s32 4294967294, %v910_v18  ;;  %v1267_v4 = vsel %vm1260_vm13, %v1263_v6, %v1266_v58  ;;  %v1483_v25 = vsub.f32 %v4119_v17, %v1482_v15  ;;  %v1433_v17 = vpop.permute.xlu2 %1432 }
 0x11a   : > { %v1268_v27 = vsel %vm1257_vm12, nan, %v1267_v4  ;;  %v1092_v16 = vmul.f32 %v1091_v41, %v1087_v8  ;;  %vm1106_vm0 = vcmp.eq.s32.totalorder %v1104_v45, 0  ;;  %vm1102_vm1 = vweird.f32 %v3855_v52 }
 0x11b   : > { %v1100_v60 = vadd.f32 1.0, %v1099_v61  ;;  %vm3446_vm11 = vcmp.lt.s32.totalorder %v3445_v0, 0  ;;  %v4127_v59 = vand.u32 4294901760, %v1268_v27  ;;  %v1484_v42 = vand.u32 4294901760, %v1483_v25 }
 0x11c   : > { %v913_v43 = vsel %vm3446_vm11, 0, %v3445_v0  ;;  %v1093_v14 = vadd.f32 1.0, %v1092_v16  ;;  %vm806_vm2 = vcmp.lt.s32.totalorder %v3889_v12, 0  ;;  %vm4155_vm3 = vcmp.le.f32.partialorder %v804_v63, 0.7853982 }
 0x11d   : > { %v1101_v28 = vmul.f32 %v1100_v60, %v1085_v36  ;;  %v914_v55 = vsub.s32 32, %v913_v43  ;;  %v918_v7 = vsub.s32 4294967266, %v913_v43  ;;  %1454 = vmatpush.msra.mxu0 %v4127_v59  ;;  %1485 = vmatpush.msra.mxu1 %v1484_v42  ;;  %v4134_v13 = vsub.f32 %v1268_v27, %v4127_v59 }
 0x11e   : > { %1554 = vmatpush.msra.mxu3 %v4127_v59  ;;  %v1110_v50 = vxor.u32 2147483648, %v1093_v14  ;;  %v915_v51 = vshll.u32 %v906_v54, %v913_v43  ;;  %v928_v30 = vsub.s32 4, %v4102_v11  ;;  %vm1435_vm4 = vcmask 261120  }
 0x11f   : > { %v1107_v53 = vxor.u32 2147483648, %v1101_v28  ;;  %v916_v56 = vshrl.u32 %v898_v19, %v914_v55  ;;  %v919_v21 = vadd.s32 127, %v918_v7  ;;  %1526 = vmatpush.msra.mxu2 %v4134_v13  ;;  %v1488_v26 = vand.u32 4294901760, %v4134_v13 }
 0x120   : > { %v1111_v20 = vsel %vm1109_vm14, %v1110_v50, %v1101_v28  ;;  %v1437_v37 = vsel %vm1435_vm4, %v1428_v10, 0  ;;  %v929_v3 = vsel %vm806_vm2, %v928_v30, %v4102_v11  ;;  %vm800_vm8 = vcmp.eq.s32.totalorder %v4105_v33, 0  ;;  %v2064_v30 = vld [vmem:[%s4737_s8 + $0x10] sm:$0xff]  ;;  %v2092_v10 = vld [vmem:[%s4738_s9 + $0x8] sm:$0xff] }
 0x121   : > { %v917_v2 = vor.u32 %v916_v56, %v915_v51  ;;  %v920_v57 = vshll.u32 %v919_v21, 23  ;;  %v1108_v36 = vsel %vm1106_vm0, %v1093_v14, %v1107_v53  ;;  %v1489_v46 = vsub.f32 %v4134_v13, %v1488_v26 }
 0x122   : > { %v1112_v31 = vsel %vm1105_vm15, %v1108_v36, %v1111_v20  ;;  %v1459_v9 = vand.u32 4294901760, %v1437_v37  ;;  %v931_v18 = vsel %vm4155_vm3, 0, %v929_v3  ;;  %vm947_vm10 = vweird.f32 %v3889_v12  ;;  %v2125_v3 = vld [vmem:[%s4741_s13 + $0x10] sm:$0xff] }
 0x123   : > { %v921_v8 = vor.u32 4788187, %v920_v57  ;;  %v1113_v23 = vsel %vm1102_vm1, nan, %v1112_v31  ;;  %v924_v34 = vcvt.s32.f32 %v917_v2  ;;  %v1490_v22 = vand.u32 4294901760, %v1489_v46 }
 0x124   : > { %v4142_v49 = vand.u32 4294901760, %v1113_v23  ;;  %v948_v4 = vadd.s32 3, %v931_v18  ;;  %v1460_v25 = vsub.f32 %v1437_v37, %v1459_v9  ;;  %v2094_v37 = vld [vmem:[%s4738_s9 + $0x18] sm:$0xff]  ;;  %v2442_v18 = vld [vmem:[%s4743_s15 + $0x8] sm:$0xff]  ;;  %vm1691_vm12 = vcmask 31744  }
 0x125   : > { %v922_v24 = vand.u32 2147483647, %v921_v8  ;;  %1491 = vmatpush.msra.mxu1 %v1490_v22  ;;  %vm1986_vm13 = vcmask 1041409   ;;  %vm1989_vm11 = vcmask 1042434   ;;  %vm1992_vm14 = vcmask 1043459  }
 0x126   : > { %1456 = vmatpush.msra.mxu0 %v4142_v49  ;;  %1556 = vmatpush.msra.mxu3 %v4142_v49  ;;  %v4147_v29 = vsub.f32 %v1113_v23, %v4142_v49  ;;  %v949_v42 = vand.u32 3, %v948_v4  ;;  %v1461_v43 = vand.u32 4294901760, %v1460_v25  ;;  %v2126_v4 = vld [vmem:[%s4741_s13 + $0x18] sm:$0xff]  ;;  %vm1995_vm15 = vcmask 1044484  }
 0x127   : > { %v925_v52 = vmul.f32 %v924_v34, %v922_v24  ;;  %vm1998_vm0 = vcmask 1045509   ;;  %vm2001_vm1 = vcmask 1046534  }
 0x128   : > { %1529 = vmatpush.msra.mxu2 %v4147_v29  ;;  %v1494_v35 = vand.u32 4294901760, %v4147_v29  ;;  %vm951_vm5 = vcmp.eq.s32.totalorder %v949_v42, 0  ;;  %vm954_vm6 = vcmp.eq.s32.totalorder %v949_v42, 2  ;;  %v1462_v19 = vsub.f32 %v1460_v25, %v1461_v43 }
 0x129   : > { %v926_v54 = vxor.u32 2147483648, %v925_v52  ;;  %vm950_vm9 = vcmp.lt.s32.totalorder %v949_v42, 2 }
 0x12a   : > { %v1495_v40 = vsub.f32 %v4147_v29, %v1494_v35  ;;  %v1463_v56 = vand.u32 4294901760, %v1462_v19 }
 0x12b   : > { %v927_v62 = vsel %vm806_vm2, %v926_v54, %v925_v52  ;;  %vm2004_vm2 = vcmask 1047559  }
 0x12c   : > { %v930_v1 = vsel %vm4155_vm3, %v3889_v12, %v927_v62  ;;  %v1496_v32 = vand.u32 4294901760, %v1495_v40  ;;  %v3486_v62 = vld [vmem:[#allocation3] ss:$0 sm:$0xff] }
 0x12d   : > { %v932_v44 = vmul.f32 %v930_v1, %v930_v1 }
 0x12e   : > { %1497 = vmatpush.msra.mxu1 %v1496_v32  ;;  %v2093_v32 = vld [vmem:[%s4738_s9 + $0x10] sm:$0xff] }
 0x12f   : > { %v933_v47 = vmul.f32 -0.001358992, %v932_v44  ;;  %v940_v63 = vmul.f32 -0.00019511016, %v932_v44 }
 0x131   : > { %v934_v6 = vadd.f32 0.041655596, %v933_v47  ;;  %v941_v39 = vadd.f32 0.008332121, %v940_v63  ;;  %v2091_v47 = vld [vmem:[%s4738_s9] sm:$0xff]  ;;  %v2440_v63 = vld [vmem:[%s4742_s14 + $0x18] sm:$0xff] }
 0x133   : > { %v935_v41 = vmul.f32 %v934_v6, %v932_v44  ;;  %v942_v58 = vmul.f32 %v941_v39, %v932_v44  ;;  %v2438_v6 = vld [vmem:[%s4742_s14 + $0x8] sm:$0xff]  ;;  %v2439_v39 = vld [vmem:[%s4742_s14 + $0x10] sm:$0xff] }
 0x135   : > { %v936_v61 = vadd.f32 -0.4999988, %v935_v41  ;;  %v943_v0 = vadd.f32 -0.16666654, %v942_v58  ;;  %v2443_v41 = vld [vmem:[%s4743_s15 + $0x10] sm:$0xff]  ;;  %v2123_v58 = vld [vmem:[%s4741_s13] sm:$0xff] }
 0x137   : > { %v937_v27 = vmul.f32 %v936_v61, %v932_v44  ;;  %v944_v16 = vmul.f32 %v943_v0, %v932_v44  ;;  %v2065_v44 = vld [vmem:[%s4737_s8 + $0x18] sm:$0xff]  ;;  %v2716_v61 = vld [vmem:[%s4745_s17 + $0x8] sm:$0xff]  ;;  %v2441_v0 = vld [vmem:[%s4743_s15] sm:$0xff] }
 0x139   : > { %v938_v45 = vadd.f32 1.0, %v937_v27  ;;  %v945_v60 = vadd.f32 1.0, %v944_v16  ;;  %v4250_v27 = vld [vmem:[%s724_s0] sm:$0xff]  ;;  %v2717_v16 = vld [vmem:[%s4745_s17 + $0x10] sm:$0xff]  ;;  %s728_s0 = scalar_lea.vmem %s4779_s4, %s4241_s27 }
 0x13a   : > { %vm1624_vm7 = vcmp.eq.f32.partialorder %v4250_v27, 0.0 }
 0x13b   : > { %v946_v14 = vmul.f32 %v945_v60, %v930_v1  ;;  %v955_v11 = vxor.u32 2147483648, %v938_v45  ;;  %v2063_v1 = vld [vmem:[%s4737_s8 + $0x8] sm:$0xff]  ;;  %v2444_v60 = vld [vmem:[%s4743_s15 + $0x18] sm:$0xff] }
 0x13d   : > { %v952_v28 = vxor.u32 2147483648, %v946_v14  ;;  %v956_v7 = vsel %vm954_vm6, %v955_v11, %v946_v14 }
 0x13f   : > { %v953_v55 = vsel %vm951_vm5, %v938_v45, %v952_v28  ;;  %v3033_v45 = vld [vmem:[%s4747_s19] sm:$0xff]  ;;  %v3030_v28 = vld [vmem:[%s4746_s18 + $0x8] sm:$0xff] }
 0x140   : > { %v957_v50 = vsel %vm950_vm9, %v953_v55, %v956_v7  ;;  %v3035_v55 = vld [vmem:[%s4747_s19 + $0x10] sm:$0xff] }
 0x141   : > { %v958_v53 = vsel %vm947_vm10, nan, %v957_v50  ;;  %v2437_v50 = vld [vmem:[%s4742_s14] sm:$0xff] }
 0x142   : > { %v1424_v51 = vsel %vm800_vm8, %v3889_v12, %v958_v53 }
 0x143   : > { %v1457_v21 = vand.u32 4294901760, %v1424_v51 }
 0x145   : > { %1458 = vmatpush.msra.mxu0 %v1457_v21  ;;  %1558 = vmatpush.msra.mxu3 %v1457_v21  ;;  %v1499_v20 = vsub.f32 %v1424_v51, %v1457_v21 }
 0x146   : > { %1464 = vmatmul.f32.vlgmr.msra.gmra.mxu0 %v1463_v56  ;;  %1562 = vmatmul.f32.vlgmr.msra.gmra.mxu3 %v1461_v43 }
 0x147   : > { %1581 = vmatpush.msrb.mxu0 %v1482_v15  ;;  %1532 = vmatpush.msra.mxu2 %v1499_v20  ;;  %v1500_v33 = vand.u32 4294901760, %v1499_v20 }
 0x148   : > { %1535 = vmatmul.f32.vlgmr.msra.gmra.mxu2 %v1460_v25  ;;  %v3029_v25 = vld [vmem:[%s4746_s18] sm:$0xff] }
 0x149   : > { %1585 = vmatpush.msrb.mxu0 %v1488_v26  ;;  %v1501_v2 = vsub.f32 %v1499_v20, %v1500_v33 }
 0x14b   : > { %1589 = vmatpush.msrb.mxu0 %v1494_v35  ;;  %v1502_v57 = vand.u32 4294901760, %v1501_v2  ;;  %v3034_v2 = vld [vmem:[%s4747_s19 + $0x8] sm:$0xff] }
 0x14d   : > { %1593 = vmatpush.msrb.mxu0 %v1500_v33  ;;  %1503 = vmatpush.msra.mxu1 %v1502_v57 }
 0x14e   : > { %1505 = vmatmul.f32.vlgmr.msra.gmra.mxu1 %v1459_v9  ;;  %1595 = vmatmul.f32.vlgmr.msrb.gmra.mxu0 %v1459_v9 }
 0x14f   : > { %1612 = vmatpush.msrb.mxu1 %v4114_v38 }
 0x151   : > { %1614 = vmatpush.msrb.mxu1 %v4127_v59 }
 0x153   : > { %1616 = vmatpush.msrb.mxu1 %v4142_v49 }
 0x155   : > { %1618 = vmatpush.msrb.mxu1 %v1457_v21 }
 0x156   : > { %1620 = vmatmul.f32.vlgmr.msrb.gmra.mxu1 %v1459_v9  ;;  %v2062_v9 = vld [vmem:[%s4737_s8] sm:$0xff] }
 0x1c3   : > { %v1465_v12 = vpop.f32.mrf.mxu0 }
 0x1c4   : > { %v1466_v15 = vadd.f32 %v1465_v12, %v1433_v17  ;;  %v3297_v17 = vld [vmem:[%s4748_s20 + $0x8] sm:$0xff] }
 0x1c9   : > { %v1563_v31 = vpop.f32.mrf.mxu3 }
 0x1cb   : > { %v1506_v13 = vpop.f32.mrf.mxu1  ;;  %v1536_v36 = vpop.f32.mrf.mxu2 }
 0x1cc   : > { %v1507_v26 = vadd.f32 %v1506_v13, %v1466_v15  ;;  %v1596_v23 = vpop.f32.mrf.mxu0 }
 0x1ce   : > { %v1537_v8 = vadd.f32 %v1536_v36, %v1507_v26  ;;  %v2715_v36 = vld [vmem:[%s4745_s17] sm:$0xff] }
 0x1d0   : > { %v1564_v46 = vadd.f32 %v1563_v31, %v1537_v8 }
 0x1d2   : > { %v1597_v24 = vadd.f32 %v1596_v23, %v1564_v46 }
 0x1d3   : > { %v1621_v34 = vpop.f32.mrf.mxu1 }
 0x1d4   : > { %v1622_v22 = vadd.f32 %v1621_v34, %v1597_v24 }
 0x1d6   : > { %v1639_v38 = vperm.slane %v1622_v22, 2  ;;  %v1632_v29 = vperm.slane %v1622_v22, 1  ;;  %v1625_v59 = vperm.slane %v1622_v22, 0  ;;  %v1653_v49 = vperm.slane %v1622_v22, 4 }
 0x1d7   : > { %v1646_v52 = vperm.slane %v1622_v22, 3  ;;  %v1660_v35 = vperm.slane %v1622_v22, 5  ;;  %v1674_v54 = vperm.slane %v1622_v22, 7  ;;  %v1667_v40 = vperm.slane %v1622_v22, 6  ;;  %v3036_v22 = vld [vmem:[%s4747_s19 + $0x18] sm:$0xff] }
 0x1d8   : > { %1644 = vperm.xlu2 %3480, %v1639_v38   ;;  %1637 = vperm.xlu1 %3479, %v1632_v29  }
 0x1d9   : > { %1630 = vperm.xlu0 %3478, %v1625_v59   ;;  %v3337_v59 = vld [vmem:[#allocation4] sm:$0x1] }
 0x1e0   : > { %1658 = vperm.xlu2 %3480, %v1653_v49   ;;  %1651 = vperm.xlu1 %3479, %v1646_v52  }
 0x1e1   : > { %1665 = vperm.xlu0 %3478, %v1660_v35  }
 0x1e8   : > { %1679 = vperm.xlu2 %3480, %v1674_v54   ;;  %1672 = vperm.xlu1 %3479, %v1667_v40  }
 0x1e9   : > { %3481 = vset.pattern.permute.xlu0 %v3583_v5 }
 0x1ea   : > { %1912 = vperm.xlu0 %3481, %v3485_v48  }
 0x1f0   : > { %3482 = vset.pattern.permute.xlu1 %v3583_v5  ;;  %3483 = vset.pattern.permute.xlu2 %v3583_v5  ;;  %v2124_v5 = vld [vmem:[%s4741_s13 + $0x8] sm:$0xff] }
 0x1f1   : > { %1927 = vperm.xlu1 %3482, %v3486_v62   ;;  %2083 = vperm.xlu2 %3483, %v2065_v44  }
 0x1f2   : > { %2073 = vperm.xlu0 %3481, %v2063_v1  }
 0x1f9   : > { %2078 = vperm.xlu1 %3482, %v2064_v30   ;;  %2112 = vperm.xlu2 %3483, %v2094_v37  }
 0x1fa   : > { %2102 = vperm.xlu0 %3481, %v2092_v10  }
 0x201   : > { %2107 = vperm.xlu1 %3482, %v2093_v32   ;;  %2068 = vperm.xlu2 %3483, %v2062_v9  }
 0x202   : > { %2134 = vperm.xlu0 %3481, %v2124_v5   ;;  %v2718_v5 = vld [vmem:[%s4745_s17 + $0x18] sm:$0xff] }
 0x209   : > { %2097 = vperm.xlu1 %3482, %v2091_v47   ;;  %2129 = vperm.xlu2 %3483, %v2123_v58  }
 0x20a   : > { %2520 = vperm.xlu0 %3481, %v2440_v63  }
 0x211   : > { %2139 = vperm.xlu1 %3482, %v2125_v3   ;;  %2144 = vperm.xlu2 %3483, %v2126_v4   ;;  %v3298_v3 = vld [vmem:[%s4748_s20 + $0x10] sm:$0xff] }
 0x212   : > { %2510 = vperm.xlu0 %3481, %v2438_v6  }
 0x219   : > { %2515 = vperm.xlu1 %3482, %v2439_v39   ;;  %2544 = vperm.xlu2 %3483, %v2444_v60  }
 0x21a   : > { %2534 = vperm.xlu0 %3481, %v2442_v18  }
 0x221   : > { %2539 = vperm.xlu1 %3482, %v2443_v41   ;;  %2505 = vperm.xlu2 %3483, %v2437_v50  }
 0x222   : > { %2726 = vperm.xlu0 %3481, %v2716_v61  }
 0x229   : > { %2529 = vperm.xlu1 %3482, %v2441_v0   ;;  %2721 = vperm.xlu2 %3483, %v2715_v36  }
 0x22a   : > { %3090 = vperm.xlu0 %3481, %v3029_v25  }
 0x231   : > { %2731 = vperm.xlu1 %3482, %v2717_v16   ;;  %2736 = vperm.xlu2 %3483, %v2718_v5  }
 0x232   : > { %3114 = vperm.xlu0 %3481, %v3033_v45   ;;  %v1645_v42 = vpop.permute.xlu2 %1644 }
 0x233   : > { %v1685_v43 = vsel %vm1624_vm7, -1e+09, %v1645_v42 }
 0x234   : > { %v1706_v14 = vsel %vm1691_vm12, %v1685_v43, -inf }
 0x235   : > { %v1707_v11 = vrot.slane %v1706_v14, 4 }
 0x237   : > { %v1708_v19 = vmax.f32 %v1706_v14, %v1707_v11  ;;  %v3031_v11 = vld [vmem:[%s4746_s18 + $0x10] sm:$0xff] }
 0x239   : > { %v1709_v7 = vrot.slane %v1708_v19, 2  ;;  %3095 = vperm.xlu1 %3482, %v3030_v28   ;;  %3100 = vperm.xlu2 %3483, %v3031_v11  }
 0x23a   : > { %3124 = vperm.xlu0 %3481, %v3035_v55   ;;  %v1659_v53 = vpop.permute.xlu2 %1658 }
 0x23b   : > { %v1710_v51 = vmax.f32 %v1708_v19, %v1709_v7  ;;  %v1687_v56 = vsel %vm1624_vm7, -1e+09, %v1659_v53 }
 0x23c   : > { %v1720_v21 = vsel %vm1691_vm12, %v1687_v56, -inf }
 0x23d   : > { %v1711_v20 = vrot.slane %v1710_v51, 1  ;;  %v1721_v33 = vrot.slane %v1720_v21, 4 }
 0x23f   : > { %v1712_v57 = vmax.f32 %v1710_v51, %v1711_v20  ;;  %v1722_v12 = vmax.f32 %v1720_v21, %v1721_v33 }
 0x241   : > { %v1750_v15 = vsub.f32 %v1685_v43, %v1712_v57  ;;  %v1723_v13 = vrot.slane %v1722_v12, 2  ;;  %3119 = vperm.xlu1 %3482, %v3034_v2  }
 0x242   : > { %3307 = vperm.xlu0 %3481, %v3297_v17   ;;  %v1680_v26 = vpop.permute.xlu2 %1679 }
 0x243   : > { %v1760_v31 = vmul.f32 1.442695, %v1750_v15  ;;  %v1724_v8 = vmax.f32 %v1722_v12, %v1723_v13  ;;  %v1690_v23 = vsel %vm1624_vm7, -1e+09, %v1680_v26 }
 0x244   : > { %v1741_v46 = vsel %vm1691_vm12, %v1690_v23, -inf }
 0x245   : > { %3487 = vpow2.f32 %v1760_v31  ;;  %v1725_v24 = vrot.slane %v1724_v8, 1  ;;  %v1742_v34 = vrot.slane %v1741_v46, 4 }
 0x247   : > { %v1726_v38 = vmax.f32 %v1724_v8, %v1725_v24  ;;  %v1743_v29 = vmax.f32 %v1741_v46, %v1742_v34 }
 0x249   : > { %v1752_v49 = vsub.f32 %v1687_v56, %v1726_v38  ;;  %v1744_v52 = vrot.slane %v1743_v29, 2  ;;  %3129 = vperm.xlu1 %3482, %v3036_v22  }
 0x24a   : > { %3340 = vperm.xlu0 %3481, %v3337_v59   ;;  %v1638_v35 = vpop.permute.xlu1 %1637 }
 0x24b   : > { %v4292_v54 = vpop.eup %3487  ;;  %v1764_v40 = vmul.f32 1.442695, %v1752_v49  ;;  %v1745_v48 = vmax.f32 %v1743_v29, %v1744_v52  ;;  %v1684_v62 = vsel %vm1624_vm7, -1e+09, %v1638_v35  ;;  %v1631_v1 = vpop.permute.xlu0 %1630  ;;  %v3032_v29 = vld [vmem:[%s4746_s18 + $0x18] sm:$0xff] }
 0x24c   : > { %v1786_v30 = vsel %vm1691_vm12, %v4292_v54, 0.0  ;;  %v1699_v10 = vsel %vm1691_vm12, %v1684_v62, -inf  ;;  %v1683_v32 = vsel %vm1624_vm7, -1e+09, %v1631_v1  ;;  %3105 = vperm.xlu2 %3483, %v3032_v29  }
 0x24d   : > { %3489 = vpow2.f32 %v1764_v40  ;;  %v1746_v44 = vrot.slane %v1745_v48, 1  ;;  %v1700_v47 = vrot.slane %v1699_v10, 4  ;;  %v1787_v63 = vrot.slane %v1786_v30, 4 }
 0x24e   : > { %v1692_v37 = vsel %vm1691_vm12, %v1683_v32, -inf }
 0x24f   : > { %v1747_v6 = vmax.f32 %v1745_v48, %v1746_v44  ;;  %v1701_v39 = vmax.f32 %v1699_v10, %v1700_v47  ;;  %v1693_v9 = vrot.slane %v1692_v37, 4  ;;  %v1788_v61 = vadd.f32 %v1787_v63, %v1786_v30 }
 0x251   : > { %v1755_v18 = vsub.f32 %v1690_v23, %v1747_v6  ;;  %v1702_v41 = vrot.slane %v1701_v39, 2  ;;  %v1694_v58 = vmax.f32 %v1692_v37, %v1693_v9  ;;  %3312 = vperm.xlu1 %3482, %v3298_v3   ;;  %v1789_v55 = vrot.slane %v1788_v61, 2 }
 0x252   : > { %v1652_v0 = vpop.permute.xlu1 %1651 }
 0x253   : > { %v4308_v4 = vpop.eup %3489  ;;  %v1770_v25 = vmul.f32 1.442695, %v1755_v18  ;;  %v1703_v16 = vmax.f32 %v1701_v39, %v1702_v41  ;;  %v1695_v45 = vrot.slane %v1694_v58, 2  ;;  %v1666_v60 = vpop.permute.xlu0 %1665  ;;  %v1686_v43 = vsel %vm1624_vm7, -1e+09, %v1652_v0 }
 0x254   : > { %v1800_v42 = vsel %vm1691_vm12, %v4308_v4, 0.0  ;;  %v4316_v14 = vsel %vm1624_vm7, -1e+09, %v1666_v60  ;;  %v1713_v50 = vsel %vm1691_vm12, %v1686_v43, -inf  ;;  %v1790_v17 = vadd.f32 %v1789_v55, %v1788_v61 }
 0x255   : > { %v1801_v28 = vrot.slane %v1800_v42, 4  ;;  %3491 = vpow2.f32 %v1770_v25  ;;  %v1704_v19 = vrot.slane %v1703_v16, 1  ;;  %v1696_v7 = vmax.f32 %v1694_v58, %v1695_v45  ;;  %v3296_v58 = vld [vmem:[%s4748_s20] sm:$0xff] }
 0x256   : > { %v1727_v53 = vsel %vm1691_vm12, %v4316_v14, -inf  ;;  %v1714_v21 = vrot.slane %v1713_v50, 4  ;;  %v1791_v52 = vrot.slane %v1790_v17, 1  ;;  %3302 = vperm.xlu2 %3483, %v3296_v58  }
 0x257   : > { %v1802_v51 = vadd.f32 %v1801_v28, %v1800_v42  ;;  %v1705_v56 = vmax.f32 %v1703_v16, %v1704_v19  ;;  %v1697_v20 = vrot.slane %v1696_v7, 1  ;;  %v1728_v33 = vrot.slane %v1727_v53, 4 }
 0x258   : > { %v1715_v12 = vmax.f32 %v1713_v50, %v1714_v21  ;;  %v1792_v44 = vadd.f32 %v1791_v52, %v1790_v17  ;;  %v3299_v21 = vld [vmem:[%s4748_s20 + $0x18] sm:$0xff] }
 0x259   : > { %v1803_v2 = vrot.slane %v1802_v51, 2  ;;  %v1749_v57 = vsub.f32 %v1684_v62, %v1705_v56  ;;  %v1698_v15 = vmax.f32 %v1696_v7, %v1697_v20  ;;  %v1729_v13 = vmax.f32 %v1727_v53, %v1728_v33 }
 0x25a   : > { %v1673_v36 = vpop.permute.xlu1 %1672  ;;  %v1716_v23 = vrot.slane %v1715_v12, 2 }
 0x25b   : > { %v4324_v26 = vpop.eup %3491  ;;  %v1804_v31 = vadd.f32 %v1803_v2, %v1802_v51  ;;  %v1758_v8 = vmul.f32 1.442695, %v1749_v57  ;;  %v1689_v46 = vsel %vm1624_vm7, -1e+09, %v1673_v36  ;;  %v1748_v34 = vsub.f32 %v1683_v32, %v1698_v15 }
 0x25c   : > { %v1821_v24 = vsel %vm1691_vm12, %v4324_v26, 0.0  ;;  %v1730_v22 = vrot.slane %v1729_v13, 2  ;;  %v1734_v38 = vsel %vm1691_vm12, %v1689_v46, -inf  ;;  %v1717_v49 = vmax.f32 %v1715_v12, %v1716_v23 }
 0x25d   : > { %v1822_v59 = vrot.slane %v1821_v24, 4  ;;  %3493 = vpow2.f32 %v1758_v8  ;;  %v1756_v35 = vmul.f32 1.442695, %v1748_v34  ;;  %v1735_v27 = vrot.slane %v1734_v38, 4 }
 0x25e   : > { %v1731_v40 = vmax.f32 %v1729_v13, %v1730_v22  ;;  %v1805_v48 = vrot.slane %v1804_v31, 1  ;;  %v1718_v1 = vrot.slane %v1717_v49, 1  ;;  %3317 = vperm.xlu2 %3483, %v3299_v21  }
 0x25f   : > { %v1823_v62 = vadd.f32 %v1822_v59, %v1821_v24  ;;  %3495 = vpow2.f32 %v1756_v35  ;;  %v1736_v10 = vmax.f32 %v1734_v38, %v1735_v27  ;;  %v4363_v24 = vld [vmem:[%s717_s2] sm:$0xff] }
 0x260   : > { %v1732_v30 = vrot.slane %v1731_v40, 1  ;;  %v1719_v5 = vmax.f32 %v1717_v49, %v1718_v1  ;;  %v1806_v3 = vadd.f32 %v1805_v48, %v1804_v31  ;;  %3497 = vrcp.f32 %v1792_v44 }
 0x261   : > { %v1824_v32 = vrot.slane %v1823_v62, 2  ;;  %v1737_v63 = vrot.slane %v1736_v10, 2 }
 0x262   : > { %v1733_v47 = vmax.f32 %v1731_v40, %v1732_v30  ;;  %v1751_v39 = vsub.f32 %v1686_v43, %v1719_v5  ;;  %3499 = vrcp.f32 %v1806_v3 }
 0x263   : > { %v4334_v37 = vpop.eup %3493  ;;  %v1825_v6 = vadd.f32 %v1824_v32, %v1823_v62  ;;  %v1738_v41 = vmax.f32 %v1736_v10, %v1737_v63 }
 0x264   : > { %v1779_v9 = vsel %vm1691_vm12, %v4334_v37, 0.0  ;;  %v1753_v18 = vsub.f32 %v4316_v14, %v1733_v47  ;;  %v1762_v25 = vmul.f32 1.442695, %v1751_v39 }
 0x265   : > { %v1826_v61 = vrot.slane %v1825_v6, 1  ;;  %v1780_v0 = vrot.slane %v1779_v9, 4  ;;  %v4342_v16 = vpop.eup %3495  ;;  %v1739_v60 = vrot.slane %v1738_v41, 1 }
 0x266   : > { %v1766_v45 = vmul.f32 1.442695, %v1753_v18  ;;  %v1772_v14 = vsel %vm1691_vm12, %v4342_v16, 0.0  ;;  %3501 = vpow2.f32 %v1762_v25  ;;  %v3498_v53 = vpop.eup %3497 }
 0x267   : > { %v1827_v42 = vadd.f32 %v1826_v61, %v1825_v6  ;;  %v1781_v43 = vadd.f32 %v1780_v0, %v1779_v9  ;;  %v1773_v11 = vrot.slane %v1772_v14, 4  ;;  %v1740_v28 = vmax.f32 %v1738_v41, %v1739_v60 }
 0x268   : > { %v3500_v20 = vpop.eup %3499  ;;  %v1838_v8 = vmul.f32 %v3498_v53, %v4292_v54 }
 0x269   : > { %3503 = vrcp.f32 %v1827_v42  ;;  %v1782_v19 = vrot.slane %v1781_v43, 2  ;;  %v1774_v55 = vadd.f32 %v1773_v11, %v1772_v14  ;;  %v1754_v7 = vsub.f32 %v1689_v46, %v1740_v28 }
 0x26a   : > { %3505 = vpow2.f32 %v1766_v45  ;;  %v1840_v23 = vmul.f32 %v3500_v20, %v4308_v4  ;;  %v1846_v54 = vmul.f32 %v1838_v8, %v4363_v24 }
 0x26b   : > { %v1783_v50 = vadd.f32 %v1782_v19, %v1781_v43  ;;  %v1775_v51 = vrot.slane %v1774_v55, 2  ;;  %v1768_v56 = vmul.f32 1.442695, %v1754_v7 }
 0x26c   : > { %v4349_v2 = vpop.eup %3501  ;;  %v1848_v4 = vmul.f32 %v1840_v23, %v4363_v24  ;;  %v1866_v5 = vsel %vm1691_vm12, %v1846_v54, 0.0 }
 0x26d   : > { %v1784_v33 = vrot.slane %v1783_v50, 1  ;;  %v1776_v57 = vadd.f32 %v1775_v51, %v1774_v55  ;;  %3507 = vpow2.f32 %v1768_v56  ;;  %v1793_v15 = vsel %vm1691_vm12, %v4349_v2, 0.0 }
 0x26e   : > { %v1794_v31 = vrot.slane %v1793_v15, 4  ;;  %v1880_v44 = vsel %vm1691_vm12, %v1848_v4, 0.0  ;;  %v1867_v61 = vrot.slane %v1866_v5, 4 }
 0x26f   : > { %v3504_v12 = vpop.eup %3503  ;;  %v1785_v17 = vadd.f32 %v1784_v33, %v1783_v50  ;;  %v1777_v36 = vrot.slane %v1776_v57, 1  ;;  %v1881_v0 = vrot.slane %v1880_v44, 4 }
 0x270   : > { %v4357_v13 = vpop.eup %3505  ;;  %v1795_v22 = vadd.f32 %v1794_v31, %v1793_v15  ;;  %v1843_v29 = vmul.f32 %v3504_v12, %v4324_v26  ;;  %v1868_v19 = vadd.f32 %v1867_v61, %v1866_v5 }
 0x271   : > { %3509 = vrcp.f32 %v1785_v17  ;;  %v1807_v46 = vsel %vm1691_vm12, %v4357_v13, 0.0  ;;  %v1778_v34 = vadd.f32 %v1777_v36, %v1776_v57 }
 0x272   : > { %v1808_v38 = vrot.slane %v1807_v46, 4  ;;  %v1796_v49 = vrot.slane %v1795_v22, 2  ;;  %v1851_v1 = vmul.f32 %v1843_v29, %v4363_v24  ;;  %v1869_v20 = vrot.slane %v1868_v19, 2 }
 0x273   : > { %v4366_v59 = vpop.eup %3507  ;;  %3511 = vrcp.f32 %v1778_v34 }
 0x274   : > { %v1809_v52 = vadd.f32 %v1808_v38, %v1807_v46  ;;  %v1814_v35 = vsel %vm1691_vm12, %v4366_v59, 0.0  ;;  %v1797_v40 = vadd.f32 %v1796_v49, %v1795_v22  ;;  %v1901_v9 = vsel %vm1691_vm12, %v1851_v1, 0.0 }
 0x275   : > { %v1815_v48 = vrot.slane %v1814_v35, 4  ;;  %v1902_v60 = vrot.slane %v1901_v9, 4  ;;  %v1870_v34 = vadd.f32 %v1869_v20, %v1868_v19 }
 0x276   : > { %v1810_v27 = vrot.slane %v1809_v52, 2  ;;  %v1798_v30 = vrot.slane %v1797_v40, 1 }
 0x277   : > { %v3510_v62 = vpop.eup %3509  ;;  %v1816_v32 = vadd.f32 %v1815_v48, %v1814_v35  ;;  %v1903_v7 = vadd.f32 %v1902_v60, %v1901_v9 }
 0x278   : > { %v1837_v26 = vmul.f32 %v3510_v62, %v4334_v37  ;;  %v1811_v10 = vadd.f32 %v1810_v27, %v1809_v52  ;;  %v1799_v3 = vadd.f32 %v1798_v30, %v1797_v40  ;;  %v1871_v27 = vrot.slane %v1870_v34, 1 }
 0x279   : > { %v3512_v47 = vpop.eup %3511  ;;  %v1817_v39 = vrot.slane %v1816_v32, 2  ;;  %v1904_v17 = vrot.slane %v1903_v7, 2 }
 0x27a   : > { %v1845_v63 = vmul.f32 %v1837_v26, %v4363_v24  ;;  %v1812_v6 = vrot.slane %v1811_v10, 1  ;;  %v1836_v18 = vmul.f32 %v3512_v47, %v4342_v16  ;;  %3513 = vrcp.f32 %v1799_v3 }
 0x27b   : > { %v1818_v58 = vadd.f32 %v1817_v39, %v1816_v32  ;;  %v1882_v16 = vadd.f32 %v1881_v0, %v1880_v44  ;;  %v1905_v29 = vadd.f32 %v1904_v17, %v1903_v7 }
 0x27c   : > { %v1859_v41 = vsel %vm1691_vm12, %v1845_v63, 0.0  ;;  %v1813_v37 = vadd.f32 %v1812_v6, %v1811_v10  ;;  %v1844_v45 = vmul.f32 %v1836_v18, %v4363_v24  ;;  %v4395_v63 = vadd.f32 %v1871_v27, %v1870_v34  ;;  %v1913_v18 = vpop.permute.xlu0 %1912 }
 0x27d   : > { %v1860_v25 = vrot.slane %v1859_v41, 4  ;;  %v1819_v42 = vrot.slane %v1818_v58, 1  ;;  %v1883_v33 = vrot.slane %v1882_v16, 2  ;;  %v1906_v1 = vrot.slane %v1905_v29, 1 }
 0x27e   : > { %3515 = vrcp.f32 %v1813_v37  ;;  %v1852_v14 = vsel %vm1691_vm12, %v1844_v45, 0.0 }
 0x27f   : > { %v1861_v43 = vadd.f32 %v1860_v25, %v1859_v41  ;;  %v1853_v11 = vrot.slane %v1852_v14, 4  ;;  %v1820_v28 = vadd.f32 %v1819_v42, %v1818_v58  ;;  %v1884_v22 = vadd.f32 %v1883_v33, %v1882_v16 }
 0x280   : > { %v3514_v55 = vpop.eup %3513  ;;  %v4399_v3 = vadd.f32 %v1906_v1, %v1905_v29  ;;  %v1917_v25 = vmul.f32 %v1913_v18, %v4395_v63 }
 0x281   : > { %v1854_v50 = vadd.f32 %v1853_v11, %v1852_v14  ;;  %3517 = vrcp.f32 %v1820_v28  ;;  %v1862_v53 = vrot.slane %v1861_v43, 2  ;;  %v1839_v51 = vmul.f32 %v3514_v55, %v4349_v2  ;;  %v1928_v14 = vpop.permute.xlu1 %1927 }
 0x282   : > { %v1885_v48 = vrot.slane %v1884_v22, 1  ;;  %v1932_v7 = vadd.f32 %v1928_v14, %v1917_v25 }
 0x283   : > { %v1855_v21 = vrot.slane %v1854_v50, 2  ;;  %v1847_v57 = vmul.f32 %v1839_v51, %v4363_v24  ;;  %v1863_v15 = vadd.f32 %v1862_v53, %v1861_v43  ;;  %v1922_v43 = vmul.f32 %v1913_v18, %v4399_v3 }
 0x284   : > { %v3516_v56 = vpop.eup %3515  ;;  %v1940_v17 = vsel %vm1691_vm12, %v1932_v7, -inf }
 0x285   : > { %v1841_v12 = vmul.f32 %v3516_v56, %v4357_v13  ;;  %v1873_v36 = vsel %vm1691_vm12, %v1847_v57, 0.0  ;;  %v1856_v23 = vadd.f32 %v1855_v21, %v1854_v50  ;;  %v1864_v54 = vrot.slane %v1863_v15, 1 }
 0x286   : > { %v1874_v46 = vrot.slane %v1873_v36, 4  ;;  %v1937_v51 = vadd.f32 %v1928_v14, %v1922_v43 }
 0x287   : > { %v1849_v31 = vmul.f32 %v1841_v12, %v4363_v24  ;;  %v3518_v8 = vpop.eup %3517  ;;  %v1857_v4 = vrot.slane %v1856_v23, 1  ;;  %v4391_v32 = vadd.f32 %v1864_v54, %v1863_v15 }
 0x288   : > { %v1842_v38 = vmul.f32 %v3518_v8, %v4366_v59  ;;  %v1875_v49 = vadd.f32 %v1874_v46, %v1873_v36 }
 0x289   : > { %v1887_v2 = vsel %vm1691_vm12, %v1849_v31, 0.0  ;;  %v4393_v59 = vadd.f32 %v1857_v4, %v1856_v23  ;;  %v1916_v41 = vmul.f32 %v1913_v18, %v4391_v32  ;;  %v1948_v31 = vsel %vm1691_vm12, %v1937_v51, -inf }
 0x28a   : > { %v1888_v52 = vrot.slane %v1887_v2, 4  ;;  %v1850_v13 = vmul.f32 %v1842_v38, %v4363_v24  ;;  %v1876_v35 = vrot.slane %v1875_v49, 2  ;;  %v4397_v24 = vadd.f32 %v1885_v48, %v1884_v22 }
 0x28b   : > { %v1915_v61 = vmul.f32 %v1913_v18, %v4393_v59  ;;  %v1931_v11 = vadd.f32 %v1928_v14, %v1916_v41 }
 0x28c   : > { %v1889_v40 = vadd.f32 %v1888_v52, %v1887_v2  ;;  %v1894_v62 = vsel %vm1691_vm12, %v1850_v13, 0.0  ;;  %v1877_v26 = vadd.f32 %v1876_v35, %v1875_v49  ;;  %v1919_v60 = vmul.f32 %v1913_v18, %v4397_v24 }
 0x28d   : > { %v1895_v10 = vrot.slane %v1894_v62, 4  ;;  %v1930_v19 = vadd.f32 %v1928_v14, %v1915_v61  ;;  %v1939_v33 = vsel %vm1691_vm12, %v1931_v11, -inf }
 0x28e   : > { %v1890_v30 = vrot.slane %v1889_v40, 2  ;;  %v1878_v5 = vrot.slane %v1877_v26, 1  ;;  %v1934_v53 = vadd.f32 %v1928_v14, %v1919_v60 }
 0x28f   : > { %v1896_v47 = vadd.f32 %v1895_v10, %v1894_v62  ;;  %v1938_v20 = vsel %vm1691_vm12, %v1930_v19, -inf }
 0x290   : > { %v1891_v44 = vadd.f32 %v1890_v30, %v1889_v40  ;;  %v4401_v6 = vadd.f32 %v1878_v5, %v1877_v26  ;;  %v1942_v15 = vsel %vm1691_vm12, %v1934_v53, -inf }
 0x291   : > { %v1897_v9 = vrot.slane %v1896_v47, 2  ;;  %v1943_v8 = vmax.f32 %v1938_v20, %v1942_v15 }
 0x292   : > { %v1892_v39 = vrot.slane %v1891_v44, 1  ;;  %v1918_v0 = vmul.f32 %v1913_v18, %v4401_v6 }
 0x293   : > { %v1898_v58 = vadd.f32 %v1897_v9, %v1896_v47 }
 0x294   : > { %v4404_v37 = vadd.f32 %v1892_v39, %v1891_v44  ;;  %v1933_v16 = vadd.f32 %v1928_v14, %v1918_v0 }
 0x295   : > { %v1899_v45 = vrot.slane %v1898_v58, 1 }
 0x296   : > { %v1920_v42 = vmul.f32 %v1913_v18, %v4404_v37  ;;  %v1941_v57 = vsel %vm1691_vm12, %v1933_v16, -inf }
 0x297   : > { %v4412_v28 = vadd.f32 %v1899_v45, %v1898_v58  ;;  %v1949_v46 = vmax.f32 %v1941_v57, %v1948_v31 }
 0x298   : > { %v1935_v55 = vadd.f32 %v1928_v14, %v1920_v42 }
 0x299   : > { %v1921_v50 = vmul.f32 %v1913_v18, %v4412_v28 }
 0x29a   : > { %v1944_v56 = vsel %vm1691_vm12, %v1935_v55, -inf }
 0x29b   : > { %v1936_v21 = vadd.f32 %v1928_v14, %v1921_v50  ;;  %v1945_v12 = vmax.f32 %v1939_v33, %v1944_v56 }
 0x29d   : > { %v1946_v36 = vsel %vm1691_vm12, %v1936_v21, -inf  ;;  %v1950_v34 = vmax.f32 %v1943_v8, %v1945_v12 }
 0x29e   : > { %v1947_v23 = vmax.f32 %v1940_v17, %v1946_v36 }
 0x2a0   : > { %v1951_v22 = vmax.f32 %v1947_v23, %v1949_v46 }
 0x2a2   : > { %v1952_v2 = vmax.f32 %v1950_v34, %v1951_v22 }
 0x2a4   : > { %v1953_v38 = vsub.f32 %v1930_v19, %v1952_v2  ;;  %v1954_v29 = vsub.f32 %v1931_v11, %v1952_v2  ;;  %v1955_v49 = vsub.f32 %v1932_v7, %v1952_v2  ;;  %v1956_v52 = vsub.f32 %v1933_v16, %v1952_v2 }
 0x2a5   : > { %v1957_v54 = vsub.f32 %v1934_v53, %v1952_v2  ;;  %v1958_v13 = vsub.f32 %v1935_v55, %v1952_v2  ;;  %v1959_v4 = vsub.f32 %v1936_v21, %v1952_v2  ;;  %v1960_v48 = vsub.f32 %v1937_v51, %v1952_v2 }
 0x2a6   : > { %v1961_v35 = vmul.f32 1.442695, %v1953_v38  ;;  %v1963_v40 = vmul.f32 1.442695, %v1954_v29  ;;  %v1965_v27 = vmul.f32 1.442695, %v1955_v49 }
 0x2a7   : > { %v1967_v62 = vmul.f32 1.442695, %v1956_v52  ;;  %v1969_v1 = vmul.f32 1.442695, %v1957_v54  ;;  %v1971_v26 = vmul.f32 1.442695, %v1958_v13 }
 0x2a8   : > { %3519 = vpow2.f32 %v1961_v35  ;;  %v1973_v30 = vmul.f32 1.442695, %v1959_v4  ;;  %v1975_v10 = vmul.f32 1.442695, %v1960_v48 }
 0x2a9   : > { %3521 = vpow2.f32 %v1963_v40 }
 0x2aa   : > { %3523 = vpow2.f32 %v1965_v27 }
 0x2ab   : > { %3525 = vpow2.f32 %v1967_v62  ;;  %v2084_v62 = vpop.permute.xlu2 %2083 }
 0x2ac   : > { %3527 = vpow2.f32 %v1969_v1 }
 0x2ad   : > { %3529 = vpow2.f32 %v1971_v26  ;;  %v2079_v26 = vpop.permute.xlu1 %2078 }
 0x2ae   : > { %v3520_v5 = vpop.eup %3519  ;;  %3531 = vpow2.f32 %v1973_v30 }
 0x2af   : > { %v3522_v44 = vpop.eup %3521  ;;  %3533 = vpow2.f32 %v1975_v10 }
 0x2b0   : > { %v3524_v47 = vpop.eup %3523  ;;  %v1985_v39 = vrot.slane %v3522_v44, 7 }
 0x2b1   : > { %v3526_v9 = vpop.eup %3525  ;;  %v1988_v18 = vrot.slane %v3524_v47, 6 }
 0x2b2   : > { %v3528_v41 = vpop.eup %3527  ;;  %v1987_v58 = vsel %vm1986_vm13, %v1985_v39, %v3520_v5  ;;  %v1991_v61 = vrot.slane %v3526_v9, 5 }
 0x2b3   : > { %v3530_v0 = vpop.eup %3529  ;;  %v1990_v25 = vsel %vm1989_vm11, %v1988_v18, %v1987_v58  ;;  %v1994_v45 = vrot.slane %v3528_v41, 4  ;;  %v2113_v39 = vpop.permute.xlu2 %2112 }
 0x2b4   : > { %v3532_v60 = vpop.eup %3531  ;;  %v1993_v42 = vsel %vm1992_vm14, %v1991_v61, %v1990_v25  ;;  %v1997_v43 = vrot.slane %v3530_v0, 3 }
 0x2b5   : > { %v3534_v14 = vpop.eup %3533  ;;  %v1996_v11 = vsel %vm1995_vm15, %v1994_v45, %v1993_v42  ;;  %v2000_v19 = vrot.slane %v3532_v60, 2  ;;  %v2108_v58 = vpop.permute.xlu1 %2107  ;;  %v2120_v45 = vld [vmem:[%s4740_s12 + $0x8] sm:$0xff] }
 0x2b6   : > { %v1999_v16 = vsel %vm1998_vm0, %v1997_v43, %v1996_v11  ;;  %v2003_v55 = vrot.slane %v3534_v14, 1 }
 0x2b7   : > { %v2002_v7 = vsel %vm2001_vm1, %v2000_v19, %v1999_v16 }
 0x2b8   : > { %v2005_v50 = vsel %vm2004_vm2, %v2003_v55, %v2002_v7 }
 0x2b9   : > { %v2007_v53 = vsel %vm1691_vm12, %v2005_v50, 0.0 }
 0x2ba   : > { %v2008_v51 = vrot.slane %v2007_v53, 4 }
 0x2bb   : > { %v2069_v11 = vpop.permute.xlu2 %2068 }
 0x2bc   : > { %v2009_v56 = vadd.f32 %v2008_v51, %v2007_v53 }
 0x2bd   : > { %v2098_v53 = vpop.permute.xlu1 %2097 }
 0x2be   : > { %v2010_v21 = vrot.slane %v2009_v56, 2 }
 0x2c0   : > { %v2011_v20 = vadd.f32 %v2010_v21, %v2009_v56 }
 0x2c2   : > { %v2012_v33 = vrot.slane %v2011_v20, 1 }
 0x2c4   : > { %v2013_v57 = vadd.f32 %v2012_v33, %v2011_v20 }
 0x2c6   : > { %3535 = vrcp.f32 %v2013_v57 }
 0x2cc   : > { %v3536_v12 = vpop.eup %3535 }
 0x2cd   : > { %v2015_v17 = vperm.slane %v3536_v12, 0  ;;  %v2121_v12 = vld [vmem:[%s4740_s12 + $0x10] sm:$0xff] }
 0x2cf   : > { %v2016_v15 = vmul.f32 %v3520_v5, %v2015_v17  ;;  %v2017_v36 = vmul.f32 %v3522_v44, %v2015_v17  ;;  %v2018_v31 = vmul.f32 %v3524_v47, %v2015_v17  ;;  %v2019_v8 = vmul.f32 %v3526_v9, %v2015_v17  ;;  %v2119_v44 = vld [vmem:[%s4740_s12] sm:$0xff] }
 0x2d0   : > { %v2020_v23 = vmul.f32 %v3528_v41, %v2015_v17  ;;  %v2021_v46 = vmul.f32 %v3530_v0, %v2015_v17  ;;  %v2022_v34 = vmul.f32 %v3532_v60, %v2015_v17  ;;  %v2023_v2 = vmul.f32 %v3534_v14, %v2015_v17  ;;  %v2074_v41 = vpop.permute.xlu0 %2073 }
 0x2d1   : > { %v2025_v22 = vmul.f32 %v2017_v36, %v4391_v32  ;;  %v2026_v38 = vmul.f32 %v2018_v31, %v4395_v63  ;;  %v2027_v29 = vmul.f32 %v2019_v8, %v4401_v6  ;;  %v2024_v52 = vmul.f32 %v2016_v15, %v4393_v59 }
 0x2d2   : > { %v2028_v49 = vmul.f32 %v2020_v23, %v4397_v24  ;;  %v2029_v13 = vmul.f32 %v2021_v46, %v4404_v37  ;;  %v2030_v35 = vmul.f32 %v2022_v34, %v4412_v28  ;;  %v2031_v40 = vmul.f32 %v2023_v2, %v4399_v3 }
 0x2d3   : > { %v2040_v54 = vrot.slane %v2025_v22, 7  ;;  %v2042_v4 = vrot.slane %v2026_v38, 6  ;;  %v2044_v32 = vrot.slane %v2027_v29, 5  ;;  %v2148_v18 = vsel %vm1435_vm4, %v2119_v44, 0 }
 0x2d4   : > { %v2046_v63 = vrot.slane %v2028_v49, 4  ;;  %v2048_v24 = vrot.slane %v2029_v13, 3  ;;  %v2050_v1 = vrot.slane %v2030_v35, 2  ;;  %v2052_v30 = vrot.slane %v2031_v40, 1 }
 0x2d5   : > { %v2041_v27 = vsel %vm1986_vm13, %v2040_v54, %v2024_v52  ;;  %v4451_v0 = vand.u32 4294901760, %v2148_v18  ;;  %v2151_v14 = vsel %vm1435_vm4, %v2120_v45, 0  ;;  %v2154_v2 = vsel %vm1435_vm4, %v2121_v12, 0 }
 0x2d6   : > { %v2043_v48 = vsel %vm1989_vm11, %v2042_v4, %v2041_v27  ;;  %v4461_v56 = vand.u32 4294901760, %v2151_v14  ;;  %v4475_v4 = vand.u32 4294901760, %v2154_v2 }
 0x2d7   : > { %v2045_v6 = vsel %vm1992_vm14, %v2044_v32, %v2043_v48  ;;  %v4457_v42 = vsub.f32 %v2148_v18, %v4451_v0  ;;  %v2122_v32 = vld [vmem:[%s4740_s12 + $0x18] sm:$0xff] }
 0x2d8   : > { %v2047_v59 = vsel %vm1995_vm15, %v2046_v63, %v2045_v6  ;;  %v2103_v50 = vpop.permute.xlu0 %2102  ;;  %v2188_v23 = vsub.f32 %v2151_v14, %v4461_v56  ;;  %v2196_v6 = vsub.f32 %v2154_v2, %v4475_v4 }
 0x2d9   : > { %v2049_v37 = vsel %vm1998_vm0, %v2048_v24, %v2047_v59  ;;  %v2181_v51 = vand.u32 4294901760, %v4457_v42 }
 0x2da   : > { %v2051_v28 = vsel %vm2001_vm1, %v2050_v1, %v2049_v37  ;;  %v2189_v13 = vand.u32 4294901760, %v2188_v23  ;;  %v2157_v1 = vsel %vm1435_vm4, %v2122_v32, 0 }
 0x2db   : > { %v2053_v3 = vsel %vm2004_vm2, %v2052_v30, %v2051_v28  ;;  %v2182_v8 = vsub.f32 %v4457_v42, %v2181_v51  ;;  %v2197_v30 = vand.u32 4294901760, %v2196_v6  ;;  %v2203_v28 = vand.u32 4294901760, %v2157_v1 }
 0x2dc   : > { %v2055_v10 = vsel %vm1691_vm12, %v2053_v3, 0.0 }
 0x2dd   : > { %v2056_v5 = vrot.slane %v2055_v10, 4  ;;  %v2183_v54 = vand.u32 4294901760, %v2182_v8 }
 0x2df   : > { %v2057_v47 = vadd.f32 %v2056_v5, %v2055_v10  ;;  %v2198_v10 = vsub.f32 %v2196_v6, %v2197_v30  ;;  %v2204_v5 = vsub.f32 %v2157_v1, %v2203_v28 }
 0x2e1   : > { %v2058_v9 = vrot.slane %v2057_v47, 2  ;;  %v2199_v44 = vand.u32 4294901760, %v2198_v10 }
 0x2e3   : > { %v2059_v61 = vadd.f32 %v2058_v9, %v2057_v47  ;;  %v2205_v47 = vand.u32 4294901760, %v2204_v5 }
 0x2e5   : > { %v2060_v25 = vrot.slane %v2059_v61, 1 }
 0x2e7   : > { %v2061_v60 = vadd.f32 %v2060_v25, %v2059_v61 }
 0x2e9   : > { %v2086_v43 = vperm.slane %v2061_v60, 0 }
 0x2eb   : > { %v2088_v19 = vmul.f32 %v2086_v43, %v2074_v41  ;;  %v2089_v16 = vmul.f32 %v2086_v43, %v2079_v26  ;;  %v2090_v55 = vmul.f32 %v2086_v43, %v2084_v62  ;;  %v2087_v7 = vmul.f32 %v2086_v43, %v2069_v11 }
 0x2ec   : > { %v2190_v62 = vsub.f32 %v2188_v23, %v2189_v13 }
 0x2ed   : > { %v2116_v21 = vadd.f32 %v2103_v50, %v2088_v19  ;;  %v2117_v20 = vadd.f32 %v2108_v58, %v2089_v16  ;;  %v2118_v33 = vadd.f32 %v2113_v39, %v2090_v55  ;;  %v2115_v57 = vadd.f32 %v2098_v53, %v2087_v7  ;;  %v2130_v16 = vpop.permute.xlu2 %2129  ;;  %v2135_v50 = vpop.permute.xlu0 %2134 }
 0x2ee   : > { %v2191_v37 = vand.u32 4294901760, %v2190_v62  ;;  %v2206_v39 = vsub.f32 %v2204_v5, %v2205_v47 }
 0x2ef   : > { %v4466_v17 = vand.u32 4294901760, %v2116_v21  ;;  %v2173_v15 = vand.u32 4294901760, %v2117_v20  ;;  %v2171_v36 = vand.u32 4294901760, %v2118_v33  ;;  %v4468_v31 = vand.u32 4294901760, %v2115_v57 }
 0x2f0   : > { %v2207_v9 = vand.u32 4294901760, %v2206_v39 }
 0x2f1   : > { %v2237_v46 = vsub.f32 %v2116_v21, %v4466_v17  ;;  %v2231_v34 = vsub.f32 %v2117_v20, %v2173_v15  ;;  %v2225_v22 = vsub.f32 %v2118_v33, %v2171_v36  ;;  %2172 = vmatpush.msrb.mxu2 %v2171_v36  ;;  %2323 = vmatpush.msra.mxu1 %v2171_v36 }
 0x2f2   : > { %v2243_v38 = vsub.f32 %v2115_v57, %v4468_v31 }
 0x2f3   : > { %v2226_v29 = vand.u32 4294901760, %v2225_v22  ;;  %2174 = vmatpush.msrb.mxu2 %v2173_v15  ;;  %2279 = vmatpush.msra.mxu0 %v2225_v22  ;;  %v2232_v49 = vand.u32 4294901760, %v2231_v34  ;;  %v2238_v52 = vand.u32 4294901760, %v2237_v46 }
 0x2f4   : > { %2325 = vmatpush.msra.mxu1 %v2173_v15  ;;  %v2244_v27 = vand.u32 4294901760, %v2243_v38 }
 0x2f5   : > { %2176 = vmatpush.msrb.mxu2 %v4466_v17  ;;  %2282 = vmatpush.msra.mxu0 %v2231_v34  ;;  %v2227_v35 = vsub.f32 %v2225_v22, %v2226_v29  ;;  %v2233_v40 = vsub.f32 %v2231_v34, %v2232_v49  ;;  %v2239_v63 = vsub.f32 %v2237_v46, %v2238_v52 }
 0x2f6   : > { %2327 = vmatpush.msra.mxu1 %v4466_v17  ;;  %v2245_v59 = vsub.f32 %v2243_v38, %v2244_v27 }
 0x2f7   : > { %2178 = vmatpush.msrb.mxu2 %v4468_v31  ;;  %2285 = vmatpush.msra.mxu0 %v2237_v46  ;;  %v2228_v48 = vand.u32 4294901760, %v2227_v35  ;;  %v2234_v24 = vand.u32 4294901760, %v2233_v40  ;;  %v2240_v26 = vand.u32 4294901760, %v2239_v63 }
 0x2f8   : > { %2329 = vmatpush.msra.mxu1 %v4468_v31  ;;  %2184 = vmatmul.f32.vlgmr.msrb.gmra.mxu2 %v2183_v54  ;;  %v2246_v3 = vand.u32 4294901760, %v2245_v59 }
 0x2f9   : > { %2370 = vmatpush.msra.mxu2 %v2226_v29  ;;  %2229 = vmatpush.msrb.mxu3 %v2228_v48  ;;  %v3590_v29 = vmov 32.0  }
 0x2fa   : > { %2288 = vmatpush.msra.mxu0 %v2243_v38  ;;  %2333 = vmatmul.f32.vlgmr.msra.gmra.mxu1 %v2181_v51  ;;  %v2140_v51 = vpop.permute.xlu1 %2139  ;;  %3537 = vrcp.f32 %v3590_v29 }
 0x2fb   : > { %2374 = vmatpush.msra.mxu2 %v2232_v49  ;;  %2235 = vmatpush.msrb.mxu3 %v2234_v24 }
 0x2fc   : > { %2291 = vmatmul.f32.vlgmr.msra.gmra.mxu0 %v4457_v42 }
 0x2fd   : > { %2378 = vmatpush.msra.mxu2 %v2238_v52  ;;  %2241 = vmatpush.msrb.mxu3 %v2240_v26 }
 0x2ff   : > { %2382 = vmatpush.msra.mxu2 %v2244_v27  ;;  %2247 = vmatpush.msrb.mxu3 %v2246_v3 }
 0x300   : > { %2192 = vmatmul.f32.gmra.mxu2 %v2191_v37  ;;  %2249 = vmatmul.f32.vlgmr.msrb.gmra.mxu3 %v4451_v0  ;;  %v3538_v62 = vpop.eup %3537 }
 0x301   : > { %2413 = vmatpush.msra.mxu3 %v2171_v36  ;;  %vm2463_vm3 = vweird.f32 %v3538_v62 }
 0x302   : > { %2339 = vmatmul.f32.gmra.mxu1 %v2189_v13 }
 0x303   : > { %2415 = vmatpush.msra.mxu3 %v2173_v15 }
 0x304   : > { %2296 = vmatmul.f32.gmra.mxu0 %v2188_v23 }
 0x305   : > { %2417 = vmatpush.msra.mxu3 %v4466_v17 }
 0x307   : > { %2419 = vmatpush.msra.mxu3 %v4468_v31  ;;  %v2145_v31 = vpop.permute.xlu2 %2144 }
 0x308   : > { %2200 = vmatmul.f32.gmra.mxu2 %v2199_v44  ;;  %2253 = vmatmul.f32.gmra.mxu3 %v4461_v56 }
 0x30a   : > { %2345 = vmatmul.f32.gmra.mxu1 %v2197_v30  ;;  %v2459_v30 = vmul.f32 32.0, %v3538_v62 }
 0x30c   : > { %2301 = vmatmul.f32.gmra.mxu0 %v2196_v6 }
 0x310   : > { %2208 = vmatmul.f32.gmra.mxu2 %v2207_v9  ;;  %2257 = vmatmul.f32.gmra.mxu3 %v4475_v4 }
 0x312   : > { %2351 = vmatmul.f32.gmra.mxu1 %v2205_v47  ;;  %v2460_v47 = vsub.f32 1.0, %v2459_v30 }
 0x314   : > { %2306 = vmatmul.f32.gmra.mxu0 %v2204_v5 }
 0x318   : > { %2261 = vmatmul.f32.gmra.mxu3 %v2203_v28  ;;  %2384 = vmatmul.f32.vlgmr.msra.gmra.mxu2 %v4451_v0 }
 0x320   : > { %2388 = vmatmul.f32.gmra.mxu2 %v4461_v56  ;;  %2421 = vmatmul.f32.vlgmr.msra.gmra.mxu3 %v4451_v0 }
 0x328   : > { %2392 = vmatmul.f32.gmra.mxu2 %v4475_v4  ;;  %2425 = vmatmul.f32.gmra.mxu3 %v4461_v56 }
 0x330   : > { %2396 = vmatmul.f32.gmra.mxu2 %v2203_v28  ;;  %2429 = vmatmul.f32.gmra.mxu3 %v4475_v4 }
 0x338   : > { %2433 = vmatmul.f32.gmra.mxu3 %v2203_v28 }
 0x377   : > { %v2334_v43 = vpop.f32.mrf.mxu1 }
 0x379   : > { %v2292_v45 = vpop.f32.mrf.mxu0 }
 0x37b   : > { %v2185_v18 = vpop.f32.mrf.mxu2 }
 0x37c   : > { %v2186_v21 = vadd.f32 %v2185_v18, %v2130_v16  ;;  %v2461_v18 = vmul.f32 %v3538_v62, %v2460_v47 }
 0x37f   : > { %v2340_v19 = vpop.f32.mrf.mxu1 }
 0x381   : > { %v2297_v0 = vpop.f32.mrf.mxu0 }
 0x383   : > { %v2193_v41 = vpop.f32.mrf.mxu2  ;;  %v2250_v58 = vpop.f32.mrf.mxu3 }
 0x384   : > { %v2194_v53 = vadd.f32 %v2193_v41, %v2135_v50  ;;  %v2251_v57 = vadd.f32 %v2250_v58, %v2186_v21 }
 0x386   : > { %v2293_v23 = vadd.f32 %v2292_v45, %v2251_v57 }
 0x387   : > { %v2346_v17 = vpop.f32.mrf.mxu1 }
 0x388   : > { %v2335_v49 = vadd.f32 %v2334_v43, %v2293_v23 }
 0x389   : > { %v2302_v56 = vpop.f32.mrf.mxu0 }
 0x38b   : > { %v2201_v61 = vpop.f32.mrf.mxu2  ;;  %v2254_v25 = vpop.f32.mrf.mxu3 }
 0x38c   : > { %v2202_v20 = vadd.f32 %v2201_v61, %v2140_v51  ;;  %v2255_v33 = vadd.f32 %v2254_v25, %v2194_v53  ;;  %v2462_v61 = vadd.f32 %v3538_v62, %v2461_v18 }
 0x38e   : > { %v2298_v36 = vadd.f32 %v2297_v0, %v2255_v33 }
 0x38f   : > { %v2352_v32 = vpop.f32.mrf.mxu1 }
 0x390   : > { %v2341_v22 = vadd.f32 %v2340_v19, %v2298_v36 }
 0x391   : > { %v2307_v38 = vpop.f32.mrf.mxu0 }
 0x393   : > { %v2209_v60 = vpop.f32.mrf.mxu2  ;;  %v2258_v42 = vpop.f32.mrf.mxu3 }
 0x394   : > { %v2259_v12 = vadd.f32 %v2258_v42, %v2202_v20  ;;  %v2210_v46 = vadd.f32 %v2209_v60, %v2145_v31  ;;  %v4502_v60 = vsel %vm2463_vm3, %v3538_v62, %v2462_v61 }
 0x396   : > { %v2303_v34 = vadd.f32 %v2302_v56, %v2259_v12 }
 0x398   : > { %v2347_v52 = vadd.f32 %v2346_v17, %v2303_v34  ;;  %v2521_v34 = vpop.permute.xlu0 %2520 }
 0x39b   : > { %v2262_v14 = vpop.f32.mrf.mxu3  ;;  %v2385_v11 = vpop.f32.mrf.mxu2 }
 0x39c   : > { %v2263_v2 = vadd.f32 %v2262_v14, %v2210_v46  ;;  %v2386_v4 = vadd.f32 %v2385_v11, %v2335_v49  ;;  %v2545_v49 = vpop.permute.xlu2 %2544 }
 0x39e   : > { %v2308_v35 = vadd.f32 %v2307_v38, %v2263_v2 }
 0x3a0   : > { %v2353_v24 = vadd.f32 %v2352_v32, %v2308_v35 }
 0x3a3   : > { %v2389_v55 = vpop.f32.mrf.mxu2  ;;  %v2422_v7 = vpop.f32.mrf.mxu3 }
 0x3a4   : > { %v2390_v54 = vadd.f32 %v2389_v55, %v2341_v22  ;;  %v2423_v48 = vadd.f32 %v2422_v7, %v2386_v4  ;;  %v2516_v22 = vpop.permute.xlu1 %2515  ;;  %v2506_v62 = vpop.permute.xlu2 %2505 }
 0x3a6   : > { %v2445_v1 = vsel %vm1691_vm12, %v2423_v48, 0.0 }
 0x3ab   : > { %v2426_v15 = vpop.f32.mrf.mxu3  ;;  %v2393_v8 = vpop.f32.mrf.mxu2 }
 0x3ac   : > { %v2394_v40 = vadd.f32 %v2393_v8, %v2347_v52  ;;  %v2427_v27 = vadd.f32 %v2426_v15, %v2390_v54  ;;  %v2511_v52 = vpop.permute.xlu0 %2510  ;;  %v2540_v4 = vpop.permute.xlu1 %2539 }
 0x3ae   : > { %v2446_v59 = vsel %vm1691_vm12, %v2427_v27, 0.0 }
 0x3af   : > { %v2447_v28 = vadd.f32 %v2446_v59, %v2445_v1 }
 0x3b3   : > { %v2430_v13 = vpop.f32.mrf.mxu3  ;;  %v2397_v6 = vpop.f32.mrf.mxu2 }
 0x3b4   : > { %v2431_v63 = vadd.f32 %v2430_v13, %v2394_v40  ;;  %v2398_v26 = vadd.f32 %v2397_v6, %v2353_v24  ;;  %v2535_v1 = vpop.permute.xlu0 %2534 }
 0x3b6   : > { %v2448_v37 = vsel %vm1691_vm12, %v2431_v63, 0.0 }
 0x3b7   : > { %v2449_v5 = vadd.f32 %v2448_v37, %v2447_v28 }
 0x3bb   : > { %v2434_v3 = vpop.f32.mrf.mxu3 }
 0x3bc   : > { %v2435_v10 = vadd.f32 %v2434_v3, %v2398_v26  ;;  %v2530_v3 = vpop.permute.xlu1 %2529 }
 0x3be   : > { %v2450_v44 = vsel %vm1691_vm12, %v2435_v10, 0.0 }
 0x3bf   : > { %v2451_v39 = vadd.f32 %v2450_v44, %v2449_v5 }
 0x3c1   : > { %v2452_v9 = vrot.slane %v2451_v39, 4 }
 0x3c3   : > { %v2453_v41 = vadd.f32 %v2452_v9, %v2451_v39 }
 0x3c5   : > { %v2454_v58 = vrot.slane %v2453_v41, 2 }
 0x3c7   : > { %v2455_v25 = vadd.f32 %v2454_v58, %v2453_v41 }
 0x3c9   : > { %v2456_v45 = vrot.slane %v2455_v25, 1 }
 0x3cb   : > { %v2457_v42 = vadd.f32 %v2456_v45, %v2455_v25 }
 0x3cd   : > { %v2465_v43 = vmul.f32 %v4502_v60, %v2457_v42 }
 0x3cf   : > { %v2466_v14 = vsub.f32 %v2423_v48, %v2465_v43  ;;  %v2467_v11 = vsub.f32 %v2427_v27, %v2465_v43  ;;  %v2468_v0 = vsub.f32 %v2431_v63, %v2465_v43  ;;  %v2469_v19 = vsub.f32 %v2435_v10, %v2465_v43 }
 0x3d1   : > { %v2470_v16 = vmul.f32 %v2466_v14, %v2466_v14  ;;  %v2471_v55 = vmul.f32 %v2467_v11, %v2467_v11  ;;  %v2472_v7 = vmul.f32 %v2468_v0, %v2468_v0  ;;  %v2473_v50 = vmul.f32 %v2469_v19, %v2469_v19 }
 0x3d3   : > { %v2474_v53 = vsel %vm1691_vm12, %v2470_v16, 0.0  ;;  %v2475_v51 = vsel %vm1691_vm12, %v2471_v55, 0.0  ;;  %v2477_v21 = vsel %vm1691_vm12, %v2472_v7, 0.0  ;;  %v2479_v33 = vsel %vm1691_vm12, %v2473_v50, 0.0 }
 0x3d4   : > { %v2476_v56 = vadd.f32 %v2475_v51, %v2474_v53 }
 0x3d6   : > { %v2478_v20 = vadd.f32 %v2477_v21, %v2476_v56 }
 0x3d8   : > { %v2480_v57 = vadd.f32 %v2479_v33, %v2478_v20 }
 0x3da   : > { %v2481_v12 = vrot.slane %v2480_v57, 4 }
 0x3dc   : > { %v2482_v17 = vadd.f32 %v2481_v12, %v2480_v57 }
 0x3de   : > { %v2483_v15 = vrot.slane %v2482_v17, 2 }
 0x3e0   : > { %v2484_v36 = vadd.f32 %v2483_v15, %v2482_v17 }
 0x3e2   : > { %v2485_v31 = vrot.slane %v2484_v36, 1 }
 0x3e4   : > { %v2486_v8 = vadd.f32 %v2485_v31, %v2484_v36 }
 0x3e6   : > { %v2487_v23 = vmul.f32 %v2486_v8, %v4502_v60 }
 0x3e8   : > { %v2488_v46 = vadd.f32 1e-05, %v2487_v23 }
 0x3ea   : > { %3539 = vrsqrt.f32 %v2488_v46  ;;  %vm2495_vm6 = vweird.f32 %v2488_v46 }
 0x3f0   : > { %v3540_v2 = vpop.eup %3539 }
 0x3f1   : > { %v2490_v38 = vmul.f32 %v3540_v2, %v2488_v46  ;;  %vm2496_vm5 = vweird.f32 %v3540_v2 }
 0x3f2   : > { %vm2497_vm8 = vmor %vm2495_vm6, %vm2496_vm5 }
 0x3f3   : > { %v2491_v29 = vmul.f32 %v3540_v2, %v2490_v38 }
 0x3f5   : > { %v2492_v54 = vmul.f32 0.5, %v2491_v29 }
 0x3f7   : > { %v2493_v13 = vsub.f32 1.5, %v2492_v54 }
 0x3f9   : > { %v2494_v35 = vmul.f32 %v3540_v2, %v2493_v13 }
 0x3fb   : > { %v2498_v40 = vsel %vm2497_vm8, %v3540_v2, %v2494_v35 }
 0x3fc   : > { %v2499_v27 = vmul.f32 %v2498_v40, %v2466_v14  ;;  %v2500_v32 = vmul.f32 %v2498_v40, %v2467_v11  ;;  %v2501_v48 = vmul.f32 %v2498_v40, %v2468_v0  ;;  %v2502_v63 = vmul.f32 %v2498_v40, %v2469_v19 }
 0x3fe   : > { %v2524_v6 = vmul.f32 %v2511_v52, %v2500_v32  ;;  %v2525_v24 = vmul.f32 %v2516_v22, %v2501_v48  ;;  %v2526_v59 = vmul.f32 %v2521_v34, %v2502_v63  ;;  %v2523_v26 = vmul.f32 %v2506_v62, %v2499_v27 }
 0x400   : > { %v4510_v37 = vadd.f32 %v2545_v49, %v2526_v59  ;;  %v4512_v30 = vadd.f32 %v2540_v4, %v2525_v24  ;;  %v4514_v28 = vadd.f32 %v2535_v1, %v2524_v6  ;;  %v4525_v47 = vadd.f32 %v2530_v3, %v2523_v26 }
 0x402   : > { %v4517_v10 = vmul.f32 0.70710677, %v4510_v37  ;;  %v4520_v5 = vmul.f32 0.70710677, %v4512_v30  ;;  %v4523_v44 = vmul.f32 0.70710677, %v4514_v28 }
 0x403   : > { %v4537_v25 = vmul.f32 0.70710677, %v4525_v47 }
 0x404   : > { %v2570_v39 = vand.u32 2147483647, %v4517_v10  ;;  %v4529_v9 = vand.u32 2147483647, %v4520_v5  ;;  %v4532_v18 = vand.u32 2147483647, %v4523_v44 }
 0x405   : > { %v4540_v14 = vand.u32 2147483647, %v4537_v25 }
 0x406   : > { %v2574_v41 = vmul.f32 0.3275911, %v2570_v39  ;;  %v2573_v58 = vmul.f32 0.3275911, %v4529_v9  ;;  %v2572_v61 = vmul.f32 0.3275911, %v4532_v18 }
 0x407   : > { %v2571_v11 = vmul.f32 0.3275911, %v4540_v14  ;;  %v2678_v7 = vsub.f32 0.0, %v2570_v39  ;;  %v2677_v53 = vsub.f32 0.0, %v4529_v9  ;;  %v2676_v12 = vsub.f32 0.0, %v4532_v18 }
 0x408   : > { %v2578_v45 = vadd.f32 1.0, %v2574_v41  ;;  %v2577_v42 = vadd.f32 1.0, %v2573_v58  ;;  %v2576_v43 = vadd.f32 1.0, %v2572_v61 }
 0x409   : > { %v4543_v55 = vadd.f32 1.0, %v2571_v11  ;;  %v2682_v40 = vmul.f32 %v2678_v7, %v2570_v39  ;;  %v2681_v61 = vmul.f32 %v2677_v53, %v4529_v9  ;;  %v2675_v9 = vsub.f32 0.0, %v4540_v14 }
 0x40a   : > { %3541 = vrcp.f32 %v2578_v45  ;;  %v2633_v21 = vand.u32 2147483647, %v2578_v45  ;;  %v2635_v20 = vand.u32 2147483648, %v2578_v45  ;;  %vm2629_vm9 = vweird.f32 %v2578_v45 }
 0x40b   : > { %3543 = vrcp.f32 %v2577_v42  ;;  %v2618_v15 = vand.u32 2147483647, %v2577_v42  ;;  %v2620_v36 = vand.u32 2147483648, %v2577_v42  ;;  %vm2614_vm7 = vweird.f32 %v2577_v42 }
 0x40c   : > { %3545 = vrcp.f32 %v2576_v43  ;;  %vm2634_vm11 = vcmp.eq.f32.partialorder %v2633_v21, 8.507059e+37  ;;  %v2636_v46 = vor.u32 1.1754944e-38, %v2635_v20  ;;  %v2605_v34 = vand.u32 2147483648, %v2576_v43 }
 0x40d   : > { %3547 = vrcp.f32 %v4543_v55  ;;  %v2603_v38 = vand.u32 2147483647, %v2576_v43  ;;  %vm2619_vm1 = vcmp.eq.f32.partialorder %v2618_v15, 8.507059e+37  ;;  %v2621_v52 = vor.u32 1.1754944e-38, %v2620_v36 }
 0x40e   : > { %vm2599_vm2 = vweird.f32 %v2576_v43  ;;  %v2606_v48 = vor.u32 1.1754944e-38, %v2605_v34  ;;  %v2588_v1 = vand.u32 2147483647, %v4543_v55  ;;  %v2590_v26 = vand.u32 2147483648, %v4543_v55 }
 0x40f   : > { %vm2604_vm5 = vcmp.eq.f32.partialorder %v2603_v38, 8.507059e+37  ;;  %vm2584_vm8 = vweird.f32 %v4543_v55  ;;  %v2689_v11 = vmul.f32 1.442695, %v2682_v40  ;;  %v2687_v21 = vmul.f32 1.442695, %v2681_v61 }
 0x410   : > { %v3542_v0 = vpop.eup %3541  ;;  %v2554_v61 = vmul.f32 0.5, %v4510_v37  ;;  %v2552_v37 = vmul.f32 0.5, %v4514_v28 }
 0x411   : > { %v3544_v19 = vpop.eup %3543  ;;  %v2625_v16 = vmul.f32 %v3542_v0, %v2578_v45  ;;  %vm2630_vm10 = vweird.f32 %v3542_v0  ;;  %3549 = vpow2.f32 %v2689_v11  ;;  %v2553_v11 = vmul.f32 0.5, %v4512_v30 }
 0x412   : > { %v2610_v50 = vmul.f32 %v3544_v19, %v2577_v42  ;;  %v3546_v51 = vpop.eup %3545  ;;  %vm2615_vm13 = vweird.f32 %v3544_v19  ;;  %vm2631_vm14 = vmor %vm2629_vm9, %vm2630_vm10  ;;  %vm2589_vm10 = vcmp.eq.f32.partialorder %v2588_v1, 8.507059e+37  ;;  %3551 = vpow2.f32 %v2687_v21 }
 0x413   : > { %v2626_v56 = vsub.f32 1.0, %v2625_v16  ;;  %v2595_v57 = vmul.f32 %v3546_v51, %v2576_v43  ;;  %vm2600_vm15 = vweird.f32 %v3546_v51  ;;  %v3548_v29 = vpop.eup %3547  ;;  %vm2616_vm0 = vmor %vm2614_vm7, %vm2615_vm13  ;;  %v2591_v16 = vor.u32 1.1754944e-38, %v2590_v26 }
 0x414   : > { %v2611_v33 = vsub.f32 1.0, %v2610_v50  ;;  %v2580_v35 = vmul.f32 %v3548_v29, %v4543_v55  ;;  %vm2601_vm3 = vmor %vm2599_vm2, %vm2600_vm15  ;;  %vm2585_vm6 = vweird.f32 %v3548_v29  ;;  %vm2562_vm7 = vcmp.ge.f32.partialorder %v4517_v10, 0.0 }
 0x415   : > { %v2627_v17 = vmul.f32 %v3542_v0, %v2626_v56  ;;  %v2596_v8 = vsub.f32 1.0, %v2595_v57  ;;  %vm2586_vm9 = vmor %vm2584_vm8, %vm2585_vm6  ;;  %vm2561_vm13 = vcmp.ge.f32.partialorder %v4520_v5, 0.0  ;;  %v3591_v1 = vmov -1.0  }
 0x416   : > { %v2612_v31 = vmul.f32 %v3544_v19, %v2611_v33  ;;  %v2581_v6 = vsub.f32 1.0, %v2580_v35  ;;  %v2565_v5 = vsel %vm2561_vm13, 1.0, %v3591_v1 }
 0x417   : > { %v2628_v23 = vadd.f32 %v3542_v0, %v2627_v17  ;;  %v2597_v2 = vmul.f32 %v3546_v51, %v2596_v8 }
 0x418   : > { %v2613_v22 = vadd.f32 %v3544_v19, %v2612_v31  ;;  %v2582_v58 = vmul.f32 %v3548_v29, %v2581_v6  ;;  %v2679_v31 = vmul.f32 %v2675_v9, %v4540_v14 }
 0x419   : > { %v2632_v49 = vsel %vm2631_vm14, %v3542_v0, %v2628_v23  ;;  %v2598_v4 = vadd.f32 %v3546_v51, %v2597_v2  ;;  %vm2559_vm14 = vcmp.ge.f32.partialorder %v4537_v25, 0.0  ;;  %v2713_v25 = vld [vmem:[%s4744_s16 + $0x10] sm:$0xff] }
 0x41a   : > { %v2637_v54 = vsel %vm2634_vm11, %v2636_v46, %v2632_v49  ;;  %v2617_v13 = vsel %vm2616_vm0, %v3544_v19, %v2613_v22  ;;  %v2583_v43 = vadd.f32 %v3548_v29, %v2582_v58  ;;  %v2680_v19 = vmul.f32 %v2676_v12, %v4532_v18  ;;  %v2711_v22 = vld [vmem:[%s4744_s16] sm:$0xff] }
 0x41b   : > { %v2642_v27 = vmul.f32 1.0614054, %v2637_v54  ;;  %v2622_v32 = vsel %vm2619_vm1, %v2621_v52, %v2617_v13  ;;  %v2602_v62 = vsel %vm2601_vm3, %v3546_v51, %v2598_v4  ;;  %v2683_v52 = vmul.f32 1.442695, %v2679_v31  ;;  %v3550_v13 = vpop.eup %3549 }
 0x41c   : > { %v2641_v63 = vmul.f32 1.0614054, %v2622_v32  ;;  %v2607_v59 = vsel %vm2604_vm5, %v2606_v48, %v2602_v62  ;;  %v2587_v51 = vsel %vm2586_vm9, %v3548_v29, %v2583_v43  ;;  %v2685_v55 = vmul.f32 1.442695, %v2680_v19 }
 0x41d   : > { %v2646_v24 = vadd.f32 -1.4531521, %v2642_v27  ;;  %v2640_v41 = vmul.f32 1.0614054, %v2607_v59  ;;  %v2592_v20 = vsel %vm2589_vm10, %v2591_v16, %v2587_v51  ;;  %v2740_v40 = vsel %vm1435_vm4, %v2711_v22, 0  ;;  %v3552_v27 = vpop.eup %3551 }
 0x41e   : > { %v2645_v3 = vadd.f32 -1.4531521, %v2641_v63  ;;  %v2639_v57 = vmul.f32 1.0614054, %v2592_v20  ;;  %3553 = vpow2.f32 %v2685_v55  ;;  %vm2560_vm11 = vcmp.ge.f32.partialorder %v4523_v44, 0.0 }
 0x41f   : > { %v2650_v39 = vmul.f32 %v2646_v24, %v2637_v54  ;;  %v2644_v42 = vadd.f32 -1.4531521, %v2640_v41  ;;  %3555 = vpow2.f32 %v2683_v52  ;;  %v2551_v31 = vmul.f32 0.5, %v4525_v47 }
 0x420   : > { %v2649_v45 = vmul.f32 %v2645_v3, %v2622_v32  ;;  %v2643_v18 = vadd.f32 -1.4531521, %v2639_v57 }
 0x421   : > { %v2654_v0 = vadd.f32 1.4214138, %v2650_v39  ;;  %v2648_v50 = vmul.f32 %v2644_v42, %v2607_v59 }
 0x422   : > { %v2653_v7 = vadd.f32 1.4214138, %v2649_v45  ;;  %v2647_v46 = vmul.f32 %v2643_v18, %v2592_v20 }
 0x423   : > { %v2658_v56 = vmul.f32 %v2654_v0, %v2637_v54  ;;  %v2652_v33 = vadd.f32 1.4214138, %v2648_v50  ;;  %v2564_v0 = vsel %vm2560_vm11, 1.0, %v3591_v1 }
 0x424   : > { %v2657_v53 = vmul.f32 %v2653_v7, %v2622_v32  ;;  %v2651_v29 = vadd.f32 1.4214138, %v2647_v46  ;;  %v3554_v24 = vpop.eup %3553 }
 0x425   : > { %v2662_v17 = vadd.f32 -0.28449672, %v2658_v56  ;;  %v2656_v36 = vmul.f32 %v2652_v33, %v2607_v59  ;;  %v3556_v51 = vpop.eup %3555 }
 0x426   : > { %v2661_v15 = vadd.f32 -0.28449672, %v2657_v53  ;;  %v2655_v14 = vmul.f32 %v2651_v29, %v2592_v20 }
 0x427   : > { %v2666_v12 = vmul.f32 %v2662_v17, %v2637_v54  ;;  %v2660_v23 = vadd.f32 -0.28449672, %v2656_v36 }
 0x428   : > { %v2665_v8 = vmul.f32 %v2661_v15, %v2622_v32  ;;  %v2659_v6 = vadd.f32 -0.28449672, %v2655_v14  ;;  %v2563_v15 = vsel %vm2559_vm14, 1.0, %v3591_v1 }
 0x429   : > { %v2670_v34 = vadd.f32 0.2548296, %v2666_v12  ;;  %v2664_v38 = vmul.f32 %v2660_v23, %v2607_v59 }
 0x42a   : > { %v2669_v2 = vadd.f32 0.2548296, %v2665_v8  ;;  %v2663_v58 = vmul.f32 %v2659_v6, %v2592_v20 }
 0x42b   : > { %v2674_v49 = vmul.f32 %v2670_v34, %v2637_v54  ;;  %v2668_v35 = vadd.f32 0.2548296, %v2664_v38  ;;  %v2566_v54 = vsel %vm2562_vm7, 1.0, %v3591_v1  ;;  %v2746_v38 = vsel %vm1435_vm4, %v2713_v25, 0 }
 0x42c   : > { %v2673_v4 = vmul.f32 %v2669_v2, %v2622_v32  ;;  %v4567_v32 = vand.u32 4294901760, %v2740_v40  ;;  %v2667_v42 = vadd.f32 0.2548296, %v2663_v58  ;;  %v2787_v14 = vand.u32 4294901760, %v2746_v38 }
 0x42d   : > { %v2694_v48 = vmul.f32 %v3550_v13, %v2674_v49  ;;  %v2672_v62 = vmul.f32 %v2668_v35, %v2607_v59  ;;  %v2712_v59 = vld [vmem:[%s4744_s16 + $0x8] sm:$0xff] }
 0x42e   : > { %v2693_v63 = vmul.f32 %v3552_v27, %v2673_v4  ;;  %v4578_v44 = vsub.f32 %v2740_v40, %v4567_v32  ;;  %v2671_v7 = vmul.f32 %v2667_v42, %v2592_v20  ;;  %v2743_v50 = vsel %vm1435_vm4, %v2712_v59, 0 }
 0x42f   : > { %v2698_v26 = vsub.f32 1.0, %v2694_v48  ;;  %v2692_v41 = vmul.f32 %v3554_v24, %v2672_v62  ;;  %v4586_v57 = vand.u32 4294901760, %v2743_v50 }
 0x430   : > { %v2697_v3 = vsub.f32 1.0, %v2693_v63  ;;  %v2691_v53 = vmul.f32 %v3556_v51, %v2671_v7  ;;  %v2773_v33 = vand.u32 4294901760, %v4578_v44  ;;  %v2714_v63 = vld [vmem:[%s4744_s16 + $0x18] sm:$0xff] }
 0x431   : > { %v2702_v39 = vmul.f32 %v2698_v26, %v2566_v54  ;;  %v2696_v45 = vsub.f32 1.0, %v2692_v41  ;;  %v2780_v46 = vsub.f32 %v2743_v50, %v4586_v57  ;;  %v2788_v54 = vsub.f32 %v2746_v38, %v2787_v14 }
 0x432   : > { %v2701_v10 = vmul.f32 %v2697_v3, %v2565_v5  ;;  %v2695_v55 = vsub.f32 1.0, %v2691_v53  ;;  %v2774_v8 = vsub.f32 %v4578_v44, %v2773_v33  ;;  %v2749_v3 = vsel %vm1435_vm4, %v2714_v63, 0 }
 0x433   : > { %v2706_v43 = vadd.f32 1.0, %v2702_v39  ;;  %v2700_v16 = vmul.f32 %v2696_v45, %v2564_v0  ;;  %v2781_v35 = vand.u32 4294901760, %v2780_v46  ;;  %v2789_v39 = vand.u32 4294901760, %v2788_v54 }
 0x434   : > { %v2705_v19 = vadd.f32 1.0, %v2701_v10  ;;  %v2699_v12 = vmul.f32 %v2695_v55, %v2563_v15  ;;  %v2775_v13 = vand.u32 4294901760, %v2774_v8  ;;  %v2795_v5 = vand.u32 4294901760, %v2749_v3  ;;  %v2732_v55 = vpop.permute.xlu1 %2731 }
 0x435   : > { %v2710_v56 = vmul.f32 %v2706_v43, %v2554_v61  ;;  %v2704_v9 = vadd.f32 1.0, %v2700_v16  ;;  %v2782_v24 = vsub.f32 %v2780_v46, %v2781_v35  ;;  %v2790_v61 = vsub.f32 %v2788_v54, %v2789_v39 }
 0x436   : > { %v2709_v21 = vmul.f32 %v2705_v19, %v2553_v11  ;;  %v2703_v34 = vadd.f32 1.0, %v2699_v12  ;;  %v2796_v10 = vsub.f32 %v2749_v3, %v2795_v5 }
 0x437   : > { %v4583_v30 = vand.u32 4294901760, %v2710_v56  ;;  %v2708_v20 = vmul.f32 %v2704_v9, %v2552_v37  ;;  %v2783_v58 = vand.u32 4294901760, %v2782_v24  ;;  %v2791_v45 = vand.u32 4294901760, %v2790_v61 }
 0x438   : > { %v4588_v17 = vand.u32 4294901760, %v2709_v21  ;;  %v2707_v47 = vmul.f32 %v2703_v34, %v2551_v31  ;;  %v2797_v42 = vand.u32 4294901760, %v2796_v10 }
 0x439   : > { %2764 = vmatpush.msrb.mxu0 %v4583_v30  ;;  %2915 = vmatpush.msrb.mxu3 %v4583_v30  ;;  %v2817_v28 = vsub.f32 %v2710_v56, %v4583_v30  ;;  %v4597_v36 = vand.u32 4294901760, %v2708_v20 }
 0x43a   : > { %v2823_v18 = vsub.f32 %v2709_v21, %v4588_v17  ;;  %v2769_v40 = vand.u32 4294901760, %v2707_v47  ;;  %v2798_v43 = vsub.f32 %v2796_v10, %v2797_v42 }
 0x43b   : > { %2766 = vmatpush.msrb.mxu0 %v4588_v17  ;;  %2871 = vmatpush.msrb.mxu2 %v2817_v28  ;;  %v2818_v23 = vand.u32 4294901760, %v2817_v28  ;;  %v2829_v22 = vsub.f32 %v2708_v20, %v4597_v36 }
 0x43c   : > { %2917 = vmatpush.msrb.mxu3 %v4588_v17  ;;  %v2824_v2 = vand.u32 4294901760, %v2823_v18  ;;  %v2835_v62 = vsub.f32 %v2707_v47, %v2769_v40  ;;  %v2799_v11 = vand.u32 4294901760, %v2798_v43 }
 0x43d   : > { %2768 = vmatpush.msrb.mxu0 %v4597_v36  ;;  %2874 = vmatpush.msrb.mxu2 %v2823_v18  ;;  %v2819_v29 = vsub.f32 %v2817_v28, %v2818_v23  ;;  %v2830_v52 = vand.u32 4294901760, %v2829_v22 }
 0x43e   : > { %2919 = vmatpush.msrb.mxu3 %v4597_v36  ;;  %v2825_v49 = vsub.f32 %v2823_v18, %v2824_v2  ;;  %v2836_v26 = vand.u32 4294901760, %v2835_v62 }
 0x43f   : > { %2877 = vmatpush.msrb.mxu2 %v2829_v22  ;;  %v2820_v4 = vand.u32 4294901760, %v2819_v29  ;;  %v2831_v27 = vsub.f32 %v2829_v22, %v2830_v52  ;;  %2770 = vmatpush.msrb.mxu0 %v2769_v40 }
 0x440   : > { %v2826_v48 = vand.u32 4294901760, %v2825_v49  ;;  %2921 = vmatpush.msrb.mxu3 %v2769_v40  ;;  %2776 = vmatmul.f32.vlgmr.msrb.gmra.mxu0 %v2775_v13  ;;  %v2837_v41 = vsub.f32 %v2835_v62, %v2836_v26 }
 0x441   : > { %2821 = vmatpush.msrb.mxu1 %v2820_v4  ;;  %v2832_v6 = vand.u32 4294901760, %v2831_v27  ;;  %2962 = vmatpush.msra.mxu0 %v2818_v23 }
 0x442   : > { %2880 = vmatpush.msrb.mxu2 %v2835_v62  ;;  %2925 = vmatmul.f32.vlgmr.msrb.gmra.mxu3 %v2773_v33  ;;  %v2838_v59 = vand.u32 4294901760, %v2837_v41 }
 0x443   : > { %2827 = vmatpush.msrb.mxu1 %v2826_v48  ;;  %2883 = vmatmul.f32.vlgmr.msrb.gmra.mxu2 %v4578_v44 }
 0x444   : > { %2966 = vmatpush.msra.mxu0 %v2824_v2 }
 0x445   : > { %2833 = vmatpush.msrb.mxu1 %v2832_v6 }
 0x446   : > { %2970 = vmatpush.msra.mxu0 %v2830_v52 }
 0x447   : > { %2839 = vmatpush.msrb.mxu1 %v2838_v59 }
 0x448   : > { %2974 = vmatpush.msra.mxu0 %v2836_v26  ;;  %2841 = vmatmul.f32.vlgmr.msrb.gmra.mxu1 %v4567_v32 }
 0x449   : > { %2784 = vmatmul.f32.gmra.mxu0 %v2783_v58  ;;  %3005 = vmatpush.msra.mxu1 %v4583_v30 }
 0x44a   : > { %2931 = vmatmul.f32.gmra.mxu3 %v2781_v35 }
 0x44b   : > { %2888 = vmatmul.f32.gmra.mxu2 %v2780_v46  ;;  %3007 = vmatpush.msra.mxu1 %v4588_v17 }
 0x44d   : > { %3009 = vmatpush.msra.mxu1 %v4597_v36 }
 0x44f   : > { %3011 = vmatpush.msra.mxu1 %v2769_v40 }
 0x450   : > { %2845 = vmatmul.f32.gmra.mxu1 %v4586_v57 }
 0x451   : > { %2792 = vmatmul.f32.gmra.mxu0 %v2791_v45 }
 0x452   : > { %2937 = vmatmul.f32.gmra.mxu3 %v2789_v39 }
 0x453   : > { %2893 = vmatmul.f32.gmra.mxu2 %v2788_v54 }
 0x458   : > { %2849 = vmatmul.f32.gmra.mxu1 %v2787_v14 }
 0x459   : > { %2800 = vmatmul.f32.gmra.mxu0 %v2799_v11 }
 0x45a   : > { %2943 = vmatmul.f32.gmra.mxu3 %v2797_v42 }
 0x45b   : > { %2898 = vmatmul.f32.gmra.mxu2 %v2796_v10 }
 0x460   : > { %2853 = vmatmul.f32.gmra.mxu1 %v2795_v5 }
 0x461   : > { %2976 = vmatmul.f32.vlgmr.msra.gmra.mxu0 %v4567_v32 }
 0x468   : > { %3013 = vmatmul.f32.vlgmr.msra.gmra.mxu1 %v4567_v32  ;;  %v2722_v32 = vpop.permute.xlu2 %2721 }
 0x469   : > { %2980 = vmatmul.f32.gmra.mxu0 %v4586_v57 }
 0x470   : > { %3017 = vmatmul.f32.gmra.mxu1 %v4586_v57  ;;  %v2727_v57 = vpop.permute.xlu0 %2726  ;;  %v2737_v46 = vpop.permute.xlu2 %2736 }
 0x471   : > { %2984 = vmatmul.f32.gmra.mxu0 %v2787_v14 }
 0x478   : > { %3021 = vmatmul.f32.gmra.mxu1 %v2787_v14 }
 0x479   : > { %2988 = vmatmul.f32.gmra.mxu0 %v2795_v5 }
 0x480   : > { %3025 = vmatmul.f32.gmra.mxu1 %v2795_v5 }
 0x4bd   : > { %v2777_v0 = vpop.f32.mrf.mxu0 }
 0x4be   : > { %v2778_v15 = vadd.f32 %v2777_v0, %v2722_v32 }
 0x4c5   : > { %v2842_v19 = vpop.f32.mrf.mxu1  ;;  %v2926_v37 = vpop.f32.mrf.mxu3 }
 0x4c6   : > { %v2785_v44 = vpop.f32.mrf.mxu0  ;;  %v2884_v50 = vpop.f32.mrf.mxu2  ;;  %v2843_v18 = vadd.f32 %v2842_v19, %v2778_v15 }
 0x4c7   : > { %v2786_v20 = vadd.f32 %v2785_v44, %v2727_v57 }
 0x4c8   : > { %v2885_v22 = vadd.f32 %v2884_v50, %v2843_v18 }
 0x4ca   : > { %v2927_v52 = vadd.f32 %v2926_v37, %v2885_v22 }
 0x4cd   : > { %v2846_v7 = vpop.f32.mrf.mxu1  ;;  %v2932_v30 = vpop.f32.mrf.mxu3 }
 0x4ce   : > { %v2793_v16 = vpop.f32.mrf.mxu0  ;;  %v2889_v53 = vpop.f32.mrf.mxu2  ;;  %v2847_v36 = vadd.f32 %v2846_v7, %v2786_v20 }
 0x4cf   : > { %v2794_v25 = vadd.f32 %v2793_v16, %v2732_v55 }
 0x4d0   : > { %v2890_v23 = vadd.f32 %v2889_v53, %v2847_v36 }
 0x4d2   : > { %v2933_v29 = vadd.f32 %v2932_v30, %v2890_v23  ;;  %v3091_v23 = vpop.permute.xlu0 %3090 }
 0x4d5   : > { %v2850_v56 = vpop.f32.mrf.mxu1  ;;  %v2938_v31 = vpop.f32.mrf.mxu3 }
 0x4d6   : > { %v2801_v51 = vpop.f32.mrf.mxu0  ;;  %v2894_v28 = vpop.f32.mrf.mxu2  ;;  %v2851_v12 = vadd.f32 %v2850_v56, %v2794_v25 }
 0x4d7   : > { %v2802_v2 = vadd.f32 %v2801_v51, %v2737_v46  ;;  %v3096_v46 = vpop.permute.xlu1 %3095 }
 0x4d8   : > { %v2895_v38 = vadd.f32 %v2894_v28, %v2851_v12 }
 0x4da   : > { %v2939_v13 = vadd.f32 %v2938_v31, %v2895_v38 }
 0x4dd   : > { %v2854_v21 = vpop.f32.mrf.mxu1  ;;  %v2944_v63 = vpop.f32.mrf.mxu3 }
 0x4de   : > { %v2977_v9 = vpop.f32.mrf.mxu0  ;;  %v2855_v47 = vadd.f32 %v2854_v21, %v2802_v2  ;;  %v2899_v49 = vpop.f32.mrf.mxu2 }
 0x4df   : > { %v2978_v14 = vadd.f32 %v2977_v9, %v2927_v52  ;;  %v3101_v2 = vpop.permute.xlu2 %3100 }
 0x4e0   : > { %v2900_v40 = vadd.f32 %v2899_v49, %v2855_v47  ;;  %v3120_v47 = vpop.permute.xlu1 %3119 }
 0x4e2   : > { %v2945_v54 = vadd.f32 %v2944_v63, %v2900_v40 }
 0x4e5   : > { %v3014_v17 = vpop.f32.mrf.mxu1 }
 0x4e6   : > { %v2981_v33 = vpop.f32.mrf.mxu0  ;;  %v3015_v62 = vadd.f32 %v3014_v17, %v2978_v14 }
 0x4e7   : > { %v2982_v4 = vadd.f32 %v2981_v33, %v2933_v29  ;;  %v3115_v29 = vpop.permute.xlu0 %3114 }
 0x4e8   : > { %v3037_v3 = vsel %vm1691_vm12, %v3015_v62, 0.0 }
 0x4ed   : > { %v3018_v8 = vpop.f32.mrf.mxu1 }
 0x4ee   : > { %v2985_v34 = vpop.f32.mrf.mxu0  ;;  %v3019_v48 = vadd.f32 %v3018_v8, %v2982_v4 }
 0x4ef   : > { %v2986_v27 = vadd.f32 %v2985_v34, %v2939_v13 }
 0x4f0   : > { %v3038_v26 = vsel %vm1691_vm12, %v3019_v48, 0.0 }
 0x4f1   : > { %v3039_v39 = vadd.f32 %v3038_v26, %v3037_v3 }
 0x4f5   : > { %v3022_v35 = vpop.f32.mrf.mxu1 }
 0x4f6   : > { %v3023_v6 = vadd.f32 %v3022_v35, %v2986_v27  ;;  %v2989_v24 = vpop.f32.mrf.mxu0  ;;  %v3106_v27 = vpop.permute.xlu2 %3105 }
 0x4f7   : > { %v2990_v41 = vadd.f32 %v2989_v24, %v2945_v54  ;;  %v3125_v24 = vpop.permute.xlu0 %3124  ;;  %v3130_v54 = vpop.permute.xlu1 %3129 }
 0x4f8   : > { %v3040_v58 = vsel %vm1691_vm12, %v3023_v6, 0.0 }
 0x4f9   : > { %v3041_v61 = vadd.f32 %v3040_v58, %v3039_v39 }
 0x4fd   : > { %v3026_v5 = vpop.f32.mrf.mxu1 }
 0x4fe   : > { %v3027_v59 = vadd.f32 %v3026_v5, %v2990_v41 }
 0x500   : > { %v3042_v10 = vsel %vm1691_vm12, %v3027_v59, 0.0 }
 0x501   : > { %v3043_v45 = vadd.f32 %v3042_v10, %v3041_v61 }
 0x503   : > { %v3044_v42 = vrot.slane %v3043_v45, 4 }
 0x505   : > { %v3045_v43 = vadd.f32 %v3044_v42, %v3043_v45 }
 0x507   : > { %v3046_v11 = vrot.slane %v3045_v43, 2 }
 0x509   : > { %v3047_v0 = vadd.f32 %v3046_v11, %v3045_v43 }
 0x50b   : > { %v3048_v44 = vrot.slane %v3047_v0, 1 }
 0x50d   : > { %v3049_v19 = vadd.f32 %v3048_v44, %v3047_v0 }
 0x50f   : > { %v3050_v16 = vmul.f32 %v3049_v19, %v4502_v60 }
 0x511   : > { %v3051_v7 = vsub.f32 %v3015_v62, %v3050_v16  ;;  %v3052_v50 = vsub.f32 %v3019_v48, %v3050_v16  ;;  %v3053_v51 = vsub.f32 %v3023_v6, %v3050_v16  ;;  %v3054_v56 = vsub.f32 %v3027_v59, %v3050_v16 }
 0x513   : > { %v3055_v37 = vmul.f32 %v3051_v7, %v3051_v7  ;;  %v3056_v21 = vmul.f32 %v3052_v50, %v3052_v50  ;;  %v3057_v9 = vmul.f32 %v3053_v51, %v3053_v51  ;;  %v3058_v53 = vmul.f32 %v3054_v56, %v3054_v56 }
 0x515   : > { %v3059_v30 = vsel %vm1691_vm12, %v3055_v37, 0.0  ;;  %v3060_v32 = vsel %vm1691_vm12, %v3056_v21, 0.0  ;;  %v3062_v17 = vsel %vm1691_vm12, %v3057_v9, 0.0  ;;  %v3064_v20 = vsel %vm1691_vm12, %v3058_v53, 0.0 }
 0x516   : > { %v3061_v33 = vadd.f32 %v3060_v32, %v3059_v30 }
 0x518   : > { %v3063_v57 = vadd.f32 %v3062_v17, %v3061_v33 }
 0x51a   : > { %v3065_v55 = vadd.f32 %v3064_v20, %v3063_v57 }
 0x51c   : > { %v3066_v28 = vrot.slane %v3065_v55, 4 }
 0x51e   : > { %v3067_v15 = vadd.f32 %v3066_v28, %v3065_v55 }
 0x520   : > { %v3068_v25 = vrot.slane %v3067_v15, 2 }
 0x522   : > { %v3069_v36 = vadd.f32 %v3068_v25, %v3067_v15 }
 0x524   : > { %v3070_v18 = vrot.slane %v3069_v36, 1 }
 0x526   : > { %v3071_v12 = vadd.f32 %v3070_v18, %v3069_v36 }
 0x528   : > { %v3072_v31 = vmul.f32 %v3071_v12, %v4502_v60 }
 0x52a   : > { %v3073_v8 = vadd.f32 1e-05, %v3072_v31 }
 0x52c   : > { %3557 = vrsqrt.f32 %v3073_v8  ;;  %vm3080_vm15 = vweird.f32 %v3073_v8 }
 0x532   : > { %v3558_v34 = vpop.eup %3557 }
 0x533   : > { %v3075_v22 = vmul.f32 %v3558_v34, %v3073_v8  ;;  %vm3081_vm4 = vweird.f32 %v3558_v34 }
 0x534   : > { %vm3082_vm0 = vmor %vm3080_vm15, %vm3081_vm4 }
 0x535   : > { %v3076_v38 = vmul.f32 %v3558_v34, %v3075_v22 }
 0x537   : > { %v3077_v49 = vmul.f32 0.5, %v3076_v38 }
 0x539   : > { %v3078_v52 = vsub.f32 1.5, %v3077_v49 }
 0x53b   : > { %v3079_v13 = vmul.f32 %v3558_v34, %v3078_v52 }
 0x53d   : > { %v3083_v4 = vsel %vm3082_vm0, %v3558_v34, %v3079_v13 }
 0x53e   : > { %v3084_v35 = vmul.f32 %v3083_v4, %v3051_v7  ;;  %v3085_v14 = vmul.f32 %v3083_v4, %v3052_v50  ;;  %v3086_v60 = vmul.f32 %v3083_v4, %v3053_v51  ;;  %v3087_v40 = vmul.f32 %v3083_v4, %v3054_v56 }
 0x540   : > { %v3108_v48 = vmul.f32 %v3091_v23, %v3084_v35  ;;  %v3109_v63 = vmul.f32 %v3096_v46, %v3085_v14  ;;  %v3110_v62 = vmul.f32 %v3101_v2, %v3086_v60  ;;  %v3111_v6 = vmul.f32 %v3106_v27, %v3087_v40 }
 0x542   : > { %v4633_v26 = vadd.f32 %v3115_v29, %v3108_v48  ;;  %v4635_v3 = vadd.f32 %v3120_v47, %v3109_v63  ;;  %v4637_v41 = vadd.f32 %v3125_v24, %v3110_v62  ;;  %v4639_v58 = vadd.f32 %v3130_v54, %v3111_v6 }
 0x544   : > { %v4642_v39 = vmul.f32 0.70710677, %v4633_v26  ;;  %v4645_v5 = vmul.f32 0.70710677, %v4635_v3  ;;  %v4648_v59 = vmul.f32 0.70710677, %v4637_v41 }
 0x545   : > { %v4651_v61 = vmul.f32 0.70710677, %v4639_v58 }
 0x546   : > { %v4654_v10 = vand.u32 2147483647, %v4642_v39  ;;  %v4657_v45 = vand.u32 2147483647, %v4645_v5  ;;  %v4660_v42 = vand.u32 2147483647, %v4648_v59 }
 0x547   : > { %v4663_v43 = vand.u32 2147483647, %v4651_v61 }
 0x548   : > { %v3156_v11 = vmul.f32 0.3275911, %v4654_v10  ;;  %v3157_v0 = vmul.f32 0.3275911, %v4657_v45  ;;  %v3158_v44 = vmul.f32 0.3275911, %v4660_v42 }
 0x549   : > { %v3159_v19 = vmul.f32 0.3275911, %v4663_v43  ;;  %v3260_v32 = vsub.f32 0.0, %v4654_v10  ;;  %v3261_v33 = vsub.f32 0.0, %v4657_v45 }
 0x54a   : > { %v3160_v16 = vadd.f32 1.0, %v3156_v11  ;;  %v3161_v7 = vadd.f32 1.0, %v3157_v0  ;;  %v3162_v50 = vadd.f32 1.0, %v3158_v44  ;;  %v3262_v0 = vsub.f32 0.0, %v4660_v42 }
 0x54b   : > { %v4669_v51 = vadd.f32 1.0, %v3159_v19 }
 0x54c   : > { %3559 = vrcp.f32 %v3160_v16  ;;  %v3173_v56 = vand.u32 2147483647, %v3160_v16  ;;  %v3175_v21 = vand.u32 2147483648, %v3160_v16  ;;  %v3188_v9 = vand.u32 2147483647, %v3161_v7 }
 0x54d   : > { %3561 = vrcp.f32 %v3161_v7  ;;  %vm3169_vm1 = vweird.f32 %v3160_v16  ;;  %vm3184_vm2 = vweird.f32 %v3161_v7  ;;  %v3190_v20 = vand.u32 2147483648, %v3161_v7 }
 0x54e   : > { %3563 = vrcp.f32 %v3162_v50  ;;  %vm4674_vm3 = vcmp.eq.f32.partialorder %v3173_v56, 8.507059e+37  ;;  %vm3199_vm5 = vweird.f32 %v3162_v50  ;;  %v3176_v36 = vor.u32 1.1754944e-38, %v3175_v21 }
 0x54f   : > { %3565 = vrcp.f32 %v4669_v51  ;;  %vm4678_vm6 = vcmp.eq.f32.partialorder %v3188_v9, 8.507059e+37  ;;  %v3203_v31 = vand.u32 2147483647, %v3162_v50  ;;  %v3191_v22 = vor.u32 1.1754944e-38, %v3190_v20 }
 0x550   : > { %v3205_v2 = vand.u32 2147483648, %v3162_v50  ;;  %vm3214_vm13 = vweird.f32 %v4669_v51  ;;  %v3218_v52 = vand.u32 2147483647, %v4669_v51  ;;  %v3220_v13 = vand.u32 2147483648, %v4669_v51 }
 0x551   : > { %vm3204_vm15 = vcmp.eq.f32.partialorder %v3203_v31, 8.507059e+37  ;;  %v3263_v56 = vsub.f32 0.0, %v4663_v43 }
 0x552   : > { %v3560_v37 = vpop.eup %3559  ;;  %v3206_v27 = vor.u32 1.1754944e-38, %v3205_v2  ;;  %v3221_v54 = vor.u32 1.1754944e-38, %v3220_v13 }
 0x553   : > { %v3562_v53 = vpop.eup %3561  ;;  %v3165_v30 = vmul.f32 %v3560_v37, %v3160_v16  ;;  %vm3170_vm8 = vweird.f32 %v3560_v37 }
 0x554   : > { %v3564_v17 = vpop.eup %3563  ;;  %v3180_v57 = vmul.f32 %v3562_v53, %v3161_v7  ;;  %vm3185_vm9 = vweird.f32 %v3562_v53  ;;  %vm3171_vm7 = vmor %vm3169_vm1, %vm3170_vm8  ;;  %vm3219_vm1 = vcmp.eq.f32.partialorder %v3218_v52, 8.507059e+37 }
 0x555   : > { %v3166_v55 = vsub.f32 1.0, %v3165_v30  ;;  %v3195_v15 = vmul.f32 %v3564_v17, %v3162_v50  ;;  %v3566_v25 = vpop.eup %3565  ;;  %vm3200_vm10 = vweird.f32 %v3564_v17  ;;  %vm3186_vm11 = vmor %vm3184_vm2, %vm3185_vm9  ;;  %vm3144_vm2 = vcmp.ge.f32.partialorder %v4642_v39, 0.0 }
 0x556   : > { %v3181_v18 = vsub.f32 1.0, %v3180_v57  ;;  %v3210_v46 = vmul.f32 %v3566_v25, %v4669_v51  ;;  %vm3215_vm14 = vweird.f32 %v3566_v25  ;;  %vm3201_vm4 = vmor %vm3199_vm5, %vm3200_vm10  ;;  %v3265_v51 = vmul.f32 %v3261_v33, %v4657_v45 }
 0x557   : > { %v3167_v8 = vmul.f32 %v3560_v37, %v3166_v55  ;;  %v3196_v23 = vsub.f32 1.0, %v3195_v15  ;;  %vm3216_vm0 = vmor %vm3214_vm13, %vm3215_vm14  ;;  %v3267_v15 = vmul.f32 %v3263_v56, %v4663_v43  ;;  %vm3146_vm5 = vcmp.ge.f32.partialorder %v4648_v59, 0.0 }
 0x558   : > { %v3182_v34 = vmul.f32 %v3562_v53, %v3181_v18  ;;  %v3211_v47 = vsub.f32 1.0, %v3210_v46  ;;  %v3270_v31 = vmul.f32 1.442695, %v3265_v51  ;;  %v3136_v59 = vmul.f32 0.5, %v4633_v26 }
 0x559   : > { %v3168_v38 = vadd.f32 %v3560_v37, %v3167_v8  ;;  %v3197_v29 = vmul.f32 %v3564_v17, %v3196_v23  ;;  %v3274_v33 = vmul.f32 1.442695, %v3267_v15  ;;  %v3138_v51 = vmul.f32 0.5, %v4637_v41 }
 0x55a   : > { %v3183_v49 = vadd.f32 %v3562_v53, %v3182_v34  ;;  %v3212_v14 = vmul.f32 %v3566_v25, %v3211_v47 }
 0x55b   : > { %v3172_v4 = vsel %vm3171_vm7, %v3560_v37, %v3168_v38  ;;  %v3198_v35 = vadd.f32 %v3564_v17, %v3197_v29  ;;  %v3264_v37 = vmul.f32 %v3260_v32, %v4654_v10 }
 0x55c   : > { %v3177_v60 = vsel %vm4674_vm3, %v3176_v36, %v3172_v4  ;;  %v3187_v40 = vsel %vm3186_vm11, %v3562_v53, %v3183_v49  ;;  %v3213_v62 = vadd.f32 %v3566_v25, %v3212_v14  ;;  %vm3145_vm3 = vcmp.ge.f32.partialorder %v4645_v5, 0.0 }
 0x55d   : > { %v3192_v48 = vsel %vm4678_vm6, %v3191_v22, %v3187_v40  ;;  %v3202_v63 = vsel %vm3201_vm4, %v3564_v17, %v3198_v35  ;;  %v3224_v6 = vmul.f32 1.0614054, %v3177_v60  ;;  %v3266_v17 = vmul.f32 %v3262_v0, %v4660_v42 }
 0x55e   : > { %v3207_v24 = vsel %vm3204_vm15, %v3206_v27, %v3202_v63  ;;  %v3225_v11 = vmul.f32 1.0614054, %v3192_v48  ;;  %v3217_v44 = vsel %vm3216_vm0, %v3566_v25, %v3213_v62  ;;  %v3268_v25 = vmul.f32 1.442695, %v3264_v37 }
 0x55f   : > { %v3226_v19 = vmul.f32 1.0614054, %v3207_v24  ;;  %v3228_v16 = vadd.f32 -1.4531521, %v3224_v6  ;;  %v3222_v7 = vsel %vm3219_vm1, %v3221_v54, %v3217_v44  ;;  %v3272_v32 = vmul.f32 1.442695, %v3266_v17 }
 0x560   : > { %v3229_v50 = vadd.f32 -1.4531521, %v3225_v11  ;;  %v3227_v21 = vmul.f32 1.0614054, %v3222_v7  ;;  %3567 = vpow2.f32 %v3268_v25  ;;  %vm3147_vm6 = vcmp.ge.f32.partialorder %v4651_v61, 0.0 }
 0x561   : > { %v3230_v9 = vadd.f32 -1.4531521, %v3226_v19  ;;  %v3232_v53 = vmul.f32 %v3228_v16, %v3177_v60  ;;  %3569 = vpow2.f32 %v3270_v31  ;;  %v3303_v19 = vpop.permute.xlu2 %3302  ;;  %v3149_v39 = vsel %vm3145_vm3, 1.0, %v3591_v1 }
 0x562   : > { %v3233_v30 = vmul.f32 %v3229_v50, %v3192_v48  ;;  %v3231_v57 = vadd.f32 -1.4531521, %v3227_v21  ;;  %3571 = vpow2.f32 %v3272_v32  ;;  %v3150_v5 = vsel %vm3146_vm5, 1.0, %v3591_v1 }
 0x563   : > { %v3234_v20 = vmul.f32 %v3230_v9, %v3207_v24  ;;  %v3236_v55 = vadd.f32 1.4214138, %v3232_v53  ;;  %3573 = vpow2.f32 %v3274_v33  ;;  %v3137_v9 = vmul.f32 0.5, %v4635_v3 }
 0x564   : > { %v3237_v28 = vadd.f32 1.4214138, %v3233_v30  ;;  %v3235_v36 = vmul.f32 %v3231_v57, %v3222_v7  ;;  %v3151_v61 = vsel %vm3147_vm6, 1.0, %v3591_v1 }
 0x565   : > { %v3238_v18 = vadd.f32 1.4214138, %v3234_v20  ;;  %v3240_v12 = vmul.f32 %v3236_v55, %v3177_v60  ;;  %v3308_v55 = vpop.permute.xlu0 %3307 }
 0x566   : > { %v3241_v10 = vmul.f32 %v3237_v28, %v3192_v48  ;;  %v3239_v8 = vadd.f32 1.4214138, %v3235_v36  ;;  %v3568_v4 = vpop.eup %3567  ;;  %v3139_v28 = vmul.f32 0.5, %v4639_v58  ;;  %v3313_v36 = vpop.permute.xlu1 %3312 }
 0x567   : > { %v3242_v23 = vmul.f32 %v3238_v18, %v3207_v24  ;;  %v3244_v46 = vadd.f32 -0.28449672, %v3240_v12  ;;  %v3570_v14 = vpop.eup %3569 }
 0x568   : > { %v3245_v45 = vadd.f32 -0.28449672, %v3241_v10  ;;  %v3243_v42 = vmul.f32 %v3239_v8, %v3222_v7  ;;  %v3572_v62 = vpop.eup %3571 }
 0x569   : > { %v3246_v34 = vadd.f32 -0.28449672, %v3242_v23  ;;  %v3248_v22 = vmul.f32 %v3244_v46, %v3177_v60  ;;  %v3574_v44 = vpop.eup %3573  ;;  %v3318_v31 = vpop.permute.xlu2 %3317 }
 0x56a   : > { %v3249_v2 = vmul.f32 %v3245_v45, %v3192_v48  ;;  %v3247_v43 = vadd.f32 -0.28449672, %v3243_v42 }
 0x56b   : > { %v3250_v38 = vmul.f32 %v3246_v34, %v3207_v24  ;;  %v3252_v29 = vadd.f32 0.2548296, %v3248_v22 }
 0x56c   : > { %v3253_v47 = vadd.f32 0.2548296, %v3249_v2  ;;  %v3251_v49 = vmul.f32 %v3247_v43, %v3222_v7  ;;  %v3345_v2 = vld [vmem:[%s728_s0] sm:$0xff] }
 0x56d   : > { %v3254_v52 = vadd.f32 0.2548296, %v3250_v38  ;;  %v3256_v13 = vmul.f32 %v3252_v29, %v3177_v60  ;;  %v3148_v60 = vsel %vm3144_vm2, 1.0, %v3591_v1  ;;  %v3341_v22 = vpop.permute.xlu0 %3340  ;;  %vm3346_vm8 = vcmp.ne.f32.partialorder %v3345_v2, 0.0 }
 0x56e   : > { %v3257_v35 = vmul.f32 %v3253_v47, %v3192_v48  ;;  %v3255_v40 = vadd.f32 0.2548296, %v3251_v49  ;;  %v3343_v38 = vperm.slane %v3341_v22, 0 }
 0x56f   : > { %v3258_v27 = vmul.f32 %v3254_v52, %v3207_v24  ;;  %v3276_v63 = vmul.f32 %v3568_v4, %v3256_v13 }
 0x570   : > { %v3277_v6 = vmul.f32 %v3570_v14, %v3257_v35  ;;  %v3259_v54 = vmul.f32 %v3255_v40, %v3222_v7 }
 0x571   : > { %v3278_v11 = vmul.f32 %v3572_v62, %v3258_v27  ;;  %v3280_v0 = vsub.f32 1.0, %v3276_v63 }
 0x572   : > { %v3281_v48 = vsub.f32 1.0, %v3277_v6  ;;  %v3279_v24 = vmul.f32 %v3574_v44, %v3259_v54 }
 0x573   : > { %v3282_v16 = vsub.f32 1.0, %v3278_v11  ;;  %v3284_v50 = vmul.f32 %v3280_v0, %v3148_v60 }
 0x574   : > { %v3285_v56 = vmul.f32 %v3281_v48, %v3149_v39  ;;  %v3283_v7 = vsub.f32 1.0, %v3279_v24 }
 0x575   : > { %v3286_v37 = vmul.f32 %v3282_v16, %v3150_v5  ;;  %v3288_v21 = vadd.f32 1.0, %v3284_v50 }
 0x576   : > { %v3289_v53 = vadd.f32 1.0, %v3285_v56  ;;  %v3287_v30 = vmul.f32 %v3283_v7, %v3151_v61 }
 0x577   : > { %v3290_v17 = vadd.f32 1.0, %v3286_v37  ;;  %v3292_v57 = vmul.f32 %v3288_v21, %v3136_v59 }
 0x578   : > { %v3293_v20 = vmul.f32 %v3289_v53, %v3137_v9  ;;  %v3291_v15 = vadd.f32 1.0, %v3287_v30 }
 0x579   : > { %v3294_v25 = vmul.f32 %v3290_v17, %v3138_v51  ;;  %v3320_v26 = vmul.f32 %v3303_v19, %v3292_v57 }
 0x57a   : > { %v3321_v18 = vmul.f32 %v3308_v55, %v3293_v20  ;;  %v3295_v12 = vmul.f32 %v3291_v15, %v3139_v28 }
 0x57b   : > { %v3322_v3 = vmul.f32 %v3313_v36, %v3294_v25  ;;  %v3324_v1 = vsel %vm1691_vm12, %v3320_v26, 0.0 }
 0x57c   : > { %v3325_v41 = vsel %vm1691_vm12, %v3321_v18, 0.0  ;;  %v3323_v10 = vmul.f32 %v3318_v31, %v3295_v12 }
 0x57d   : > { %v3326_v32 = vadd.f32 %v3325_v41, %v3324_v1  ;;  %v3327_v8 = vsel %vm1691_vm12, %v3322_v3, 0.0 }
 0x57e   : > { %v3329_v58 = vsel %vm1691_vm12, %v3323_v10, 0.0 }
 0x57f   : > { %v3328_v23 = vadd.f32 %v3327_v8, %v3326_v32 }
 0x581   : > { %v3330_v46 = vadd.f32 %v3329_v58, %v3328_v23 }
 0x583   : > { %v3331_v45 = vrot.slane %v3330_v46, 4 }
 0x585   : > { %v3332_v33 = vadd.f32 %v3331_v45, %v3330_v46 }
 0x587   : > { %v3333_v42 = vrot.slane %v3332_v33, 2 }
 0x589   : > { %v3334_v34 = vadd.f32 %v3333_v42, %v3332_v33 }
 0x58b   : > { %v3335_v43 = vrot.slane %v3334_v34, 1 }
 0x58d   : > { %v3336_v29 = vadd.f32 %v3335_v43, %v3334_v34 }
 0x58f   : > { %v3344_v47 = vadd.f32 %v3343_v38, %v3336_v29 }
 0x591   : > { %v3347_v49 = vsel %vm3346_vm8, %v3344_v47, 0.0 }
 0x592   : > { %3348 = vst.msk [vmem:[%s732_s10] sm:$0xff] %vm1691_vm12, %v3347_v49 }
 0x593 PF: > { %s38_s23 = sadd.s32 1, %s3581_s23  }
 0x594   : > { %p35_p4 = scmp.ge.s32.totalorder %s38_s23, 4  }
 0x596   :  { %37 = sbr.rel (!%p35_p4) target bundleno = 8 (0x8), region = 147 }

</bundles_post_ra>
